<compile_context>
chip_gen: v7x
topology: tpu7x:2x2x1
jax: 0.10.0
libtpu: 0.0.40
codegen_flags: <defaults>
</compile_context>

<pallas_src>
import functools

import jax
import jax.numpy as jnp
from jax.experimental import pallas as pl
from jax.experimental.pallas import tpu as pltpu


def _round_up(x, m):
    return (x + m - 1) // m * m


_VMEM_SPEC = pl.BlockSpec(memory_space=pltpu.MemorySpace.VMEM)

# Keep the hoisted input projection in vregs while it fits ~32 vregs.
_GI_VREG_BYTES_MAX = 128 * 1024


# ---------------------------------------------------------------------------
# Fused Pallas kernel: all GRU layers + FC head in a single pallas_call.
# ---------------------------------------------------------------------------

def _fused_gru_mlp_kernel(x_ref, w_ih_ref, w_hh_ref, b_ih_ref, b_hh_ref,
                          fc_w_ref, fc_b_ref, out_ref, *scratch,
                          T, Bp, keep_in_vregs):
    """Fused multi-layer GRU + Linear head.

    x_ref:    (T*Bp, W)      time-major input, batch padded to Bp (8-sublane),
                             features padded to W lanes
    w_ih_ref: (L, W, 3*Hp)   per-layer transposed+padded weight_ih (gates r,z,n)
    w_hh_ref: (L, Hp, 3*Hp)  per-layer transposed+padded weight_hh
    b_ih_ref: (L, 1, 3*Hp)
    b_hh_ref: (L, 1, 3*Hp)
    fc_w_ref: (Hp, Op)       transposed+padded FC weight
    fc_b_ref: (1, Op)
    out_ref:  (Bp, Op)       fc(h_n[-1]); real rows/cols sliced in the wrapper
    scratch:  () on the small path; (gi_scr (T,Bp,3Hp), seq_scr (T,Bp,Hp)) on the
              large-T fallback path.
    """
    L = w_ih_ref.shape[0]
    Hp = w_hh_ref.shape[1]

    h = jnp.zeros((Bp, Hp), jnp.float32)   # h0 = zeros (matches the module)

    if keep_in_vregs:
        # ---- small path: gi and the inter-layer sequence live in vregs ----------
        seq2d = x_ref[...]                                      # (T*Bp, W)
        for l in range(L):                                      # static unroll
            # One big MXU matmul per layer: all timesteps' input projection.
            w_in = w_ih_ref[l] if l == 0 else w_ih_ref[l][:Hp, :]
            gi = (jnp.dot(seq2d, w_in, preferred_element_type=jnp.float32)
                  + b_ih_ref[l])                                # (T*Bp, 3*Hp)

            w_hh_l = w_hh_ref[l]                                # hoisted loads
            b_hh_l = b_hh_ref[l]
            h = jnp.zeros((Bp, Hp), jnp.float32)
            hs = []
            for t in range(T):                                  # static unroll
                gi_t = gi[t * Bp:(t + 1) * Bp, :]               # aligned 8-row slice
                gh = (jnp.dot(h, w_hh_l, preferred_element_type=jnp.float32)
                      + b_hh_l)                                 # (Bp, 3*Hp)
                r = jax.nn.sigmoid(gi_t[:, 0:Hp] + gh[:, 0:Hp])
                z = jax.nn.sigmoid(gi_t[:, Hp:2 * Hp] + gh[:, Hp:2 * Hp])
                # b_hn lives inside gh, so it is correctly inside r * (...).
                n = jnp.tanh(gi_t[:, 2 * Hp:3 * Hp] + r * gh[:, 2 * Hp:3 * Hp])
                h = (1.0 - z) * n + z * h
                if l < L - 1:                                   # last layer: only h_T
                    hs.append(h)
            if l < L - 1:
                seq2d = jnp.concatenate(hs, axis=0)             # (T*Bp, Hp), in vregs
    else:
        # ---- fallback path: 8-row-aligned VMEM scratches, fori_loop recurrence --
        gi_scr, seq_scr = scratch                               # (T,Bp,3Hp), (T,Bp,Hp)
        for l in range(L):
            if l == 0:
                seq_in = x_ref[...]                             # (T*Bp, W)
                w_in = w_ih_ref[l]
            else:
                seq_in = seq_scr[...].reshape(T * Bp, Hp)
                w_in = w_ih_ref[l][:Hp, :]
            gi_scr[...] = (jnp.dot(seq_in, w_in,
                                   preferred_element_type=jnp.float32)
                           + b_ih_ref[l]).reshape(T, Bp, 3 * Hp)

            w_hh_l = w_hh_ref[l]
            b_hh_l = b_hh_ref[l]
            write_seq = l < L - 1

            def step(t, h_c):
                gi_t = gi_scr[t]                                # unmasked (Bp,3Hp) tile
                gh = (jnp.dot(h_c, w_hh_l, preferred_element_type=jnp.float32)
                      + b_hh_l)
                r = jax.nn.sigmoid(gi_t[:, 0:Hp] + gh[:, 0:Hp])
                z = jax.nn.sigmoid(gi_t[:, Hp:2 * Hp] + gh[:, Hp:2 * Hp])
                n = jnp.tanh(gi_t[:, 2 * Hp:3 * Hp] + r * gh[:, 2 * Hp:3 * Hp])
                h_n = (1.0 - z) * n + z * h_c
                if write_seq:
                    seq_scr[t] = h_n
                return h_n

            h = jax.lax.fori_loop(0, T, step,
                                  jnp.zeros((Bp, Hp), jnp.float32), unroll=4)

    # --- FC head on the final hidden state of the last layer --------------------
    out_ref[...] = (jnp.dot(h, fc_w_ref[...],
                            preferred_element_type=jnp.float32)
                    + fc_b_ref[...]).astype(out_ref.dtype)


# ---------------------------------------------------------------------------
# Parameter packing (done ONCE, outside jit): transpose + gate-lane padding.
# Invariant relied upon by the kernel: all padded weight/bias rows & columns are 0.
# ---------------------------------------------------------------------------

def pack_params(params):
    """torch-layout params -> stacked, transposed, lane-padded arrays."""
    layers = params["gru_layers"]
    L = len(layers)
    H = layers[0][1].shape[1]          # w_hh: (3H, H)
    D = layers[0][0].shape[1]          # layer-0 w_ih: (3H, D)
    Hp = _round_up(H, 128)
    W = max(_round_up(D, 128), Hp)     # padded layer-0 input width

    w_ih_st = jnp.zeros((L, W, 3 * Hp), jnp.float32)
    w_hh_st = jnp.zeros((L, Hp, 3 * Hp), jnp.float32)
    b_ih_st = jnp.zeros((L, 1, 3 * Hp), jnp.float32)
    b_hh_st = jnp.zeros((L, 1, 3 * Hp), jnp.float32)
    for l, (w_ih, w_hh, b_ih, b_hh) in enumerate(layers):
        d_in = w_ih.shape[1]
        for g in range(3):             # gate order r, z, n
            w_ih_st = w_ih_st.at[l, :d_in, g * Hp:g * Hp + H].set(
                w_ih[g * H:(g + 1) * H, :].T)
            w_hh_st = w_hh_st.at[l, :H, g * Hp:g * Hp + H].set(
                w_hh[g * H:(g + 1) * H, :].T)
            b_ih_st = b_ih_st.at[l, 0, g * Hp:g * Hp + H].set(b_ih[g * H:(g + 1) * H])
            b_hh_st = b_hh_st.at[l, 0, g * Hp:g * Hp + H].set(b_hh[g * H:(g + 1) * H])

    fc_w, fc_b = params["fc"]          # (O, H), (O,)
    O = fc_w.shape[0]
    Op = _round_up(O, 128)
    fc_w_p = jnp.zeros((Hp, Op), jnp.float32).at[:H, :O].set(fc_w.T)
    fc_b_p = jnp.zeros((1, Op), jnp.float32).at[0, :O].set(fc_b)

    return {"w_ih": w_ih_st, "w_hh": w_hh_st, "b_ih": b_ih_st, "b_hh": b_hh_st,
            "fc_w": fc_w_p, "fc_b": fc_b_p}


# ---------------------------------------------------------------------------
# Forward wrapper (plain-JAX glue: reshape / permute / padding of x only).
# ---------------------------------------------------------------------------

def gru_mlp_forward(x, packed, *, output_len, output_dim):
    """x: (B, C, N, T) float32 -> (B, output_len, output_dim, 1)"""
    B, C, N, T = x.shape
    D = C * N
    L = packed["w_ih"].shape[0]
    W = packed["w_ih"].shape[1]
    Hp = packed["w_hh"].shape[1]
    Op = packed["fc_w"].shape[1]
    O = output_len * output_dim
    Bp = _round_up(max(B, 1), 8)       # sublane-aligned batch

    # (B, C, N, T) -> (B, D, T) -> (T, B, D) time-major -> pad to (T, Bp, W)
    x_seq = jnp.transpose(x.reshape(B, D, T), (2, 0, 1)).astype(jnp.float32)
    x_pad = jnp.zeros((T, Bp, W), jnp.float32).at[:, :B, :D].set(x_seq)
    x_pad = x_pad.reshape(T * Bp, W)

    gi_bytes = T * Bp * 3 * Hp * 4
    keep_in_vregs = gi_bytes <= _GI_VREG_BYTES_MAX

    scratch_shapes = []
    if not keep_in_vregs:
        scratch_shapes = [pltpu.VMEM((T, Bp, 3 * Hp), jnp.float32),
                          pltpu.VMEM((T, Bp, Hp), jnp.float32)]

    # vmem limit from the actual footprint (stays under v7x's 64 MiB VMEM).
    data_bytes = 4 * (T * Bp * W
                      + L * (W * 3 * Hp + Hp * 3 * Hp + 2 * 3 * Hp)
                      + Hp * Op + Op
                      + Bp * Op)
    if not keep_in_vregs:
        data_bytes += 4 * (T * Bp * 3 * Hp + T * Bp * Hp)
    vmem_limit = int(min(64 * 1024 * 1024,
                         max(32 * 1024 * 1024, 2 * data_bytes)))

    out_p = pl.pallas_call(
        functools.partial(_fused_gru_mlp_kernel, T=T, Bp=Bp,
                          keep_in_vregs=keep_in_vregs),
        out_shape=jax.ShapeDtypeStruct((Bp, Op), jnp.float32),
        in_specs=[_VMEM_SPEC] * 7,
        out_specs=_VMEM_SPEC,
        scratch_shapes=scratch_shapes,
        compiler_params=pltpu.CompilerParams(vmem_limit_bytes=vmem_limit),
    )(x_pad, packed["w_ih"], packed["w_hh"], packed["b_ih"], packed["b_hh"],
      packed["fc_w"], packed["fc_b"])

    out = out_p[:B, :O]
    return out.reshape(B, output_len, output_dim)[..., None]


# ---------------------------------------------------------------------------
# Deterministic parameter construction (torch.nn.GRU / nn.Linear shapes)
# ---------------------------------------------------------------------------

def init_params(key, input_dim, hidden_dim, output_dim, output_len, num_layers):
    params = {"gru_layers": [], "fc": None}
    scale = 1.0 / jnp.sqrt(hidden_dim)
    for layer in range(num_layers):
        d_in = input_dim if layer == 0 else hidden_dim
        key, k1, k2, k3, k4 = jax.random.split(key, 5)
        w_ih = jax.random.uniform(k1, (3 * hidden_dim, d_in),
                                  minval=-scale, maxval=scale, dtype=jnp.float32)
        w_hh = jax.random.uniform(k2, (3 * hidden_dim, hidden_dim),
                                  minval=-scale, maxval=scale, dtype=jnp.float32)
        b_ih = jax.random.uniform(k3, (3 * hidden_dim,),
                                  minval=-scale, maxval=scale, dtype=jnp.float32)
        b_hh = jax.random.uniform(k4, (3 * hidden_dim,),
                                  minval=-scale, maxval=scale, dtype=jnp.float32)
        params["gru_layers"].append((w_ih, w_hh, b_ih, b_hh))
    key, k5, k6 = jax.random.split(key, 3)
    fc_w = jax.random.uniform(k5, (output_dim * output_len, hidden_dim),
                              minval=-scale, maxval=scale, dtype=jnp.float32)
    fc_b = jax.random.uniform(k6, (output_dim * output_len,),
                              minval=-scale, maxval=scale, dtype=jnp.float32)
    params["fc"] = (fc_w, fc_b)
    return params


# ---------------------------------------------------------------------------
# Pure-JAX reference (same math as torch.nn.GRU) for a correctness check
# ---------------------------------------------------------------------------

def reference_forward(x, params, *, output_len, output_dim):
    B, C, N, T = x.shape
    D = C * N
    seq = jnp.transpose(x.reshape(B, D, T), (0, 2, 1))  # (B, T, D) batch_first
    for (w_ih, w_hh, b_ih, b_hh) in params["gru_layers"]:
        H = w_hh.shape[1]
        h = jnp.zeros((B, H), jnp.float32)
        outs = []
        for t in range(T):
            x_t = seq[:, t, :]
            gi = x_t @ w_ih.T + b_ih
            gh = h @ w_hh.T + b_hh
            r = jax.nn.sigmoid(gi[:, :H] + gh[:, :H])
            z = jax.nn.sigmoid(gi[:, H:2 * H] + gh[:, H:2 * H])
            n = jnp.tanh(gi[:, 2 * H:] + r * gh[:, 2 * H:])
            h = (1.0 - z) * n + z * h
            outs.append(h)
        seq = jnp.stack(outs, axis=1)
    fc_w, fc_b = params["fc"]
    out = h @ fc_w.T + fc_b
    return out.reshape(B, output_len, output_dim)[..., None]


# ---------------------------------------------------------------------------
# Main
# ---------------------------------------------------------------------------

if __name__ == "__main__":
    # x: (B, C, N, T)  ->  GRU input_dim = C * N, sequence length = T
    B, C, N, T = 2, 4, 16, 8
    input_dim = C * N          # 64
    hidden_dim = 32
    output_dim = 3
    output_len = 4
    num_layers = 2

    key = jax.random.PRNGKey(0)
    key, xk = jax.random.split(key)
    x = jax.random.normal(xk, (B, C, N, T), dtype=jnp.float32)

    params = init_params(key, input_dim, hidden_dim, output_dim,
                         output_len, num_layers)
    packed = pack_params(params)           # one-time weight repack (outside jit)

    fwd = jax.jit(functools.partial(gru_mlp_forward,
                                    output_len=output_len,
                                    output_dim=output_dim))
    out = fwd(x, packed)
    out = jax.block_until_ready(out)

    assert out.shape == (B, output_len, output_dim, 1), out.shape

    ref = reference_forward(x, params, output_len=output_len,
                            output_dim=output_dim)
    assert jnp.allclose(out, ref, atol=1e-4, rtol=1e-4), (
        float(jnp.max(jnp.abs(out - ref))))

    print("KERNEL_OK")
</pallas_src>

<mosaic_0001>
module attributes {stable_mosaic.version = 11 : i64} {
  func.func @_fused_gru_mlp_kernel(%arg0: memref<64x128xf32, #tpu.memory_space<vmem>>, %arg1: memref<2x128x384xf32, #tpu.memory_space<vmem>>, %arg2: memref<2x128x384xf32, #tpu.memory_space<vmem>>, %arg3: memref<2x1x384xf32, #tpu.memory_space<vmem>>, %arg4: memref<2x1x384xf32, #tpu.memory_space<vmem>>, %arg5: memref<128x128xf32, #tpu.memory_space<vmem>>, %arg6: memref<1x128xf32, #tpu.memory_space<vmem>>, %arg7: memref<8x128xf32, #tpu.memory_space<vmem>>) attributes {dimension_semantics = [], scalar_prefetch = 0 : i64, scratch_operands = 0 : i64, tpu.core_type = #tpu.core_type<tc>} {
    %c0 = arith.constant 0 : index
    %c0_0 = arith.constant 0 : index
    %0 = vector.load %arg0[%c0, %c0_0] : memref<64x128xf32, #tpu.memory_space<vmem>>, vector<64x128xf32>
    %c0_1 = arith.constant 0 : index
    %c0_2 = arith.constant 0 : index
    %c0_3 = arith.constant 0 : index
    %1 = vector.load %arg1[%c0_1, %c0_2, %c0_3] : memref<2x128x384xf32, #tpu.memory_space<vmem>>, vector<1x128x384xf32>
    %2 = vector.shape_cast %1 : vector<1x128x384xf32> to vector<128x384xf32>
    %cst = arith.constant dense<0.000000e+00> : vector<64x384xf32>
    %3 = tpu.matmul %0, %2, %cst {dimension_numbers = #tpu.dot_dimension_numbers<[1], [0], [0], [1], [0, 0, 1, 1], [], []>} : vector<64x128xf32>, vector<128x384xf32>, vector<64x384xf32> -> vector<64x384xf32>
    %c0_4 = arith.constant 0 : index
    %c0_5 = arith.constant 0 : index
    %c0_6 = arith.constant 0 : index
    %4 = vector.load %arg3[%c0_4, %c0_5, %c0_6] : memref<2x1x384xf32, #tpu.memory_space<vmem>>, vector<1x1x384xf32>
    %5 = vector.shape_cast %4 : vector<1x1x384xf32> to vector<1x384xf32>
    %6 = vector.broadcast %5 : vector<1x384xf32> to vector<64x384xf32>
    %7 = arith.addf %3, %6 : vector<64x384xf32>
    %c0_7 = arith.constant 0 : index
    %c0_8 = arith.constant 0 : index
    %c0_9 = arith.constant 0 : index
    %8 = vector.load %arg2[%c0_7, %c0_8, %c0_9] : memref<2x128x384xf32, #tpu.memory_space<vmem>>, vector<1x128x384xf32>
    %9 = vector.shape_cast %8 : vector<1x128x384xf32> to vector<128x384xf32>
    %c0_10 = arith.constant 0 : index
    %c0_11 = arith.constant 0 : index
    %c0_12 = arith.constant 0 : index
    %10 = vector.load %arg4[%c0_10, %c0_11, %c0_12] : memref<2x1x384xf32, #tpu.memory_space<vmem>>, vector<1x1x384xf32>
    %11 = vector.shape_cast %10 : vector<1x1x384xf32> to vector<1x384xf32>
    %cst_13 = arith.constant 0.000000e+00 : f32
    %12 = vector.broadcast %cst_13 : f32 to vector<8x128xf32>
    %13 = vector.extract_strided_slice %7 {offsets = [0, 0], sizes = [8, 384], strides = [1, 1]} : vector<64x384xf32> to vector<8x384xf32>
    %cst_14 = arith.constant dense<0.000000e+00> : vector<8x384xf32>
    %14 = tpu.matmul %12, %9, %cst_14 {dimension_numbers = #tpu.dot_dimension_numbers<[1], [0], [0], [1], [0, 0, 1, 1], [], []>} : vector<8x128xf32>, vector<128x384xf32>, vector<8x384xf32> -> vector<8x384xf32>
    %15 = vector.broadcast %11 : vector<1x384xf32> to vector<8x384xf32>
    %16 = arith.addf %14, %15 : vector<8x384xf32>
    %17 = vector.extract_strided_slice %13 {offsets = [0, 0], sizes = [8, 128], strides = [1, 1]} : vector<8x384xf32> to vector<8x128xf32>
    %18 = vector.extract_strided_slice %16 {offsets = [0, 0], sizes = [8, 128], strides = [1, 1]} : vector<8x384xf32> to vector<8x128xf32>
    %19 = arith.addf %17, %18 : vector<8x128xf32>
    %20 = arith.negf %19 : vector<8x128xf32>
    %21 = math.exp %20 : vector<8x128xf32>
    %cst_15 = arith.constant 1.000000e+00 : f32
    %22 = vector.broadcast %cst_15 : f32 to vector<8x128xf32>
    %23 = arith.addf %22, %21 : vector<8x128xf32>
    %24 = arith.divf %22, %23 : vector<8x128xf32>
    %25 = vector.extract_strided_slice %13 {offsets = [0, 128], sizes = [8, 128], strides = [1, 1]} : vector<8x384xf32> to vector<8x128xf32>
    %26 = vector.extract_strided_slice %16 {offsets = [0, 128], sizes = [8, 128], strides = [1, 1]} : vector<8x384xf32> to vector<8x128xf32>
    %27 = arith.addf %25, %26 : vector<8x128xf32>
    %28 = arith.negf %27 : vector<8x128xf32>
    %29 = math.exp %28 : vector<8x128xf32>
    %cst_16 = arith.constant 1.000000e+00 : f32
    %30 = vector.broadcast %cst_16 : f32 to vector<8x128xf32>
    %31 = arith.addf %30, %29 : vector<8x128xf32>
    %32 = arith.divf %30, %31 : vector<8x128xf32>
    %33 = vector.extract_strided_slice %13 {offsets = [0, 256], sizes = [8, 128], strides = [1, 1]} : vector<8x384xf32> to vector<8x128xf32>
    %34 = vector.extract_strided_slice %16 {offsets = [0, 256], sizes = [8, 128], strides = [1, 1]} : vector<8x384xf32> to vector<8x128xf32>
    %35 = arith.mulf %24, %34 : vector<8x128xf32>
    %36 = arith.addf %33, %35 : vector<8x128xf32>
    %37 = math.tanh %36 : vector<8x128xf32>
    %cst_17 = arith.constant 1.000000e+00 : f32
    %38 = vector.broadcast %cst_17 : f32 to vector<8x128xf32>
    %39 = arith.subf %38, %32 : vector<8x128xf32>
    %40 = arith.mulf %39, %37 : vector<8x128xf32>
    %41 = arith.mulf %32, %12 : vector<8x128xf32>
    %42 = arith.addf %40, %41 : vector<8x128xf32>
    %43 = vector.extract_strided_slice %7 {offsets = [8, 0], sizes = [8, 384], strides = [1, 1]} : vector<64x384xf32> to vector<8x384xf32>
    %cst_18 = arith.constant dense<0.000000e+00> : vector<8x384xf32>
    %44 = tpu.matmul %42, %9, %cst_18 {dimension_numbers = #tpu.dot_dimension_numbers<[1], [0], [0], [1], [0, 0, 1, 1], [], []>} : vector<8x128xf32>, vector<128x384xf32>, vector<8x384xf32> -> vector<8x384xf32>
    %45 = vector.broadcast %11 : vector<1x384xf32> to vector<8x384xf32>
    %46 = arith.addf %44, %45 : vector<8x384xf32>
    %47 = vector.extract_strided_slice %43 {offsets = [0, 0], sizes = [8, 128], strides = [1, 1]} : vector<8x384xf32> to vector<8x128xf32>
    %48 = vector.extract_strided_slice %46 {offsets = [0, 0], sizes = [8, 128], strides = [1, 1]} : vector<8x384xf32> to vector<8x128xf32>
    %49 = arith.addf %47, %48 : vector<8x128xf32>
    %50 = arith.negf %49 : vector<8x128xf32>
    %51 = math.exp %50 : vector<8x128xf32>
    %cst_19 = arith.constant 1.000000e+00 : f32
    %52 = vector.broadcast %cst_19 : f32 to vector<8x128xf32>
    %53 = arith.addf %52, %51 : vector<8x128xf32>
    %54 = arith.divf %52, %53 : vector<8x128xf32>
    %55 = vector.extract_strided_slice %43 {offsets = [0, 128], sizes = [8, 128], strides = [1, 1]} : vector<8x384xf32> to vector<8x128xf32>
    %56 = vector.extract_strided_slice %46 {offsets = [0, 128], sizes = [8, 128], strides = [1, 1]} : vector<8x384xf32> to vector<8x128xf32>
    %57 = arith.addf %55, %56 : vector<8x128xf32>
    %58 = arith.negf %57 : vector<8x128xf32>
    %59 = math.exp %58 : vector<8x128xf32>
    %cst_20 = arith.constant 1.000000e+00 : f32
    %60 = vector.broadcast %cst_20 : f32 to vector<8x128xf32>
    %61 = arith.addf %60, %59 : vector<8x128xf32>
    %62 = arith.divf %60, %61 : vector<8x128xf32>
    %63 = vector.extract_strided_slice %43 {offsets = [0, 256], sizes = [8, 128], strides = [1, 1]} : vector<8x384xf32> to vector<8x128xf32>
    %64 = vector.extract_strided_slice %46 {offsets = [0, 256], sizes = [8, 128], strides = [1, 1]} : vector<8x384xf32> to vector<8x128xf32>
    %65 = arith.mulf %54, %64 : vector<8x128xf32>
    %66 = arith.addf %63, %65 : vector<8x128xf32>
    %67 = math.tanh %66 : vector<8x128xf32>
    %cst_21 = arith.constant 1.000000e+00 : f32
    %68 = vector.broadcast %cst_21 : f32 to vector<8x128xf32>
    %69 = arith.subf %68, %62 : vector<8x128xf32>
    %70 = arith.mulf %69, %67 : vector<8x128xf32>
    %71 = arith.mulf %62, %42 : vector<8x128xf32>
    %72 = arith.addf %70, %71 : vector<8x128xf32>
    %73 = vector.extract_strided_slice %7 {offsets = [16, 0], sizes = [8, 384], strides = [1, 1]} : vector<64x384xf32> to vector<8x384xf32>
    %cst_22 = arith.constant dense<0.000000e+00> : vector<8x384xf32>
    %74 = tpu.matmul %72, %9, %cst_22 {dimension_numbers = #tpu.dot_dimension_numbers<[1], [0], [0], [1], [0, 0, 1, 1], [], []>} : vector<8x128xf32>, vector<128x384xf32>, vector<8x384xf32> -> vector<8x384xf32>
    %75 = vector.broadcast %11 : vector<1x384xf32> to vector<8x384xf32>
    %76 = arith.addf %74, %75 : vector<8x384xf32>
    %77 = vector.extract_strided_slice %73 {offsets = [0, 0], sizes = [8, 128], strides = [1, 1]} : vector<8x384xf32> to vector<8x128xf32>
    %78 = vector.extract_strided_slice %76 {offsets = [0, 0], sizes = [8, 128], strides = [1, 1]} : vector<8x384xf32> to vector<8x128xf32>
    %79 = arith.addf %77, %78 : vector<8x128xf32>
    %80 = arith.negf %79 : vector<8x128xf32>
    %81 = math.exp %80 : vector<8x128xf32>
    %cst_23 = arith.constant 1.000000e+00 : f32
    %82 = vector.broadcast %cst_23 : f32 to vector<8x128xf32>
    %83 = arith.addf %82, %81 : vector<8x128xf32>
    %84 = arith.divf %82, %83 : vector<8x128xf32>
    %85 = vector.extract_strided_slice %73 {offsets = [0, 128], sizes = [8, 128], strides = [1, 1]} : vector<8x384xf32> to vector<8x128xf32>
    %86 = vector.extract_strided_slice %76 {offsets = [0, 128], sizes = [8, 128], strides = [1, 1]} : vector<8x384xf32> to vector<8x128xf32>
    %87 = arith.addf %85, %86 : vector<8x128xf32>
    %88 = arith.negf %87 : vector<8x128xf32>
    %89 = math.exp %88 : vector<8x128xf32>
    %cst_24 = arith.constant 1.000000e+00 : f32
    %90 = vector.broadcast %cst_24 : f32 to vector<8x128xf32>
    %91 = arith.addf %90, %89 : vector<8x128xf32>
    %92 = arith.divf %90, %91 : vector<8x128xf32>
    %93 = vector.extract_strided_slice %73 {offsets = [0, 256], sizes = [8, 128], strides = [1, 1]} : vector<8x384xf32> to vector<8x128xf32>
    %94 = vector.extract_strided_slice %76 {offsets = [0, 256], sizes = [8, 128], strides = [1, 1]} : vector<8x384xf32> to vector<8x128xf32>
    %95 = arith.mulf %84, %94 : vector<8x128xf32>
    %96 = arith.addf %93, %95 : vector<8x128xf32>
    %97 = math.tanh %96 : vector<8x128xf32>
    %cst_25 = arith.constant 1.000000e+00 : f32
    %98 = vector.broadcast %cst_25 : f32 to vector<8x128xf32>
    %99 = arith.subf %98, %92 : vector<8x128xf32>
    %100 = arith.mulf %99, %97 : vector<8x128xf32>
    %101 = arith.mulf %92, %72 : vector<8x128xf32>
    %102 = arith.addf %100, %101 : vector<8x128xf32>
    %103 = vector.extract_strided_slice %7 {offsets = [24, 0], sizes = [8, 384], strides = [1, 1]} : vector<64x384xf32> to vector<8x384xf32>
    %cst_26 = arith.constant dense<0.000000e+00> : vector<8x384xf32>
    %104 = tpu.matmul %102, %9, %cst_26 {dimension_numbers = #tpu.dot_dimension_numbers<[1], [0], [0], [1], [0, 0, 1, 1], [], []>} : vector<8x128xf32>, vector<128x384xf32>, vector<8x384xf32> -> vector<8x384xf32>
    %105 = vector.broadcast %11 : vector<1x384xf32> to vector<8x384xf32>
    %106 = arith.addf %104, %105 : vector<8x384xf32>
    %107 = vector.extract_strided_slice %103 {offsets = [0, 0], sizes = [8, 128], strides = [1, 1]} : vector<8x384xf32> to vector<8x128xf32>
    %108 = vector.extract_strided_slice %106 {offsets = [0, 0], sizes = [8, 128], strides = [1, 1]} : vector<8x384xf32> to vector<8x128xf32>
    %109 = arith.addf %107, %108 : vector<8x128xf32>
    %110 = arith.negf %109 : vector<8x128xf32>
    %111 = math.exp %110 : vector<8x128xf32>
    %cst_27 = arith.constant 1.000000e+00 : f32
    %112 = vector.broadcast %cst_27 : f32 to vector<8x128xf32>
    %113 = arith.addf %112, %111 : vector<8x128xf32>
    %114 = arith.divf %112, %113 : vector<8x128xf32>
    %115 = vector.extract_strided_slice %103 {offsets = [0, 128], sizes = [8, 128], strides = [1, 1]} : vector<8x384xf32> to vector<8x128xf32>
    %116 = vector.extract_strided_slice %106 {offsets = [0, 128], sizes = [8, 128], strides = [1, 1]} : vector<8x384xf32> to vector<8x128xf32>
    %117 = arith.addf %115, %116 : vector<8x128xf32>
    %118 = arith.negf %117 : vector<8x128xf32>
    %119 = math.exp %118 : vector<8x128xf32>
    %cst_28 = arith.constant 1.000000e+00 : f32
    %120 = vector.broadcast %cst_28 : f32 to vector<8x128xf32>
    %121 = arith.addf %120, %119 : vector<8x128xf32>
    %122 = arith.divf %120, %121 : vector<8x128xf32>
    %123 = vector.extract_strided_slice %103 {offsets = [0, 256], sizes = [8, 128], strides = [1, 1]} : vector<8x384xf32> to vector<8x128xf32>
    %124 = vector.extract_strided_slice %106 {offsets = [0, 256], sizes = [8, 128], strides = [1, 1]} : vector<8x384xf32> to vector<8x128xf32>
    %125 = arith.mulf %114, %124 : vector<8x128xf32>
    %126 = arith.addf %123, %125 : vector<8x128xf32>
    %127 = math.tanh %126 : vector<8x128xf32>
    %cst_29 = arith.constant 1.000000e+00 : f32
    %128 = vector.broadcast %cst_29 : f32 to vector<8x128xf32>
    %129 = arith.subf %128, %122 : vector<8x128xf32>
    %130 = arith.mulf %129, %127 : vector<8x128xf32>
    %131 = arith.mulf %122, %102 : vector<8x128xf32>
    %132 = arith.addf %130, %131 : vector<8x128xf32>
    %133 = vector.extract_strided_slice %7 {offsets = [32, 0], sizes = [8, 384], strides = [1, 1]} : vector<64x384xf32> to vector<8x384xf32>
    %cst_30 = arith.constant dense<0.000000e+00> : vector<8x384xf32>
    %134 = tpu.matmul %132, %9, %cst_30 {dimension_numbers = #tpu.dot_dimension_numbers<[1], [0], [0], [1], [0, 0, 1, 1], [], []>} : vector<8x128xf32>, vector<128x384xf32>, vector<8x384xf32> -> vector<8x384xf32>
    %135 = vector.broadcast %11 : vector<1x384xf32> to vector<8x384xf32>
    %136 = arith.addf %134, %135 : vector<8x384xf32>
    %137 = vector.extract_strided_slice %133 {offsets = [0, 0], sizes = [8, 128], strides = [1, 1]} : vector<8x384xf32> to vector<8x128xf32>
    %138 = vector.extract_strided_slice %136 {offsets = [0, 0], sizes = [8, 128], strides = [1, 1]} : vector<8x384xf32> to vector<8x128xf32>
    %139 = arith.addf %137, %138 : vector<8x128xf32>
    %140 = arith.negf %139 : vector<8x128xf32>
    %141 = math.exp %140 : vector<8x128xf32>
    %cst_31 = arith.constant 1.000000e+00 : f32
    %142 = vector.broadcast %cst_31 : f32 to vector<8x128xf32>
    %143 = arith.addf %142, %141 : vector<8x128xf32>
    %144 = arith.divf %142, %143 : vector<8x128xf32>
    %145 = vector.extract_strided_slice %133 {offsets = [0, 128], sizes = [8, 128], strides = [1, 1]} : vector<8x384xf32> to vector<8x128xf32>
    %146 = vector.extract_strided_slice %136 {offsets = [0, 128], sizes = [8, 128], strides = [1, 1]} : vector<8x384xf32> to vector<8x128xf32>
    %147 = arith.addf %145, %146 : vector<8x128xf32>
    %148 = arith.negf %147 : vector<8x128xf32>
    %149 = math.exp %148 : vector<8x128xf32>
    %cst_32 = arith.constant 1.000000e+00 : f32
    %150 = vector.broadcast %cst_32 : f32 to vector<8x128xf32>
    %151 = arith.addf %150, %149 : vector<8x128xf32>
    %152 = arith.divf %150, %151 : vector<8x128xf32>
    %153 = vector.extract_strided_slice %133 {offsets = [0, 256], sizes = [8, 128], strides = [1, 1]} : vector<8x384xf32> to vector<8x128xf32>
    %154 = vector.extract_strided_slice %136 {offsets = [0, 256], sizes = [8, 128], strides = [1, 1]} : vector<8x384xf32> to vector<8x128xf32>
    %155 = arith.mulf %144, %154 : vector<8x128xf32>
    %156 = arith.addf %153, %155 : vector<8x128xf32>
    %157 = math.tanh %156 : vector<8x128xf32>
    %cst_33 = arith.constant 1.000000e+00 : f32
    %158 = vector.broadcast %cst_33 : f32 to vector<8x128xf32>
    %159 = arith.subf %158, %152 : vector<8x128xf32>
    %160 = arith.mulf %159, %157 : vector<8x128xf32>
    %161 = arith.mulf %152, %132 : vector<8x128xf32>
    %162 = arith.addf %160, %161 : vector<8x128xf32>
    %163 = vector.extract_strided_slice %7 {offsets = [40, 0], sizes = [8, 384], strides = [1, 1]} : vector<64x384xf32> to vector<8x384xf32>
    %cst_34 = arith.constant dense<0.000000e+00> : vector<8x384xf32>
    %164 = tpu.matmul %162, %9, %cst_34 {dimension_numbers = #tpu.dot_dimension_numbers<[1], [0], [0], [1], [0, 0, 1, 1], [], []>} : vector<8x128xf32>, vector<128x384xf32>, vector<8x384xf32> -> vector<8x384xf32>
    %165 = vector.broadcast %11 : vector<1x384xf32> to vector<8x384xf32>
    %166 = arith.addf %164, %165 : vector<8x384xf32>
    %167 = vector.extract_strided_slice %163 {offsets = [0, 0], sizes = [8, 128], strides = [1, 1]} : vector<8x384xf32> to vector<8x128xf32>
    %168 = vector.extract_strided_slice %166 {offsets = [0, 0], sizes = [8, 128], strides = [1, 1]} : vector<8x384xf32> to vector<8x128xf32>
    %169 = arith.addf %167, %168 : vector<8x128xf32>
    %170 = arith.negf %169 : vector<8x128xf32>
    %171 = math.exp %170 : vector<8x128xf32>
    %cst_35 = arith.constant 1.000000e+00 : f32
    %172 = vector.broadcast %cst_35 : f32 to vector<8x128xf32>
    %173 = arith.addf %172, %171 : vector<8x128xf32>
    %174 = arith.divf %172, %173 : vector<8x128xf32>
    %175 = vector.extract_strided_slice %163 {offsets = [0, 128], sizes = [8, 128], strides = [1, 1]} : vector<8x384xf32> to vector<8x128xf32>
    %176 = vector.extract_strided_slice %166 {offsets = [0, 128], sizes = [8, 128], strides = [1, 1]} : vector<8x384xf32> to vector<8x128xf32>
    %177 = arith.addf %175, %176 : vector<8x128xf32>
    %178 = arith.negf %177 : vector<8x128xf32>
    %179 = math.exp %178 : vector<8x128xf32>
    %cst_36 = arith.constant 1.000000e+00 : f32
    %180 = vector.broadcast %cst_36 : f32 to vector<8x128xf32>
    %181 = arith.addf %180, %179 : vector<8x128xf32>
    %182 = arith.divf %180, %181 : vector<8x128xf32>
    %183 = vector.extract_strided_slice %163 {offsets = [0, 256], sizes = [8, 128], strides = [1, 1]} : vector<8x384xf32> to vector<8x128xf32>
    %184 = vector.extract_strided_slice %166 {offsets = [0, 256], sizes = [8, 128], strides = [1, 1]} : vector<8x384xf32> to vector<8x128xf32>
    %185 = arith.mulf %174, %184 : vector<8x128xf32>
    %186 = arith.addf %183, %185 : vector<8x128xf32>
    %187 = math.tanh %186 : vector<8x128xf32>
    %cst_37 = arith.constant 1.000000e+00 : f32
    %188 = vector.broadcast %cst_37 : f32 to vector<8x128xf32>
    %189 = arith.subf %188, %182 : vector<8x128xf32>
    %190 = arith.mulf %189, %187 : vector<8x128xf32>
    %191 = arith.mulf %182, %162 : vector<8x128xf32>
    %192 = arith.addf %190, %191 : vector<8x128xf32>
    %193 = vector.extract_strided_slice %7 {offsets = [48, 0], sizes = [8, 384], strides = [1, 1]} : vector<64x384xf32> to vector<8x384xf32>
    %cst_38 = arith.constant dense<0.000000e+00> : vector<8x384xf32>
    %194 = tpu.matmul %192, %9, %cst_38 {dimension_numbers = #tpu.dot_dimension_numbers<[1], [0], [0], [1], [0, 0, 1, 1], [], []>} : vector<8x128xf32>, vector<128x384xf32>, vector<8x384xf32> -> vector<8x384xf32>
    %195 = vector.broadcast %11 : vector<1x384xf32> to vector<8x384xf32>
    %196 = arith.addf %194, %195 : vector<8x384xf32>
    %197 = vector.extract_strided_slice %193 {offsets = [0, 0], sizes = [8, 128], strides = [1, 1]} : vector<8x384xf32> to vector<8x128xf32>
    %198 = vector.extract_strided_slice %196 {offsets = [0, 0], sizes = [8, 128], strides = [1, 1]} : vector<8x384xf32> to vector<8x128xf32>
    %199 = arith.addf %197, %198 : vector<8x128xf32>
    %200 = arith.negf %199 : vector<8x128xf32>
    %201 = math.exp %200 : vector<8x128xf32>
    %cst_39 = arith.constant 1.000000e+00 : f32
    %202 = vector.broadcast %cst_39 : f32 to vector<8x128xf32>
    %203 = arith.addf %202, %201 : vector<8x128xf32>
    %204 = arith.divf %202, %203 : vector<8x128xf32>
    %205 = vector.extract_strided_slice %193 {offsets = [0, 128], sizes = [8, 128], strides = [1, 1]} : vector<8x384xf32> to vector<8x128xf32>
    %206 = vector.extract_strided_slice %196 {offsets = [0, 128], sizes = [8, 128], strides = [1, 1]} : vector<8x384xf32> to vector<8x128xf32>
    %207 = arith.addf %205, %206 : vector<8x128xf32>
    %208 = arith.negf %207 : vector<8x128xf32>
    %209 = math.exp %208 : vector<8x128xf32>
    %cst_40 = arith.constant 1.000000e+00 : f32
    %210 = vector.broadcast %cst_40 : f32 to vector<8x128xf32>
    %211 = arith.addf %210, %209 : vector<8x128xf32>
    %212 = arith.divf %210, %211 : vector<8x128xf32>
    %213 = vector.extract_strided_slice %193 {offsets = [0, 256], sizes = [8, 128], strides = [1, 1]} : vector<8x384xf32> to vector<8x128xf32>
    %214 = vector.extract_strided_slice %196 {offsets = [0, 256], sizes = [8, 128], strides = [1, 1]} : vector<8x384xf32> to vector<8x128xf32>
    %215 = arith.mulf %204, %214 : vector<8x128xf32>
    %216 = arith.addf %213, %215 : vector<8x128xf32>
    %217 = math.tanh %216 : vector<8x128xf32>
    %cst_41 = arith.constant 1.000000e+00 : f32
    %218 = vector.broadcast %cst_41 : f32 to vector<8x128xf32>
    %219 = arith.subf %218, %212 : vector<8x128xf32>
    %220 = arith.mulf %219, %217 : vector<8x128xf32>
    %221 = arith.mulf %212, %192 : vector<8x128xf32>
    %222 = arith.addf %220, %221 : vector<8x128xf32>
    %223 = vector.extract_strided_slice %7 {offsets = [56, 0], sizes = [8, 384], strides = [1, 1]} : vector<64x384xf32> to vector<8x384xf32>
    %cst_42 = arith.constant dense<0.000000e+00> : vector<8x384xf32>
    %224 = tpu.matmul %222, %9, %cst_42 {dimension_numbers = #tpu.dot_dimension_numbers<[1], [0], [0], [1], [0, 0, 1, 1], [], []>} : vector<8x128xf32>, vector<128x384xf32>, vector<8x384xf32> -> vector<8x384xf32>
    %225 = vector.broadcast %11 : vector<1x384xf32> to vector<8x384xf32>
    %226 = arith.addf %224, %225 : vector<8x384xf32>
    %227 = vector.extract_strided_slice %223 {offsets = [0, 0], sizes = [8, 128], strides = [1, 1]} : vector<8x384xf32> to vector<8x128xf32>
    %228 = vector.extract_strided_slice %226 {offsets = [0, 0], sizes = [8, 128], strides = [1, 1]} : vector<8x384xf32> to vector<8x128xf32>
    %229 = arith.addf %227, %228 : vector<8x128xf32>
    %230 = arith.negf %229 : vector<8x128xf32>
    %231 = math.exp %230 : vector<8x128xf32>
    %cst_43 = arith.constant 1.000000e+00 : f32
    %232 = vector.broadcast %cst_43 : f32 to vector<8x128xf32>
    %233 = arith.addf %232, %231 : vector<8x128xf32>
    %234 = arith.divf %232, %233 : vector<8x128xf32>
    %235 = vector.extract_strided_slice %223 {offsets = [0, 128], sizes = [8, 128], strides = [1, 1]} : vector<8x384xf32> to vector<8x128xf32>
    %236 = vector.extract_strided_slice %226 {offsets = [0, 128], sizes = [8, 128], strides = [1, 1]} : vector<8x384xf32> to vector<8x128xf32>
    %237 = arith.addf %235, %236 : vector<8x128xf32>
    %238 = arith.negf %237 : vector<8x128xf32>
    %239 = math.exp %238 : vector<8x128xf32>
    %cst_44 = arith.constant 1.000000e+00 : f32
    %240 = vector.broadcast %cst_44 : f32 to vector<8x128xf32>
    %241 = arith.addf %240, %239 : vector<8x128xf32>
    %242 = arith.divf %240, %241 : vector<8x128xf32>
    %243 = vector.extract_strided_slice %223 {offsets = [0, 256], sizes = [8, 128], strides = [1, 1]} : vector<8x384xf32> to vector<8x128xf32>
    %244 = vector.extract_strided_slice %226 {offsets = [0, 256], sizes = [8, 128], strides = [1, 1]} : vector<8x384xf32> to vector<8x128xf32>
    %245 = arith.mulf %234, %244 : vector<8x128xf32>
    %246 = arith.addf %243, %245 : vector<8x128xf32>
    %247 = math.tanh %246 : vector<8x128xf32>
    %cst_45 = arith.constant 1.000000e+00 : f32
    %248 = vector.broadcast %cst_45 : f32 to vector<8x128xf32>
    %249 = arith.subf %248, %242 : vector<8x128xf32>
    %250 = arith.mulf %249, %247 : vector<8x128xf32>
    %251 = arith.mulf %242, %222 : vector<8x128xf32>
    %252 = arith.addf %250, %251 : vector<8x128xf32>
    %253 = tpu.concatenate %42, %72, %102, %132, %162, %192, %222, %252 in 0 : vector<8x128xf32>, vector<8x128xf32>, vector<8x128xf32>, vector<8x128xf32>, vector<8x128xf32>, vector<8x128xf32>, vector<8x128xf32>, vector<8x128xf32> -> vector<64x128xf32>
    %c1 = arith.constant 1 : index
    %c0_46 = arith.constant 0 : index
    %c0_47 = arith.constant 0 : index
    %254 = vector.load %arg1[%c1, %c0_46, %c0_47] : memref<2x128x384xf32, #tpu.memory_space<vmem>>, vector<1x128x384xf32>
    %255 = vector.shape_cast %254 : vector<1x128x384xf32> to vector<128x384xf32>
    %cst_48 = arith.constant dense<0.000000e+00> : vector<64x384xf32>
    %256 = tpu.matmul %253, %255, %cst_48 {dimension_numbers = #tpu.dot_dimension_numbers<[1], [0], [0], [1], [0, 0, 1, 1], [], []>} : vector<64x128xf32>, vector<128x384xf32>, vector<64x384xf32> -> vector<64x384xf32>
    %c1_49 = arith.constant 1 : index
    %c0_50 = arith.constant 0 : index
    %c0_51 = arith.constant 0 : index
    %257 = vector.load %arg3[%c1_49, %c0_50, %c0_51] : memref<2x1x384xf32, #tpu.memory_space<vmem>>, vector<1x1x384xf32>
    %258 = vector.shape_cast %257 : vector<1x1x384xf32> to vector<1x384xf32>
    %259 = vector.broadcast %258 : vector<1x384xf32> to vector<64x384xf32>
    %260 = arith.addf %256, %259 : vector<64x384xf32>
    %c1_52 = arith.constant 1 : index
    %c0_53 = arith.constant 0 : index
    %c0_54 = arith.constant 0 : index
    %261 = vector.load %arg2[%c1_52, %c0_53, %c0_54] : memref<2x128x384xf32, #tpu.memory_space<vmem>>, vector<1x128x384xf32>
    %262 = vector.shape_cast %261 : vector<1x128x384xf32> to vector<128x384xf32>
    %c1_55 = arith.constant 1 : index
    %c0_56 = arith.constant 0 : index
    %c0_57 = arith.constant 0 : index
    %263 = vector.load %arg4[%c1_55, %c0_56, %c0_57] : memref<2x1x384xf32, #tpu.memory_space<vmem>>, vector<1x1x384xf32>
    %264 = vector.shape_cast %263 : vector<1x1x384xf32> to vector<1x384xf32>
    %cst_58 = arith.constant 0.000000e+00 : f32
    %265 = vector.broadcast %cst_58 : f32 to vector<8x128xf32>
    %266 = vector.extract_strided_slice %260 {offsets = [0, 0], sizes = [8, 384], strides = [1, 1]} : vector<64x384xf32> to vector<8x384xf32>
    %cst_59 = arith.constant dense<0.000000e+00> : vector<8x384xf32>
    %267 = tpu.matmul %265, %262, %cst_59 {dimension_numbers = #tpu.dot_dimension_numbers<[1], [0], [0], [1], [0, 0, 1, 1], [], []>} : vector<8x128xf32>, vector<128x384xf32>, vector<8x384xf32> -> vector<8x384xf32>
    %268 = vector.broadcast %264 : vector<1x384xf32> to vector<8x384xf32>
    %269 = arith.addf %267, %268 : vector<8x384xf32>
    %270 = vector.extract_strided_slice %266 {offsets = [0, 0], sizes = [8, 128], strides = [1, 1]} : vector<8x384xf32> to vector<8x128xf32>
    %271 = vector.extract_strided_slice %269 {offsets = [0, 0], sizes = [8, 128], strides = [1, 1]} : vector<8x384xf32> to vector<8x128xf32>
    %272 = arith.addf %270, %271 : vector<8x128xf32>
    %273 = arith.negf %272 : vector<8x128xf32>
    %274 = math.exp %273 : vector<8x128xf32>
    %cst_60 = arith.constant 1.000000e+00 : f32
    %275 = vector.broadcast %cst_60 : f32 to vector<8x128xf32>
    %276 = arith.addf %275, %274 : vector<8x128xf32>
    %277 = arith.divf %275, %276 : vector<8x128xf32>
    %278 = vector.extract_strided_slice %266 {offsets = [0, 128], sizes = [8, 128], strides = [1, 1]} : vector<8x384xf32> to vector<8x128xf32>
    %279 = vector.extract_strided_slice %269 {offsets = [0, 128], sizes = [8, 128], strides = [1, 1]} : vector<8x384xf32> to vector<8x128xf32>
    %280 = arith.addf %278, %279 : vector<8x128xf32>
    %281 = arith.negf %280 : vector<8x128xf32>
    %282 = math.exp %281 : vector<8x128xf32>
    %cst_61 = arith.constant 1.000000e+00 : f32
    %283 = vector.broadcast %cst_61 : f32 to vector<8x128xf32>
    %284 = arith.addf %283, %282 : vector<8x128xf32>
    %285 = arith.divf %283, %284 : vector<8x128xf32>
    %286 = vector.extract_strided_slice %266 {offsets = [0, 256], sizes = [8, 128], strides = [1, 1]} : vector<8x384xf32> to vector<8x128xf32>
    %287 = vector.extract_strided_slice %269 {offsets = [0, 256], sizes = [8, 128], strides = [1, 1]} : vector<8x384xf32> to vector<8x128xf32>
    %288 = arith.mulf %277, %287 : vector<8x128xf32>
    %289 = arith.addf %286, %288 : vector<8x128xf32>
    %290 = math.tanh %289 : vector<8x128xf32>
    %cst_62 = arith.constant 1.000000e+00 : f32
    %291 = vector.broadcast %cst_62 : f32 to vector<8x128xf32>
    %292 = arith.subf %291, %285 : vector<8x128xf32>
    %293 = arith.mulf %292, %290 : vector<8x128xf32>
    %294 = arith.mulf %285, %265 : vector<8x128xf32>
    %295 = arith.addf %293, %294 : vector<8x128xf32>
    %296 = vector.extract_strided_slice %260 {offsets = [8, 0], sizes = [8, 384], strides = [1, 1]} : vector<64x384xf32> to vector<8x384xf32>
    %cst_63 = arith.constant dense<0.000000e+00> : vector<8x384xf32>
    %297 = tpu.matmul %295, %262, %cst_63 {dimension_numbers = #tpu.dot_dimension_numbers<[1], [0], [0], [1], [0, 0, 1, 1], [], []>} : vector<8x128xf32>, vector<128x384xf32>, vector<8x384xf32> -> vector<8x384xf32>
    %298 = vector.broadcast %264 : vector<1x384xf32> to vector<8x384xf32>
    %299 = arith.addf %297, %298 : vector<8x384xf32>
    %300 = vector.extract_strided_slice %296 {offsets = [0, 0], sizes = [8, 128], strides = [1, 1]} : vector<8x384xf32> to vector<8x128xf32>
    %301 = vector.extract_strided_slice %299 {offsets = [0, 0], sizes = [8, 128], strides = [1, 1]} : vector<8x384xf32> to vector<8x128xf32>
    %302 = arith.addf %300, %301 : vector<8x128xf32>
    %303 = arith.negf %302 : vector<8x128xf32>
    %304 = math.exp %303 : vector<8x128xf32>
    %cst_64 = arith.constant 1.000000e+00 : f32
    %305 = vector.broadcast %cst_64 : f32 to vector<8x128xf32>
    %306 = arith.addf %305, %304 : vector<8x128xf32>
    %307 = arith.divf %305, %306 : vector<8x128xf32>
    %308 = vector.extract_strided_slice %296 {offsets = [0, 128], sizes = [8, 128], strides = [1, 1]} : vector<8x384xf32> to vector<8x128xf32>
    %309 = vector.extract_strided_slice %299 {offsets = [0, 128], sizes = [8, 128], strides = [1, 1]} : vector<8x384xf32> to vector<8x128xf32>
    %310 = arith.addf %308, %309 : vector<8x128xf32>
    %311 = arith.negf %310 : vector<8x128xf32>
    %312 = math.exp %311 : vector<8x128xf32>
    %cst_65 = arith.constant 1.000000e+00 : f32
    %313 = vector.broadcast %cst_65 : f32 to vector<8x128xf32>
    %314 = arith.addf %313, %312 : vector<8x128xf32>
    %315 = arith.divf %313, %314 : vector<8x128xf32>
    %316 = vector.extract_strided_slice %296 {offsets = [0, 256], sizes = [8, 128], strides = [1, 1]} : vector<8x384xf32> to vector<8x128xf32>
    %317 = vector.extract_strided_slice %299 {offsets = [0, 256], sizes = [8, 128], strides = [1, 1]} : vector<8x384xf32> to vector<8x128xf32>
    %318 = arith.mulf %307, %317 : vector<8x128xf32>
    %319 = arith.addf %316, %318 : vector<8x128xf32>
    %320 = math.tanh %319 : vector<8x128xf32>
    %cst_66 = arith.constant 1.000000e+00 : f32
    %321 = vector.broadcast %cst_66 : f32 to vector<8x128xf32>
    %322 = arith.subf %321, %315 : vector<8x128xf32>
    %323 = arith.mulf %322, %320 : vector<8x128xf32>
    %324 = arith.mulf %315, %295 : vector<8x128xf32>
    %325 = arith.addf %323, %324 : vector<8x128xf32>
    %326 = vector.extract_strided_slice %260 {offsets = [16, 0], sizes = [8, 384], strides = [1, 1]} : vector<64x384xf32> to vector<8x384xf32>
    %cst_67 = arith.constant dense<0.000000e+00> : vector<8x384xf32>
    %327 = tpu.matmul %325, %262, %cst_67 {dimension_numbers = #tpu.dot_dimension_numbers<[1], [0], [0], [1], [0, 0, 1, 1], [], []>} : vector<8x128xf32>, vector<128x384xf32>, vector<8x384xf32> -> vector<8x384xf32>
    %328 = vector.broadcast %264 : vector<1x384xf32> to vector<8x384xf32>
    %329 = arith.addf %327, %328 : vector<8x384xf32>
    %330 = vector.extract_strided_slice %326 {offsets = [0, 0], sizes = [8, 128], strides = [1, 1]} : vector<8x384xf32> to vector<8x128xf32>
    %331 = vector.extract_strided_slice %329 {offsets = [0, 0], sizes = [8, 128], strides = [1, 1]} : vector<8x384xf32> to vector<8x128xf32>
    %332 = arith.addf %330, %331 : vector<8x128xf32>
    %333 = arith.negf %332 : vector<8x128xf32>
    %334 = math.exp %333 : vector<8x128xf32>
    %cst_68 = arith.constant 1.000000e+00 : f32
    %335 = vector.broadcast %cst_68 : f32 to vector<8x128xf32>
    %336 = arith.addf %335, %334 : vector<8x128xf32>
    %337 = arith.divf %335, %336 : vector<8x128xf32>
    %338 = vector.extract_strided_slice %326 {offsets = [0, 128], sizes = [8, 128], strides = [1, 1]} : vector<8x384xf32> to vector<8x128xf32>
    %339 = vector.extract_strided_slice %329 {offsets = [0, 128], sizes = [8, 128], strides = [1, 1]} : vector<8x384xf32> to vector<8x128xf32>
    %340 = arith.addf %338, %339 : vector<8x128xf32>
    %341 = arith.negf %340 : vector<8x128xf32>
    %342 = math.exp %341 : vector<8x128xf32>
    %cst_69 = arith.constant 1.000000e+00 : f32
    %343 = vector.broadcast %cst_69 : f32 to vector<8x128xf32>
    %344 = arith.addf %343, %342 : vector<8x128xf32>
    %345 = arith.divf %343, %344 : vector<8x128xf32>
    %346 = vector.extract_strided_slice %326 {offsets = [0, 256], sizes = [8, 128], strides = [1, 1]} : vector<8x384xf32> to vector<8x128xf32>
    %347 = vector.extract_strided_slice %329 {offsets = [0, 256], sizes = [8, 128], strides = [1, 1]} : vector<8x384xf32> to vector<8x128xf32>
    %348 = arith.mulf %337, %347 : vector<8x128xf32>
    %349 = arith.addf %346, %348 : vector<8x128xf32>
    %350 = math.tanh %349 : vector<8x128xf32>
    %cst_70 = arith.constant 1.000000e+00 : f32
    %351 = vector.broadcast %cst_70 : f32 to vector<8x128xf32>
    %352 = arith.subf %351, %345 : vector<8x128xf32>
    %353 = arith.mulf %352, %350 : vector<8x128xf32>
    %354 = arith.mulf %345, %325 : vector<8x128xf32>
    %355 = arith.addf %353, %354 : vector<8x128xf32>
    %356 = vector.extract_strided_slice %260 {offsets = [24, 0], sizes = [8, 384], strides = [1, 1]} : vector<64x384xf32> to vector<8x384xf32>
    %cst_71 = arith.constant dense<0.000000e+00> : vector<8x384xf32>
    %357 = tpu.matmul %355, %262, %cst_71 {dimension_numbers = #tpu.dot_dimension_numbers<[1], [0], [0], [1], [0, 0, 1, 1], [], []>} : vector<8x128xf32>, vector<128x384xf32>, vector<8x384xf32> -> vector<8x384xf32>
    %358 = vector.broadcast %264 : vector<1x384xf32> to vector<8x384xf32>
    %359 = arith.addf %357, %358 : vector<8x384xf32>
    %360 = vector.extract_strided_slice %356 {offsets = [0, 0], sizes = [8, 128], strides = [1, 1]} : vector<8x384xf32> to vector<8x128xf32>
    %361 = vector.extract_strided_slice %359 {offsets = [0, 0], sizes = [8, 128], strides = [1, 1]} : vector<8x384xf32> to vector<8x128xf32>
    %362 = arith.addf %360, %361 : vector<8x128xf32>
    %363 = arith.negf %362 : vector<8x128xf32>
    %364 = math.exp %363 : vector<8x128xf32>
    %cst_72 = arith.constant 1.000000e+00 : f32
    %365 = vector.broadcast %cst_72 : f32 to vector<8x128xf32>
    %366 = arith.addf %365, %364 : vector<8x128xf32>
    %367 = arith.divf %365, %366 : vector<8x128xf32>
    %368 = vector.extract_strided_slice %356 {offsets = [0, 128], sizes = [8, 128], strides = [1, 1]} : vector<8x384xf32> to vector<8x128xf32>
    %369 = vector.extract_strided_slice %359 {offsets = [0, 128], sizes = [8, 128], strides = [1, 1]} : vector<8x384xf32> to vector<8x128xf32>
    %370 = arith.addf %368, %369 : vector<8x128xf32>
    %371 = arith.negf %370 : vector<8x128xf32>
    %372 = math.exp %371 : vector<8x128xf32>
    %cst_73 = arith.constant 1.000000e+00 : f32
    %373 = vector.broadcast %cst_73 : f32 to vector<8x128xf32>
    %374 = arith.addf %373, %372 : vector<8x128xf32>
    %375 = arith.divf %373, %374 : vector<8x128xf32>
    %376 = vector.extract_strided_slice %356 {offsets = [0, 256], sizes = [8, 128], strides = [1, 1]} : vector<8x384xf32> to vector<8x128xf32>
    %377 = vector.extract_strided_slice %359 {offsets = [0, 256], sizes = [8, 128], strides = [1, 1]} : vector<8x384xf32> to vector<8x128xf32>
    %378 = arith.mulf %367, %377 : vector<8x128xf32>
    %379 = arith.addf %376, %378 : vector<8x128xf32>
    %380 = math.tanh %379 : vector<8x128xf32>
    %cst_74 = arith.constant 1.000000e+00 : f32
    %381 = vector.broadcast %cst_74 : f32 to vector<8x128xf32>
    %382 = arith.subf %381, %375 : vector<8x128xf32>
    %383 = arith.mulf %382, %380 : vector<8x128xf32>
    %384 = arith.mulf %375, %355 : vector<8x128xf32>
    %385 = arith.addf %383, %384 : vector<8x128xf32>
    %386 = vector.extract_strided_slice %260 {offsets = [32, 0], sizes = [8, 384], strides = [1, 1]} : vector<64x384xf32> to vector<8x384xf32>
    %cst_75 = arith.constant dense<0.000000e+00> : vector<8x384xf32>
    %387 = tpu.matmul %385, %262, %cst_75 {dimension_numbers = #tpu.dot_dimension_numbers<[1], [0], [0], [1], [0, 0, 1, 1], [], []>} : vector<8x128xf32>, vector<128x384xf32>, vector<8x384xf32> -> vector<8x384xf32>
    %388 = vector.broadcast %264 : vector<1x384xf32> to vector<8x384xf32>
    %389 = arith.addf %387, %388 : vector<8x384xf32>
    %390 = vector.extract_strided_slice %386 {offsets = [0, 0], sizes = [8, 128], strides = [1, 1]} : vector<8x384xf32> to vector<8x128xf32>
    %391 = vector.extract_strided_slice %389 {offsets = [0, 0], sizes = [8, 128], strides = [1, 1]} : vector<8x384xf32> to vector<8x128xf32>
    %392 = arith.addf %390, %391 : vector<8x128xf32>
    %393 = arith.negf %392 : vector<8x128xf32>
    %394 = math.exp %393 : vector<8x128xf32>
    %cst_76 = arith.constant 1.000000e+00 : f32
    %395 = vector.broadcast %cst_76 : f32 to vector<8x128xf32>
    %396 = arith.addf %395, %394 : vector<8x128xf32>
    %397 = arith.divf %395, %396 : vector<8x128xf32>
    %398 = vector.extract_strided_slice %386 {offsets = [0, 128], sizes = [8, 128], strides = [1, 1]} : vector<8x384xf32> to vector<8x128xf32>
    %399 = vector.extract_strided_slice %389 {offsets = [0, 128], sizes = [8, 128], strides = [1, 1]} : vector<8x384xf32> to vector<8x128xf32>
    %400 = arith.addf %398, %399 : vector<8x128xf32>
    %401 = arith.negf %400 : vector<8x128xf32>
    %402 = math.exp %401 : vector<8x128xf32>
    %cst_77 = arith.constant 1.000000e+00 : f32
    %403 = vector.broadcast %cst_77 : f32 to vector<8x128xf32>
    %404 = arith.addf %403, %402 : vector<8x128xf32>
    %405 = arith.divf %403, %404 : vector<8x128xf32>
    %406 = vector.extract_strided_slice %386 {offsets = [0, 256], sizes = [8, 128], strides = [1, 1]} : vector<8x384xf32> to vector<8x128xf32>
    %407 = vector.extract_strided_slice %389 {offsets = [0, 256], sizes = [8, 128], strides = [1, 1]} : vector<8x384xf32> to vector<8x128xf32>
    %408 = arith.mulf %397, %407 : vector<8x128xf32>
    %409 = arith.addf %406, %408 : vector<8x128xf32>
    %410 = math.tanh %409 : vector<8x128xf32>
    %cst_78 = arith.constant 1.000000e+00 : f32
    %411 = vector.broadcast %cst_78 : f32 to vector<8x128xf32>
    %412 = arith.subf %411, %405 : vector<8x128xf32>
    %413 = arith.mulf %412, %410 : vector<8x128xf32>
    %414 = arith.mulf %405, %385 : vector<8x128xf32>
    %415 = arith.addf %413, %414 : vector<8x128xf32>
    %416 = vector.extract_strided_slice %260 {offsets = [40, 0], sizes = [8, 384], strides = [1, 1]} : vector<64x384xf32> to vector<8x384xf32>
    %cst_79 = arith.constant dense<0.000000e+00> : vector<8x384xf32>
    %417 = tpu.matmul %415, %262, %cst_79 {dimension_numbers = #tpu.dot_dimension_numbers<[1], [0], [0], [1], [0, 0, 1, 1], [], []>} : vector<8x128xf32>, vector<128x384xf32>, vector<8x384xf32> -> vector<8x384xf32>
    %418 = vector.broadcast %264 : vector<1x384xf32> to vector<8x384xf32>
    %419 = arith.addf %417, %418 : vector<8x384xf32>
    %420 = vector.extract_strided_slice %416 {offsets = [0, 0], sizes = [8, 128], strides = [1, 1]} : vector<8x384xf32> to vector<8x128xf32>
    %421 = vector.extract_strided_slice %419 {offsets = [0, 0], sizes = [8, 128], strides = [1, 1]} : vector<8x384xf32> to vector<8x128xf32>
    %422 = arith.addf %420, %421 : vector<8x128xf32>
    %423 = arith.negf %422 : vector<8x128xf32>
    %424 = math.exp %423 : vector<8x128xf32>
    %cst_80 = arith.constant 1.000000e+00 : f32
    %425 = vector.broadcast %cst_80 : f32 to vector<8x128xf32>
    %426 = arith.addf %425, %424 : vector<8x128xf32>
    %427 = arith.divf %425, %426 : vector<8x128xf32>
    %428 = vector.extract_strided_slice %416 {offsets = [0, 128], sizes = [8, 128], strides = [1, 1]} : vector<8x384xf32> to vector<8x128xf32>
    %429 = vector.extract_strided_slice %419 {offsets = [0, 128], sizes = [8, 128], strides = [1, 1]} : vector<8x384xf32> to vector<8x128xf32>
    %430 = arith.addf %428, %429 : vector<8x128xf32>
    %431 = arith.negf %430 : vector<8x128xf32>
    %432 = math.exp %431 : vector<8x128xf32>
    %cst_81 = arith.constant 1.000000e+00 : f32
    %433 = vector.broadcast %cst_81 : f32 to vector<8x128xf32>
    %434 = arith.addf %433, %432 : vector<8x128xf32>
    %435 = arith.divf %433, %434 : vector<8x128xf32>
    %436 = vector.extract_strided_slice %416 {offsets = [0, 256], sizes = [8, 128], strides = [1, 1]} : vector<8x384xf32> to vector<8x128xf32>
    %437 = vector.extract_strided_slice %419 {offsets = [0, 256], sizes = [8, 128], strides = [1, 1]} : vector<8x384xf32> to vector<8x128xf32>
    %438 = arith.mulf %427, %437 : vector<8x128xf32>
    %439 = arith.addf %436, %438 : vector<8x128xf32>
    %440 = math.tanh %439 : vector<8x128xf32>
    %cst_82 = arith.constant 1.000000e+00 : f32
    %441 = vector.broadcast %cst_82 : f32 to vector<8x128xf32>
    %442 = arith.subf %441, %435 : vector<8x128xf32>
    %443 = arith.mulf %442, %440 : vector<8x128xf32>
    %444 = arith.mulf %435, %415 : vector<8x128xf32>
    %445 = arith.addf %443, %444 : vector<8x128xf32>
    %446 = vector.extract_strided_slice %260 {offsets = [48, 0], sizes = [8, 384], strides = [1, 1]} : vector<64x384xf32> to vector<8x384xf32>
    %cst_83 = arith.constant dense<0.000000e+00> : vector<8x384xf32>
    %447 = tpu.matmul %445, %262, %cst_83 {dimension_numbers = #tpu.dot_dimension_numbers<[1], [0], [0], [1], [0, 0, 1, 1], [], []>} : vector<8x128xf32>, vector<128x384xf32>, vector<8x384xf32> -> vector<8x384xf32>
    %448 = vector.broadcast %264 : vector<1x384xf32> to vector<8x384xf32>
    %449 = arith.addf %447, %448 : vector<8x384xf32>
    %450 = vector.extract_strided_slice %446 {offsets = [0, 0], sizes = [8, 128], strides = [1, 1]} : vector<8x384xf32> to vector<8x128xf32>
    %451 = vector.extract_strided_slice %449 {offsets = [0, 0], sizes = [8, 128], strides = [1, 1]} : vector<8x384xf32> to vector<8x128xf32>
    %452 = arith.addf %450, %451 : vector<8x128xf32>
    %453 = arith.negf %452 : vector<8x128xf32>
    %454 = math.exp %453 : vector<8x128xf32>
    %cst_84 = arith.constant 1.000000e+00 : f32
    %455 = vector.broadcast %cst_84 : f32 to vector<8x128xf32>
    %456 = arith.addf %455, %454 : vector<8x128xf32>
    %457 = arith.divf %455, %456 : vector<8x128xf32>
    %458 = vector.extract_strided_slice %446 {offsets = [0, 128], sizes = [8, 128], strides = [1, 1]} : vector<8x384xf32> to vector<8x128xf32>
    %459 = vector.extract_strided_slice %449 {offsets = [0, 128], sizes = [8, 128], strides = [1, 1]} : vector<8x384xf32> to vector<8x128xf32>
    %460 = arith.addf %458, %459 : vector<8x128xf32>
    %461 = arith.negf %460 : vector<8x128xf32>
    %462 = math.exp %461 : vector<8x128xf32>
    %cst_85 = arith.constant 1.000000e+00 : f32
    %463 = vector.broadcast %cst_85 : f32 to vector<8x128xf32>
    %464 = arith.addf %463, %462 : vector<8x128xf32>
    %465 = arith.divf %463, %464 : vector<8x128xf32>
    %466 = vector.extract_strided_slice %446 {offsets = [0, 256], sizes = [8, 128], strides = [1, 1]} : vector<8x384xf32> to vector<8x128xf32>
    %467 = vector.extract_strided_slice %449 {offsets = [0, 256], sizes = [8, 128], strides = [1, 1]} : vector<8x384xf32> to vector<8x128xf32>
    %468 = arith.mulf %457, %467 : vector<8x128xf32>
    %469 = arith.addf %466, %468 : vector<8x128xf32>
    %470 = math.tanh %469 : vector<8x128xf32>
    %cst_86 = arith.constant 1.000000e+00 : f32
    %471 = vector.broadcast %cst_86 : f32 to vector<8x128xf32>
    %472 = arith.subf %471, %465 : vector<8x128xf32>
    %473 = arith.mulf %472, %470 : vector<8x128xf32>
    %474 = arith.mulf %465, %445 : vector<8x128xf32>
    %475 = arith.addf %473, %474 : vector<8x128xf32>
    %476 = vector.extract_strided_slice %260 {offsets = [56, 0], sizes = [8, 384], strides = [1, 1]} : vector<64x384xf32> to vector<8x384xf32>
    %cst_87 = arith.constant dense<0.000000e+00> : vector<8x384xf32>
    %477 = tpu.matmul %475, %262, %cst_87 {dimension_numbers = #tpu.dot_dimension_numbers<[1], [0], [0], [1], [0, 0, 1, 1], [], []>} : vector<8x128xf32>, vector<128x384xf32>, vector<8x384xf32> -> vector<8x384xf32>
    %478 = vector.broadcast %264 : vector<1x384xf32> to vector<8x384xf32>
    %479 = arith.addf %477, %478 : vector<8x384xf32>
    %480 = vector.extract_strided_slice %476 {offsets = [0, 0], sizes = [8, 128], strides = [1, 1]} : vector<8x384xf32> to vector<8x128xf32>
    %481 = vector.extract_strided_slice %479 {offsets = [0, 0], sizes = [8, 128], strides = [1, 1]} : vector<8x384xf32> to vector<8x128xf32>
    %482 = arith.addf %480, %481 : vector<8x128xf32>
    %483 = arith.negf %482 : vector<8x128xf32>
    %484 = math.exp %483 : vector<8x128xf32>
    %cst_88 = arith.constant 1.000000e+00 : f32
    %485 = vector.broadcast %cst_88 : f32 to vector<8x128xf32>
    %486 = arith.addf %485, %484 : vector<8x128xf32>
    %487 = arith.divf %485, %486 : vector<8x128xf32>
    %488 = vector.extract_strided_slice %476 {offsets = [0, 128], sizes = [8, 128], strides = [1, 1]} : vector<8x384xf32> to vector<8x128xf32>
    %489 = vector.extract_strided_slice %479 {offsets = [0, 128], sizes = [8, 128], strides = [1, 1]} : vector<8x384xf32> to vector<8x128xf32>
    %490 = arith.addf %488, %489 : vector<8x128xf32>
    %491 = arith.negf %490 : vector<8x128xf32>
    %492 = math.exp %491 : vector<8x128xf32>
    %cst_89 = arith.constant 1.000000e+00 : f32
    %493 = vector.broadcast %cst_89 : f32 to vector<8x128xf32>
    %494 = arith.addf %493, %492 : vector<8x128xf32>
    %495 = arith.divf %493, %494 : vector<8x128xf32>
    %496 = vector.extract_strided_slice %476 {offsets = [0, 256], sizes = [8, 128], strides = [1, 1]} : vector<8x384xf32> to vector<8x128xf32>
    %497 = vector.extract_strided_slice %479 {offsets = [0, 256], sizes = [8, 128], strides = [1, 1]} : vector<8x384xf32> to vector<8x128xf32>
    %498 = arith.mulf %487, %497 : vector<8x128xf32>
    %499 = arith.addf %496, %498 : vector<8x128xf32>
    %500 = math.tanh %499 : vector<8x128xf32>
    %cst_90 = arith.constant 1.000000e+00 : f32
    %501 = vector.broadcast %cst_90 : f32 to vector<8x128xf32>
    %502 = arith.subf %501, %495 : vector<8x128xf32>
    %503 = arith.mulf %502, %500 : vector<8x128xf32>
    %504 = arith.mulf %495, %475 : vector<8x128xf32>
    %505 = arith.addf %503, %504 : vector<8x128xf32>
    %c0_91 = arith.constant 0 : index
    %c0_92 = arith.constant 0 : index
    %506 = vector.load %arg5[%c0_91, %c0_92] : memref<128x128xf32, #tpu.memory_space<vmem>>, vector<128x128xf32>
    %cst_93 = arith.constant dense<0.000000e+00> : vector<8x128xf32>
    %507 = tpu.matmul %505, %506, %cst_93 {dimension_numbers = #tpu.dot_dimension_numbers<[1], [0], [0], [1], [0, 0, 1, 1], [], []>} : vector<8x128xf32>, vector<128x128xf32>, vector<8x128xf32> -> vector<8x128xf32>
    %c0_94 = arith.constant 0 : index
    %c0_95 = arith.constant 0 : index
    %508 = vector.load %arg6[%c0_94, %c0_95] : memref<1x128xf32, #tpu.memory_space<vmem>>, vector<1x128xf32>
    %509 = vector.broadcast %508 : vector<1x128xf32> to vector<8x128xf32>
    %510 = arith.addf %507, %509 : vector<8x128xf32>
    %c0_96 = arith.constant 0 : index
    %c0_97 = arith.constant 0 : index
    %511 = vector.load %arg7[%c0_96, %c0_97] : memref<8x128xf32, #tpu.memory_space<vmem>>, vector<8x128xf32>
    tpu.vector_store %arg7[%c0_96, %c0_97], %510 {strides = array<i32>} : memref<8x128xf32, #tpu.memory_space<vmem>>, vector<8x128xf32>,
    return
  }
}

</mosaic_0001>

<bundles_post_ra>
// kernel: gru_mlp_forward.1
= control target key start
LH: loop header
LB: loop body
LE: loop exit
PB: predicated region body
PF: predicated region fallthrough
CT: control target
= control target key end

     0   :  { %12 = vsyncpa [#allocation3], 0  ;;  %s6931_s0 = inlined_call_operand.vmem [shape: f32[64,128], index: 0, kind: input, shape index: {}]   ;;  %s6932_s1 = inlined_call_operand.hbm [shape: f32[2,128,384], index: 1, kind: input, shape index: {}]   ;;  %s6933_s2 = inlined_call_operand.hbm [shape: f32[2,128,384], index: 2, kind: input, shape index: {}]   ;;  %s6934_s3 = inlined_call_operand.vmem [shape: f32[2,1,384], index: 3, kind: input, shape index: {}]   ;;  %s6935_s4 = inlined_call_operand.vmem [shape: f32[2,1,384], index: 4, kind: input, shape index: {}]   ;;  %s6936_s5 = inlined_call_operand.vmem [shape: f32[128,128], index: 5, kind: input, shape index: {}]   ;;  %s6937_s6 = inlined_call_operand.vmem [shape: f32[1,128], index: 6, kind: input, shape index: {}]   ;;  %s6938_s7 = inlined_call_operand.vmem [shape: f32[8,128], index: 7, kind: output, shape index: {}]  }
   0x1   :  { %13 = vsyncpa [#allocation5], 0  ;;  %s5868_s24 = smov [#allocation2]   ;;  %s5820_s28 = scalar_lea.hbm %s6932_s1, 12288 }
   0x2   :  { %s21_s25 = sshll.u32 %s5868_s24, 4  ;;  %p5821_p0 = scmp.ne.s32.totalorder %s6932_s1, %s5820_s28  ;;  %s22_s25 = int_to_ptr.vmem [resolvable:$true] %s21_s25 }
   0x3   :  { %p5824_p1 = scmp.lt.u32.totalorder %s5820_s28, %s6932_s1 }
   0x5   :  { %p5826_p2 = pnand %p5824_p1, %p5821_p0 }
   0x7   :  { %5829 = shalt.err (!%p5826_p2)
}
   0x8   :  { %s5830_s10 = scalar_lea.vmem %s22_s25, 12288  ;;  %p5835_p4 = scmp.lt.s32.totalorder %s22_s25, %s22_s25 }
   0x9   :  { %p5831_p3 = scmp.ne.s32.totalorder %s22_s25, %s5830_s10  ;;  %p5836_p5 = scmp.lt.s32.totalorder %s5830_s10, %s5830_s10 }
   0xb   :  { %p5837_p6 = por %p5836_p5, %p5835_p4 }
   0xd   :  { %p5838_p7 = pnand %p5837_p6, %p5831_p3 }
   0xf   :  { %5841 = shalt.err (!%p5838_p7)
}
  0x10   :  { %s5869_s11 = smov 384   ;;  %s5870_s12 = smov 24  }
  0x11   :  { %27 = dma.hbm_to_vmem [thread:$0]  %s6932_s1, 12288, %s22_s25, [#allocation3], %s5869_s11, %s5869_s11, %s5870_s12  }
  0x12   :  { %s5871_s15 = smov [#allocation4]   ;;  %s5842_s19 = scalar_lea.hbm %s6933_s2, 12288 }
  0x13   :  { %s33_s16 = sshll.u32 %s5871_s15, 4  ;;  %p5843_p8 = scmp.ne.s32.totalorder %s6933_s2, %s5842_s19  ;;  %s34_s16 = int_to_ptr.vmem [resolvable:$true] %s33_s16 }
  0x14   :  { %p5846_p9 = scmp.lt.u32.totalorder %s5842_s19, %s6933_s2 }
  0x16   :  { %p5848_p10 = pnand %p5846_p9, %p5843_p8 }
  0x18   :  { %5851 = shalt.err (!%p5848_p10)
}
  0x19   :  { %s5852_s24 = scalar_lea.vmem %s34_s16, 12288  ;;  %p5857_p12 = scmp.lt.s32.totalorder %s34_s16, %s34_s16 }
  0x1a   :  { %p5853_p11 = scmp.ne.s32.totalorder %s34_s16, %s5852_s24  ;;  %p5858_p13 = scmp.lt.s32.totalorder %s5852_s24, %s5852_s24 }
  0x1c   :  { %p5859_p0 = por %p5858_p13, %p5857_p12 }
  0x1e   :  { %p5860_p1 = pnand %p5859_p0, %p5853_p11 }
  0x20   :  { %5863 = shalt.err (!%p5860_p1)
}
  0x21   :  { %39 = dma.hbm_to_vmem [thread:$0]  %s6933_s2, 12288, %s34_s16, [#allocation5], %s5869_s11, %s5869_s11, %s5870_s12  }
  0x22   :  { %5864 = dma.done.wait [#allocation3], 12288  }
  0x23   :  { %5865 = vsyncadd [#allocation3], 4294955008 }
  0x24   :  { %5866 = dma.done.wait [#allocation5], 12288  }
  0x25   :  { %5867 = vsyncadd [#allocation5], 4294955008  ;;  %v5872_v0 = vmov 0.0   ;;  %v63_v1 = vld [vmem:[#allocation2 + $0x8] sm:$0xff]  ;;  %v66_v2 = vld [vmem:[#allocation2 + $0x20] sm:$0xff]  ;;  %vm5874_vm0 = vmmov 0  }
  0x26   :  { %191 = vmatprep.mubr.f32.mxu0 %v5872_v0  ;;  %v62_v3 = vld [vmem:[#allocation2] sm:$0xff]  ;;  %v4509_v4 = vpack.c.bf16 %v66_v2, %v63_v1  ;;  %v65_v5 = vld [vmem:[#allocation2 + $0x18] sm:$0xff]  ;;  %v72_v7 = vld [vmem:[#allocation2 + $0x50] sm:$0xff] }
  0x27   :  { %v69_v6 = vld [vmem:[#allocation2 + $0x38] sm:$0xff]  ;;  %v4511_v8 = vpack.c.bf16 %v65_v5, %v62_v3  ;;  %v68_v10 = vld [vmem:[#allocation2 + $0x30] sm:$0xff]  ;;  %v71_v11 = vld [vmem:[#allocation2 + $0x48] sm:$0xff] }
  0x28   :  { %v4513_v9 = vpack.c.bf16 %v72_v7, %v69_v6  ;;  %v75_v12 = vld [vmem:[#allocation2 + $0x68] sm:$0xff]  ;;  %4510 = vmatprep.subr.bf16.mxu0 %v4509_v4  ;;  %v78_v13 = vld [vmem:[#allocation2 + $0x80] sm:$0xff]  ;;  %v4515_v14 = vpack.c.bf16 %v71_v11, %v68_v10  ;;  %v77_v17 = vld [vmem:[#allocation2 + $0x78] sm:$0xff] }
  0x29   :  { %4512 = vmatpush1.bf16.msra.mxu0 %v4511_v8  ;;  %v4517_v15 = vpack.c.bf16 %v78_v13, %v75_v12  ;;  %v74_v16 = vld [vmem:[#allocation2 + $0x60] sm:$0xff]  ;;  %v81_v18 = vld [vmem:[#allocation2 + $0x98] sm:$0xff]  ;;  %v84_v19 = vld [vmem:[#allocation2 + $0xb0] sm:$0xff] }
  0x2a   :  { %4514 = vmatprep.subr.bf16.mxu0 %v4513_v9  ;;  %v4519_v20 = vpack.c.bf16 %v77_v17, %v74_v16  ;;  %v80_v21 = vld [vmem:[#allocation2 + $0x90] sm:$0xff]  ;;  %v4521_v22 = vpack.c.bf16 %v84_v19, %v81_v18  ;;  %v83_v23 = vld [vmem:[#allocation2 + $0xa8] sm:$0xff]  ;;  %v90_v27 = vld [vmem:[#allocation2 + $0xe0] sm:$0xff] }
  0x2b   :  { %v64_v24 = vld [vmem:[#allocation2 + $0x10] sm:$0xff]  ;;  %v67_v25 = vld [vmem:[#allocation2 + $0x28] sm:$0xff]  ;;  %v70_v29 = vld [vmem:[#allocation2 + $0x40] sm:$0xff]  ;;  %v4523_v31 = vpack.c.bf16 %v83_v23, %v80_v21 }
  0x2c   :  { %v87_v26 = vld [vmem:[#allocation2 + $0xc8] sm:$0xff]  ;;  %v4541_v28 = vpack.c.bf16 %v67_v25, %v64_v24  ;;  %v73_v30 = vld [vmem:[#allocation2 + $0x58] sm:$0xff]  ;;  %v86_v32 = vld [vmem:[#allocation2 + $0xc0] sm:$0xff] }
  0x2d   :  { %4516 = vmatpush1.bf16.msra.mxu0 %v4515_v14  ;;  %v4545_v33 = vpack.c.bf16 %v73_v30, %v70_v29  ;;  %v4525_v34 = vpack.c.bf16 %v90_v27, %v87_v26  ;;  %v89_v35 = vld [vmem:[#allocation2 + $0xd8] sm:$0xff]  ;;  %v5943_v36 = vld [vmem:[%s6931_s0] sm:$0xff]  ;;  %v76_v37 = vld [vmem:[#allocation2 + $0x70] sm:$0xff] }
  0x2e   :  { %4518 = vmatprep.subr.bf16.mxu0 %v4517_v15  ;;  %4542 = vmatprep.subr.bf16.mxu1 %v4541_v28  ;;  %v93_v38 = vld [vmem:[#allocation2 + $0xf8] sm:$0xff]  ;;  %v96_v39 = vld [vmem:[#allocation2 + $0x110] sm:$0xff]  ;;  %v79_v40 = vld [vmem:[#allocation2 + $0x88] sm:$0xff]  ;;  %v4527_v42 = vpack.c.bf16 %v89_v35, %v86_v32 }
  0x2f   :  { %4544 = vmatpush3.bf16.msra.mxu1 %v4541_v28  ;;  %3858 = vmatprep.mubr.f32.mxu1 %v5943_v36  ;;  %v4549_v41 = vpack.c.bf16 %v79_v40, %v76_v37  ;;  %v82_v43 = vld [vmem:[#allocation2 + $0xa0] sm:$0xff]  ;;  %v85_v44 = vld [vmem:[#allocation2 + $0xb8] sm:$0xff]  ;;  %v4529_v45 = vpack.c.bf16 %v96_v39, %v93_v38  ;;  %v92_v46 = vld [vmem:[#allocation2 + $0xf0] sm:$0xff]  ;;  %v5873_v40 = vmov 0.0|0.0  }
  0x30   :  { %4546 = vmatprep.subr.bf16.mxu1 %v4545_v33  ;;  %v95_v47 = vld [vmem:[#allocation2 + $0x108] sm:$0xff]  ;;  %v102_v49 = vld [vmem:[#allocation2 + $0x140] sm:$0xff]  ;;  %v4553_v50 = vpack.c.bf16 %v85_v44, %v82_v43  ;;  %v88_v51 = vld [vmem:[#allocation2 + $0xd0] sm:$0xff] }
  0x31   :  { %4520 = vmatpush1.bf16.msra.mxu0 %v4519_v20  ;;  %v99_v48 = vld [vmem:[#allocation2 + $0x128] sm:$0xff]  ;;  %v4531_v53 = vpack.c.bf16 %v95_v47, %v92_v46  ;;  %v98_v55 = vld [vmem:[#allocation2 + $0x120] sm:$0xff]  ;;  %v101_v56 = vld [vmem:[#allocation2 + $0x138] sm:$0xff] }
  0x32   :  { %4522 = vmatprep.subr.bf16.mxu0 %v4521_v22  ;;  %v91_v52 = vld [vmem:[#allocation2 + $0xe8] sm:$0xff]  ;;  %v4533_v54 = vpack.c.bf16 %v102_v49, %v99_v48  ;;  %v105_v57 = vld [vmem:[#allocation2 + $0x158] sm:$0xff]  ;;  %v108_v58 = vld [vmem:[#allocation2 + $0x170] sm:$0xff]  ;;  %v4535_v62 = vpack.c.bf16 %v101_v56, %v98_v55 }
  0x33   :  { %4548 = vmatpush3.bf16.msra.mxu1 %v4545_v33  ;;  %v4557_v59 = vpack.c.bf16 %v91_v52, %v88_v51  ;;  %v94_v60 = vld [vmem:[#allocation2 + $0x100] sm:$0xff]  ;;  %v97_v61 = vld [vmem:[#allocation2 + $0x118] sm:$0xff]  ;;  %v4537_v63 = vpack.c.bf16 %v108_v58, %v105_v57  ;;  %v104_v1 = vld [vmem:[#allocation2 + $0x150] sm:$0xff] }
  0x34   :  { %4550 = vmatprep.subr.bf16.mxu1 %v4549_v41  ;;  %v107_v2 = vld [vmem:[#allocation2 + $0x168] sm:$0xff]  ;;  %v349_v4 = vld [vmem:[#allocation4 + $0x20] sm:$0xff]  ;;  %v4561_v5 = vpack.c.bf16 %v97_v61, %v94_v60  ;;  %v100_v6 = vld [vmem:[#allocation2 + $0x130] sm:$0xff] }
  0x35   :  { %4524 = vmatpush1.bf16.msra.mxu0 %v4523_v31  ;;  %v346_v3 = vld [vmem:[#allocation4 + $0x8] sm:$0xff]  ;;  %v4539_v8 = vpack.c.bf16 %v107_v2, %v104_v1  ;;  %v345_v10 = vld [vmem:[#allocation4] sm:$0xff]  ;;  %v348_v11 = vld [vmem:[#allocation4 + $0x18] sm:$0xff] }
  0x36   :  { %4526 = vmatprep.subr.bf16.mxu0 %v4525_v34  ;;  %v103_v7 = vld [vmem:[#allocation2 + $0x148] sm:$0xff]  ;;  %v5946_v9 = vpack.c.bf16 %v349_v4, %v346_v3  ;;  %v352_v12 = vld [vmem:[#allocation4 + $0x38] sm:$0xff]  ;;  %v355_v13 = vld [vmem:[#allocation4 + $0x50] sm:$0xff]  ;;  %v5948_v17 = vpack.c.bf16 %v348_v11, %v345_v10 }
  0x37   :  { %4552 = vmatpush3.bf16.msra.mxu1 %v4549_v41  ;;  %v4565_v14 = vpack.c.bf16 %v103_v7, %v100_v6  ;;  %v106_v15 = vld [vmem:[#allocation2 + $0x160] sm:$0xff]  ;;  %v109_v16 = vld [vmem:[#allocation2 + $0x178] sm:$0xff]  ;;  %v5951_v18 = vpack.c.bf16 %v355_v13, %v352_v12  ;;  %v351_v19 = vld [vmem:[#allocation4 + $0x30] sm:$0xff] }
  0x38   :  { %4554 = vmatprep.subr.bf16.mxu1 %v4553_v50  ;;  %v354_v20 = vld [vmem:[#allocation4 + $0x48] sm:$0xff]  ;;  %v361_v22 = vld [vmem:[#allocation4 + $0x80] sm:$0xff]  ;;  %v4569_v23 = vpack.c.bf16 %v109_v16, %v106_v15  ;;  %v360_v28 = vld [vmem:[#allocation4 + $0x78] sm:$0xff] }
  0x39   :  { %4528 = vmatpush1.bf16.msra.mxu0 %v4527_v42  ;;  %v358_v21 = vld [vmem:[#allocation4 + $0x68] sm:$0xff]  ;;  %v5959_v25 = vpack.c.bf16 %v354_v20, %v351_v19  ;;  %v357_v27 = vld [vmem:[#allocation4 + $0x60] sm:$0xff]  ;;  %v364_v29 = vld [vmem:[#allocation4 + $0x98] sm:$0xff] }
  0x3a   :  { %4530 = vmatprep.subr.bf16.mxu0 %v4529_v45  ;;  %v55_v24 = vld [vmem:[%s6931_s0 + $0x8] sm:$0xff]  ;;  %v5962_v26 = vpack.c.bf16 %v361_v22, %v358_v21  ;;  %v367_v30 = vld [vmem:[#allocation4 + $0xb0] sm:$0xff]  ;;  %v5969_v34 = vpack.c.bf16 %v360_v28, %v357_v27  ;;  %v373_v39 = vld [vmem:[#allocation4 + $0xe0] sm:$0xff] }
  0x3b   :  { %4556 = vmatpush3.bf16.msra.mxu1 %v4553_v50  ;;  %v347_v31 = vld [vmem:[#allocation4 + $0x10] sm:$0xff]  ;;  %v350_v32 = vld [vmem:[#allocation4 + $0x28] sm:$0xff]  ;;  %v5972_v35 = vpack.c.bf16 %v367_v30, %v364_v29  ;;  %v353_v42 = vld [vmem:[#allocation4 + $0x40] sm:$0xff] }
  0x3c   :  { %4558 = vmatprep.subr.bf16.mxu1 %v4557_v59  ;;  %v56_v33 = vld [vmem:[%s6931_s0 + $0x10] sm:$0xff]  ;;  %v366_v37 = vld [vmem:[#allocation4 + $0xa8] sm:$0xff]  ;;  %v5975_v41 = vpack.c.bf16 %v350_v32, %v347_v31  ;;  %v356_v43 = vld [vmem:[#allocation4 + $0x58] sm:$0xff] }
  0x3d   :  { %4532 = vmatpush1.bf16.msra.mxu0 %v4531_v53  ;;  %v370_v38 = vld [vmem:[#allocation4 + $0xc8] sm:$0xff]  ;;  %v57_v44 = vld [vmem:[%s6931_s0 + $0x18] sm:$0xff]  ;;  %v369_v47 = vld [vmem:[#allocation4 + $0xc0] sm:$0xff]  ;;  %v5988_v51 = vpack.c.bf16 %v356_v43, %v353_v42 }
  0x3e   :  { %4534 = vmatprep.subr.bf16.mxu0 %v4533_v54  ;;  %v5985_v46 = vpack.c.bf16 %v373_v39, %v370_v38  ;;  %v372_v48 = vld [vmem:[#allocation4 + $0xd8] sm:$0xff]  ;;  %v379_v50 = vld [vmem:[#allocation4 + $0x110] sm:$0xff]  ;;  %v362_v53 = vld [vmem:[#allocation4 + $0x88] sm:$0xff] }
  0x3f   :  { %4560 = vmatpush3.bf16.msra.mxu1 %v4557_v59  ;;  %v376_v49 = vld [vmem:[#allocation4 + $0xf8] sm:$0xff]  ;;  %v359_v52 = vld [vmem:[#allocation4 + $0x70] sm:$0xff]  ;;  %v58_v54 = vld [vmem:[%s6931_s0 + $0x20] sm:$0xff]  ;;  %v5996_v55 = vpack.c.bf16 %v372_v48, %v369_v47 }
  0x40   :  { %4562 = vmatprep.subr.bf16.mxu1 %v4561_v5  ;;  %v5999_v56 = vpack.c.bf16 %v379_v50, %v376_v49  ;;  %v375_v57 = vld [vmem:[#allocation4 + $0xf0] sm:$0xff]  ;;  %v378_v58 = vld [vmem:[#allocation4 + $0x108] sm:$0xff]  ;;  %v385_v60 = vld [vmem:[#allocation4 + $0x140] sm:$0xff]  ;;  %v6002_v61 = vpack.c.bf16 %v362_v53, %v359_v52 }
  0x41   :  { %4536 = vmatpush1.bf16.msra.mxu0 %v4535_v62  ;;  %v382_v59 = vld [vmem:[#allocation4 + $0x128] sm:$0xff]  ;;  %v365_v62 = vld [vmem:[#allocation4 + $0xa0] sm:$0xff]  ;;  %v6010_v2 = vpack.c.bf16 %v378_v58, %v375_v57  ;;  %v60_v3 = vld [vmem:[%s6931_s0 + $0x30] sm:$0xff] }
  0x42   :  { %4538 = vmatprep.subr.bf16.mxu0 %v4537_v63  ;;  %v368_v63 = vld [vmem:[#allocation4 + $0xb8] sm:$0xff]  ;;  %v59_v1 = vld [vmem:[%s6931_s0 + $0x28] sm:$0xff]  ;;  %v6016_v4 = vpack.c.bf16 %v385_v60, %v382_v59  ;;  %v371_v11 = vld [vmem:[#allocation4 + $0xd0] sm:$0xff] }
  0x43   :  { %4564 = vmatpush3.bf16.msra.mxu1 %v4561_v5  ;;  %v381_v5 = vld [vmem:[#allocation4 + $0x120] sm:$0xff]  ;;  %v384_v6 = vld [vmem:[#allocation4 + $0x138] sm:$0xff]  ;;  %v6019_v10 = vpack.c.bf16 %v368_v63, %v365_v62  ;;  %v374_v12 = vld [vmem:[#allocation4 + $0xe8] sm:$0xff] }
  0x44   :  { %4566 = vmatprep.subr.bf16.mxu1 %v4565_v14  ;;  %v388_v7 = vld [vmem:[#allocation4 + $0x158] sm:$0xff]  ;;  %v6024_v13 = vpack.c.bf16 %v384_v6, %v381_v5  ;;  %v387_v16 = vld [vmem:[#allocation4 + $0x150] sm:$0xff]  ;;  %v390_v19 = vld [vmem:[#allocation4 + $0x168] sm:$0xff]  ;;  %v6033_v20 = vpack.c.bf16 %v374_v12, %v371_v11 }
  0x45   :  { %4540 = vmatpush1.bf16.msra.mxu0 %v4539_v8  ;;  %v391_v8 = vld [vmem:[#allocation4 + $0x170] sm:$0xff]  ;;  %v377_v21 = vld [vmem:[#allocation4 + $0x100] sm:$0xff]  ;;  %v380_v22 = vld [vmem:[#allocation4 + $0x118] sm:$0xff] }
  0x46   :  { %4574 = vmatprep.subr.bf16.mxu0 %v5946_v9  ;;  %v6030_v15 = vpack.c.bf16 %v391_v8, %v388_v7  ;;  %v383_v27 = vld [vmem:[#allocation4 + $0x130] sm:$0xff]  ;;  %v386_v28 = vld [vmem:[#allocation4 + $0x148] sm:$0xff]  ;;  %v389_v30 = vld [vmem:[#allocation4 + $0x160] sm:$0xff] }
  0x47   :  { %4568 = vmatpush3.bf16.msra.mxu1 %v4565_v14  ;;  %v61_v14 = vld [vmem:[%s6931_s0 + $0x38] sm:$0xff]  ;;  %v6051_v29 = vpack.c.bf16 %v386_v28, %v383_v27  ;;  %v110_v38 = vld [vmem:[%s6934_s3] sm:$0x7] }
  0x48   :  { %192 = vmatmul.mubr.f32.vlgmr.msra.gmra.mrb[0].mxu0 %v5943_v36  ;;  %4570 = vmatprep.subr.bf16.mxu1 %v4569_v23  ;;  %v363_v36 = vld [vmem:[#allocation4 + $0x90] sm:$0xff]  ;;  %v392_v31 = vld [vmem:[#allocation4 + $0x178] sm:$0xff]  ;;  %v393_v59 = vld [vmem:[%s6935_s4] sm:$0x7] }
  0x49   :  { %4576 = vmatpush1.bf16.msra.mxu0 %v5948_v17  ;;  %197 = vmatprep.mubr.f32.mxu0 %v5872_v0  ;;  %v5982_v45 = vpack.c.bf16 %v366_v37, %v363_v36  ;;  %v6059_v32 = vpack.c.bf16 %v392_v31, %v389_v30 }
  0x4a   :  { %4578 = vmatprep.subr.bf16.mxu0 %v5951_v18 }
  0x4b   :  { %4572 = vmatpush3.bf16.msra.mxu1 %v4569_v23  ;;  %v6040_v23 = vpack.c.bf16 %v390_v19, %v387_v16 }
  0x4c   :  { %198 = vmatmul.mubr.f32.gmra.mrb[2].mxu0 %v55_v24  ;;  %4605 = vmatprep.subr.bf16.mxu1 %v5873_v40 }
  0x4d   :  { %4580 = vmatpush1.bf16.msra.mxu0 %v5959_v25  ;;  %203 = vmatprep.mubr.f32.mxu0 %v5872_v0 }
  0x4e   :  { %4582 = vmatprep.subr.bf16.mxu0 %v5962_v26  ;;  %3859 = vmatmul.mubr.f32.vlgmr.msra.gmra.mrb[0].mxu1 %v55_v24  ;;  %v6044_v24 = vpack.c.bf16 %v380_v22, %v377_v21 }
  0x4f   :  { %4607 = vmatpush3.bf16.msra.mxu1 %v5975_v41  ;;  %3861 = vmatprep.mubr.f32.mxu1 %v56_v33 }
  0x50   :  { %204 = vmatmul.mubr.f32.gmra.mrb[4].mxu0 %v56_v33  ;;  %4608 = vmatprep.subr.bf16.mxu1 %v5873_v40  ;;  %v112_v33 = vlaneseq }
  0x51   :  { %4584 = vmatpush1.bf16.msra.mxu0 %v5969_v34  ;;  %209 = vmatprep.mubr.f32.mxu0 %v5872_v0 }
  0x52   :  { %4586 = vmatprep.subr.bf16.mxu0 %v5972_v35  ;;  %3862 = vmatmul.mubr.f32.gmra.mrb[2].mxu1 %v57_v44  ;;  %v113_v36 = vshrl.u32 %v112_v33, 7 }
  0x53   :  { %4610 = vmatpush3.bf16.msra.mxu1 %v5988_v51  ;;  %3864 = vmatprep.mubr.f32.mxu1 %v58_v54 }
  0x54   :  { %210 = vmatmul.mubr.f32.gmra.mrb[6].mxu0 %v57_v44  ;;  %4611 = vmatprep.subr.bf16.mxu1 %v5873_v40  ;;  %v6097_v37 = vsub.s32 2, %v113_v36  ;;  %v6113_v58 = vsub.s32 0, %v113_v36 }
  0x55   :  { %4588 = vmatpush1.bf16.msra.mxu0 %v5982_v45  ;;  %215 = vmatprep.mubr.f32.mxu0 %v5872_v0 }
  0x56   :  { %4590 = vmatprep.subr.bf16.mxu0 %v5985_v46  ;;  %3865 = vmatmul.mubr.f32.gmra.mrb[4].mxu1 %v59_v1  ;;  %v123_v39 = vrot.slane %v110_v38, %v6097_v37  ;;  %v115_v5 = vrot.slane %v110_v38, %v6113_v58  ;;  %v398_v6 = vrot.slane %v393_v59, %v6113_v58 }
  0x57   :  { %4613 = vmatpush3.bf16.msra.mxu1 %v6002_v61  ;;  %3867 = vmatprep.mubr.f32.mxu1 %v60_v3 }
  0x58   :  { %216 = vmatmul.mubr.f32.gmra.mrb[8].mxu0 %v58_v54  ;;  %4614 = vmatprep.subr.bf16.mxu1 %v5873_v40  ;;  %v6128_v11 = vadd.f32 %v398_v6, %v115_v5 }
  0x59   :  { %4592 = vmatpush1.bf16.msra.mxu0 %v5996_v55  ;;  %221 = vmatprep.mubr.f32.mxu0 %v5872_v0 }
  0x5a   :  { %4594 = vmatprep.subr.bf16.mxu0 %v5999_v56  ;;  %3868 = vmatmul.mubr.f32.gmra.mrb[6].mxu1 %v61_v14 }
  0x5b   :  { %4616 = vmatpush3.bf16.msra.mxu1 %v6019_v10  ;;  %3902 = vmatprep.mubr.msk.f32.mxu1 %vm5874_vm0, %v5872_v0 }
  0x5c   :  { %222 = vmatmul.mubr.f32.gmra.mrb[10].mxu0 %v59_v1  ;;  %4617 = vmatprep.subr.bf16.mxu1 %v5873_v40  ;;  %v6120_v1 = vsub.s32 1, %v113_v36  ;;  %v6135_v36 = vrot.slane %v393_v59, %v6097_v37 }
  0x5d   :  { %4596 = vmatpush1.bf16.msra.mxu0 %v6010_v2  ;;  %227 = vmatprep.mubr.f32.mxu0 %v5872_v0 }
  0x5e   :  { %4598 = vmatprep.subr.bf16.mxu0 %v6016_v4  ;;  %v119_v7 = vrot.slane %v110_v38, %v6120_v1  ;;  %v402_v8 = vrot.slane %v393_v59, %v6120_v1 }
  0x5f   :  { %4619 = vmatpush3.bf16.msra.mxu1 %v6033_v20 }
  0x60   :  { %228 = vmatmul.mubr.f32.gmra.mrb[12].mxu0 %v60_v3  ;;  %4620 = vmatprep.subr.bf16.mxu1 %v5873_v40 }
  0x61   :  { %4600 = vmatpush1.bf16.msra.mxu0 %v6024_v13  ;;  %233 = vmatprep.mubr.f32.mxu0 %v5872_v0 }
  0x62   :  { %4602 = vmatprep.subr.bf16.mxu0 %v6030_v15 }
  0x63   :  { %4622 = vmatpush3.bf16.msra.mxu1 %v6044_v24 }
  0x64   :  { %234 = vmatmul.mubr.f32.gmra.mrb[14].mxu0 %v61_v14  ;;  %4623 = vmatprep.subr.bf16.mxu1 %v5873_v40  ;;  %v6130_v14 = vadd.f32 %v402_v8, %v119_v7 }
  0x65   :  { %4604 = vmatpush1.bf16.msra.mxu0 %v6040_v23  ;;  %474 = vmatprep.mubr.f32.mxu0 %v5872_v0 }
  0x66   :  { %4630 = vmatprep.subr.bf16.mxu0 %v5946_v9 }
  0x67   :  { %4625 = vmatpush3.bf16.msra.mxu1 %v6051_v29 }
  0x68   :  { %475 = vmatmul.mubr.f32.vlgmr.msra.gmra.mrb[0].mxu0 %v5872_v0  ;;  %4626 = vmatprep.subr.bf16.mxu1 %v5873_v40 }
  0x69   :  { %4632 = vmatpush1.bf16.msra.mxu0 %v5948_v17  ;;  %636 = vmatprep.mubr.f32.mxu0 %v5872_v0 }
  0x6a   :  { %4634 = vmatprep.subr.bf16.mxu0 %v5951_v18 }
  0x6b   :  { %4628 = vmatpush3.bf16.msra.mxu1 %v6059_v32 }
  0x6c   :  { %4661 = vmatprep.subr.bf16.mxu1 %v5873_v40 }
  0x6d   :  { %4636 = vmatpush1.bf16.msra.mxu0 %v5959_v25 }
  0x6e   :  { %4638 = vmatprep.subr.bf16.mxu0 %v5962_v26  ;;  %3903 = vmatmul.mubr.f32.vlgmr.msra.gmra.mrb[8].mxu1 %v5872_v0 }
  0x6f   :  { %4663 = vmatpush3.bf16.msra.mxu1 %v5975_v41  ;;  %3937 = vmatprep.mubr.msk.f32.mxu1 %vm5874_vm0, %v5872_v0 }
  0x70   :  { %4664 = vmatprep.subr.bf16.mxu1 %v5873_v40 }
  0x71   :  { %4640 = vmatpush1.bf16.msra.mxu0 %v5969_v34 }
  0x72   :  { %4642 = vmatprep.subr.bf16.mxu0 %v5972_v35 }
  0x73   :  { %4666 = vmatpush3.bf16.msra.mxu1 %v5988_v51 }
  0x74   :  { %4667 = vmatprep.subr.bf16.mxu1 %v5873_v40 }
  0x75   :  { %4644 = vmatpush1.bf16.msra.mxu0 %v5982_v45 }
  0x76   :  { %4646 = vmatprep.subr.bf16.mxu0 %v5985_v46 }
  0x77   :  { %4669 = vmatpush3.bf16.msra.mxu1 %v6002_v61 }
  0x78   :  { %4670 = vmatprep.subr.bf16.mxu1 %v5873_v40 }
  0x79   :  { %4648 = vmatpush1.bf16.msra.mxu0 %v5996_v55 }
  0x7a   :  { %4650 = vmatprep.subr.bf16.mxu0 %v5999_v56 }
  0x7b   :  { %4672 = vmatpush3.bf16.msra.mxu1 %v6019_v10 }
  0x7c   :  { %4673 = vmatprep.subr.bf16.mxu1 %v5873_v40 }
  0x7d   :  { %4652 = vmatpush1.bf16.msra.mxu0 %v6010_v2 }
  0x7e   :  { %4654 = vmatprep.subr.bf16.mxu0 %v6016_v4 }
  0x7f   :  { %4675 = vmatpush3.bf16.msra.mxu1 %v6033_v20 }
  0x80   :  { %4676 = vmatprep.subr.bf16.mxu1 %v5873_v40 }
  0x81   :  { %4656 = vmatpush1.bf16.msra.mxu0 %v6024_v13 }
  0x82   :  { %4658 = vmatprep.subr.bf16.mxu0 %v6030_v15 }
  0x83   :  { %4678 = vmatpush3.bf16.msra.mxu1 %v6044_v24 }
  0x84   :  { %4679 = vmatprep.subr.bf16.mxu1 %v5873_v40 }
  0x85   :  { %4660 = vmatpush1.bf16.msra.mxu0 %v6040_v23 }
  0x86   :  { %4686 = vmatprep.subr.bf16.mxu0 %v5946_v9 }
  0x87   :  { %4681 = vmatpush3.bf16.msra.mxu1 %v6051_v29 }
  0x88   :  { %4682 = vmatprep.subr.bf16.mxu1 %v5873_v40 }
  0x8b   :  { %4684 = vmatpush3.bf16.msra.mxu1 %v6059_v32 }
  0x8c   :  { %4717 = vmatprep.subr.bf16.mxu1 %v5873_v40 }
 0x121   :  { %v3860_v42 = vpop.f32.mrb[0].mxu1 }
 0x122   :  { %v6103_v43 = vadd.f32 %v3860_v42, %v123_v39  ;;  %v306_v44 = vpop.f32.mrb[1].mxu1 }
 0x125   :  { %v3863_v47 = vpop.f32.mrb[2].mxu1 }
 0x126   :  { %v6105_v48 = vadd.f32 %v3863_v47, %v123_v39  ;;  %v316_v49 = vpop.f32.mrb[3].mxu1 }
 0x127   :  { %v6107_v50 = vadd.f32 %v316_v49, %v123_v39 }
 0x129   :  { %v3866_v52 = vpop.f32.mrb[4].mxu1 }
 0x12a   :  { %v6109_v53 = vadd.f32 %v3866_v52, %v123_v39  ;;  %v326_v54 = vpop.f32.mrb[5].mxu1  ;;  %v307_v52 = vadd.f32 %v306_v44, %v123_v39 }
 0x12b   :  { %v6111_v57 = vadd.f32 %v326_v54, %v123_v39 }
 0x12d   :  { %v3869_v60 = vpop.f32.mrb[6].mxu1 }
 0x12e   :  { %v6118_v62 = vadd.f32 %v3869_v60, %v123_v39  ;;  %v336_v63 = vpop.f32.mrb[7].mxu1 }
 0x12f   :  { %v6122_v3 = vadd.f32 %v336_v63, %v123_v39 }
 0x13b   :  { %v476_v12 = vpop.f32.mrb[0].mxu0 }
 0x13c   :  { %v5558_v16 = vadd.f32 %v6128_v11, %v476_v12  ;;  %v478_v19 = vpop.f32.mrb[1].mxu0 }
 0x13d   :  { %v5560_v22 = vadd.f32 %v6130_v14, %v478_v19 }
 0x13e   :  { %v3454_v21 = vmul.f32 -1.442695, %v5558_v16 }
 0x13f   :  { %v3455_v27 = vmul.f32 -1.442695, %v5560_v22 }
 0x140   :  { %5660 = vpow2.f32 %v3454_v21 }
 0x141   :  { %v547_v28 = vpop.f32.mrb[8].mxu1  ;;  %5662 = vpow2.f32 %v3455_v27 }
 0x142   :  { %v3904_v30 = vpop.f32.mrb[9].mxu1  ;;  %v548_v47 = vadd.f32 %v547_v28, %v6135_v36 }
 0x14a   :  { %v5661_v31 = vpop.eup %5660 }
 0x14b   :  { %v555_v33 = vadd.f32 1.0, %v5661_v31  ;;  %v5663_v38 = vpop.eup %5662 }
 0x14c   :  { %v562_v42 = vadd.f32 1.0, %v5663_v38 }
 0x14d   :  { %5664 = vrcp.f32 %v555_v33 }
 0x14e   :  { %5666 = vrcp.f32 %v562_v42 }
 0x157   :  { %v5665_v49 = vpop.eup %5664 }
 0x158   :  { %v565_v54 = vmul.f32 %v5665_v49, %v548_v47  ;;  %v5667_v63 = vpop.eup %5666 }
 0x159   :  { %v568_v5 = vsub.f32 1.0, %v5667_v63  ;;  %v570_v8 = vmul.f32 0.0, %v5667_v63 }
 0x15a   :  { %v566_v60 = vadd.f32 %v565_v54, %v307_v52 }
 0x15c   :  { %5668 = vtanh.f32 %v566_v60 }
 0x166   :  { %v5669_v6 = vpop.eup %5668 }
 0x167   :  { %v569_v7 = vmul.f32 %v5669_v6, %v568_v5 }
 0x169   :  { %v6138_v12 = vadd.f32 %v570_v8, %v569_v7 }
 0x16b   :  { %637 = vmatmul.mubr.f32.vlgmr.msra.gmra.mrb[2].mxu0 %v6138_v12  ;;  %3938 = vmatmul.mubr.f32.vlgmr.msra.gmra.mrb[10].mxu1 %v6138_v12 }
 0x16c   :  { %4688 = vmatpush1.bf16.msra.mxu0 %v5948_v17  ;;  %4719 = vmatpush3.bf16.msra.mxu1 %v5975_v41 }
 0x16d   :  { %4690 = vmatprep.subr.bf16.mxu0 %v5951_v18  ;;  %4720 = vmatprep.subr.bf16.mxu1 %v5873_v40 }
 0x16e   :  { %798 = vmatprep.mubr.f32.mxu0 %v5872_v0  ;;  %3972 = vmatprep.mubr.msk.f32.mxu1 %vm5874_vm0, %v5872_v0 }
 0x170   :  { %4692 = vmatpush1.bf16.msra.mxu0 %v5959_v25  ;;  %4722 = vmatpush3.bf16.msra.mxu1 %v5988_v51 }
 0x171   :  { %4694 = vmatprep.subr.bf16.mxu0 %v5962_v26  ;;  %4723 = vmatprep.subr.bf16.mxu1 %v5873_v40 }
 0x174   :  { %4696 = vmatpush1.bf16.msra.mxu0 %v5969_v34  ;;  %4725 = vmatpush3.bf16.msra.mxu1 %v6002_v61 }
 0x175   :  { %4698 = vmatprep.subr.bf16.mxu0 %v5972_v35  ;;  %4726 = vmatprep.subr.bf16.mxu1 %v5873_v40 }
 0x178   :  { %4700 = vmatpush1.bf16.msra.mxu0 %v5982_v45  ;;  %4728 = vmatpush3.bf16.msra.mxu1 %v6019_v10 }
 0x179   :  { %4702 = vmatprep.subr.bf16.mxu0 %v5985_v46  ;;  %4729 = vmatprep.subr.bf16.mxu1 %v5873_v40 }
 0x17c   :  { %4704 = vmatpush1.bf16.msra.mxu0 %v5996_v55  ;;  %4731 = vmatpush3.bf16.msra.mxu1 %v6033_v20 }
 0x17d   :  { %4706 = vmatprep.subr.bf16.mxu0 %v5999_v56  ;;  %4732 = vmatprep.subr.bf16.mxu1 %v5873_v40 }
 0x180   :  { %4708 = vmatpush1.bf16.msra.mxu0 %v6010_v2  ;;  %4734 = vmatpush3.bf16.msra.mxu1 %v6044_v24 }
 0x181   :  { %4710 = vmatprep.subr.bf16.mxu0 %v6016_v4  ;;  %4735 = vmatprep.subr.bf16.mxu1 %v5873_v40 }
 0x184   :  { %4712 = vmatpush1.bf16.msra.mxu0 %v6024_v13  ;;  %4737 = vmatpush3.bf16.msra.mxu1 %v6051_v29 }
 0x185   :  { %4714 = vmatprep.subr.bf16.mxu0 %v6030_v15  ;;  %4738 = vmatprep.subr.bf16.mxu1 %v5873_v40 }
 0x188   :  { %4716 = vmatpush1.bf16.msra.mxu0 %v6040_v23  ;;  %4740 = vmatpush3.bf16.msra.mxu1 %v6059_v32 }
 0x189   :  { %4742 = vmatprep.subr.bf16.mxu0 %v5946_v9  ;;  %4773 = vmatprep.subr.bf16.mxu1 %v5873_v40 }
 0x23e   :  { %v638_v39 = vpop.f32.mrb[2].mxu0  ;;  %v709_v44 = vpop.f32.mrb[10].mxu1 }
 0x23f   :  { %v5562_v59 = vadd.f32 %v6128_v11, %v638_v39  ;;  %v640_v16 = vpop.f32.mrb[3].mxu0  ;;  %v3939_v19 = vpop.f32.mrb[11].mxu1  ;;  %v710_v38 = vadd.f32 %v709_v44, %v6135_v36 }
 0x240   :  { %v5564_v22 = vadd.f32 %v6130_v14, %v640_v16 }
 0x241   :  { %v3456_v21 = vmul.f32 -1.442695, %v5562_v59 }
 0x242   :  { %v3457_v27 = vmul.f32 -1.442695, %v5564_v22 }
 0x243   :  { %5670 = vpow2.f32 %v3456_v21 }
 0x244   :  { %5672 = vpow2.f32 %v3457_v27 }
 0x24d   :  { %v5671_v28 = vpop.eup %5670 }
 0x24e   :  { %v717_v30 = vadd.f32 1.0, %v5671_v28  ;;  %v5673_v31 = vpop.eup %5672 }
 0x24f   :  { %v724_v33 = vadd.f32 1.0, %v5673_v31 }
 0x250   :  { %5674 = vrcp.f32 %v717_v30 }
 0x251   :  { %5676 = vrcp.f32 %v724_v33 }
 0x25a   :  { %v5675_v42 = vpop.eup %5674 }
 0x25b   :  { %v727_v47 = vmul.f32 %v5675_v42, %v710_v38  ;;  %v5677_v52 = vpop.eup %5676 }
 0x25c   :  { %v730_v54 = vsub.f32 1.0, %v5677_v52  ;;  %v732_v5 = vmul.f32 %v5677_v52, %v6138_v12 }
 0x25d   :  { %v728_v49 = vadd.f32 %v727_v47, %v6103_v43 }
 0x25f   :  { %5678 = vtanh.f32 %v728_v49 }
 0x269   :  { %v5679_v60 = vpop.eup %5678 }
 0x26a   :  { %v731_v63 = vmul.f32 %v5679_v60, %v730_v54 }
 0x26c   :  { %v6182_v6 = vadd.f32 %v732_v5, %v731_v63 }
 0x26e   :  { %799 = vmatmul.mubr.f32.vlgmr.msra.gmra.mrb[4].mxu0 %v6182_v6  ;;  %3973 = vmatmul.mubr.f32.vlgmr.msra.gmra.mrb[12].mxu1 %v6182_v6 }
 0x26f   :  { %4744 = vmatpush1.bf16.msra.mxu0 %v5948_v17  ;;  %4775 = vmatpush3.bf16.msra.mxu1 %v5975_v41 }
 0x270   :  { %4746 = vmatprep.subr.bf16.mxu0 %v5951_v18  ;;  %4776 = vmatprep.subr.bf16.mxu1 %v5873_v40 }
 0x271   :  { %960 = vmatprep.mubr.f32.mxu0 %v5872_v0  ;;  %4007 = vmatprep.mubr.msk.f32.mxu1 %vm5874_vm0, %v5872_v0 }
 0x273   :  { %4748 = vmatpush1.bf16.msra.mxu0 %v5959_v25  ;;  %4778 = vmatpush3.bf16.msra.mxu1 %v5988_v51 }
 0x274   :  { %4750 = vmatprep.subr.bf16.mxu0 %v5962_v26  ;;  %4779 = vmatprep.subr.bf16.mxu1 %v5873_v40 }
 0x277   :  { %4752 = vmatpush1.bf16.msra.mxu0 %v5969_v34  ;;  %4781 = vmatpush3.bf16.msra.mxu1 %v6002_v61 }
 0x278   :  { %4754 = vmatprep.subr.bf16.mxu0 %v5972_v35  ;;  %4782 = vmatprep.subr.bf16.mxu1 %v5873_v40 }
 0x27b   :  { %4756 = vmatpush1.bf16.msra.mxu0 %v5982_v45  ;;  %4784 = vmatpush3.bf16.msra.mxu1 %v6019_v10 }
 0x27c   :  { %4758 = vmatprep.subr.bf16.mxu0 %v5985_v46  ;;  %4785 = vmatprep.subr.bf16.mxu1 %v5873_v40 }
 0x27f   :  { %4760 = vmatpush1.bf16.msra.mxu0 %v5996_v55  ;;  %4787 = vmatpush3.bf16.msra.mxu1 %v6033_v20 }
 0x280   :  { %4762 = vmatprep.subr.bf16.mxu0 %v5999_v56  ;;  %4788 = vmatprep.subr.bf16.mxu1 %v5873_v40 }
 0x283   :  { %4764 = vmatpush1.bf16.msra.mxu0 %v6010_v2  ;;  %4790 = vmatpush3.bf16.msra.mxu1 %v6044_v24 }
 0x284   :  { %4766 = vmatprep.subr.bf16.mxu0 %v6016_v4  ;;  %4791 = vmatprep.subr.bf16.mxu1 %v5873_v40 }
 0x287   :  { %4768 = vmatpush1.bf16.msra.mxu0 %v6024_v13  ;;  %4793 = vmatpush3.bf16.msra.mxu1 %v6051_v29 }
 0x288   :  { %4770 = vmatprep.subr.bf16.mxu0 %v6030_v15  ;;  %4794 = vmatprep.subr.bf16.mxu1 %v5873_v40 }
 0x28b   :  { %4772 = vmatpush1.bf16.msra.mxu0 %v6040_v23  ;;  %4796 = vmatpush3.bf16.msra.mxu1 %v6059_v32 }
 0x28c   :  { %4798 = vmatprep.subr.bf16.mxu0 %v5946_v9  ;;  %4829 = vmatprep.subr.bf16.mxu1 %v5873_v40 }
 0x341   :  { %v800_v43 = vpop.f32.mrb[4].mxu0  ;;  %v871_v7 = vpop.f32.mrb[12].mxu1 }
 0x342   :  { %v5566_v8 = vadd.f32 %v6128_v11, %v800_v43  ;;  %v802_v39 = vpop.f32.mrb[5].mxu0  ;;  %v3974_v44 = vpop.f32.mrb[13].mxu1  ;;  %v872_v30 = vadd.f32 %v871_v7, %v6135_v36 }
 0x343   :  { %v5568_v16 = vadd.f32 %v6130_v14, %v802_v39 }
 0x344   :  { %v3458_v59 = vmul.f32 -1.442695, %v5566_v8 }
 0x345   :  { %v3459_v19 = vmul.f32 -1.442695, %v5568_v16 }
 0x346   :  { %5680 = vpow2.f32 %v3458_v59 }
 0x347   :  { %5682 = vpow2.f32 %v3459_v19 }
 0x350   :  { %v5681_v21 = vpop.eup %5680 }
 0x351   :  { %v879_v22 = vadd.f32 1.0, %v5681_v21  ;;  %v5683_v27 = vpop.eup %5682 }
 0x352   :  { %v886_v28 = vadd.f32 1.0, %v5683_v27 }
 0x353   :  { %5684 = vrcp.f32 %v879_v22 }
 0x354   :  { %5686 = vrcp.f32 %v886_v28 }
 0x35d   :  { %v5685_v31 = vpop.eup %5684 }
 0x35e   :  { %v889_v33 = vmul.f32 %v5685_v31, %v872_v30  ;;  %v5687_v42 = vpop.eup %5686 }
 0x35f   :  { %v892_v47 = vsub.f32 1.0, %v5687_v42  ;;  %v894_v54 = vmul.f32 %v5687_v42, %v6182_v6 }
 0x360   :  { %v890_v38 = vadd.f32 %v889_v33, %v6107_v50 }
 0x362   :  { %5688 = vtanh.f32 %v890_v38 }
 0x36c   :  { %v5689_v49 = vpop.eup %5688 }
 0x36d   :  { %v893_v52 = vmul.f32 %v5689_v49, %v892_v47 }
 0x36f   :  { %v6226_v60 = vadd.f32 %v894_v54, %v893_v52 }
 0x371   :  { %961 = vmatmul.mubr.f32.vlgmr.msra.gmra.mrb[6].mxu0 %v6226_v60  ;;  %4008 = vmatmul.mubr.f32.vlgmr.msra.gmra.mrb[14].mxu1 %v6226_v60 }
 0x372   :  { %4800 = vmatpush1.bf16.msra.mxu0 %v5948_v17  ;;  %4831 = vmatpush3.bf16.msra.mxu1 %v5975_v41 }
 0x373   :  { %4802 = vmatprep.subr.bf16.mxu0 %v5951_v18  ;;  %4832 = vmatprep.subr.bf16.mxu1 %v5873_v40 }
 0x374   :  { %1122 = vmatprep.mubr.f32.mxu0 %v5872_v0  ;;  %4042 = vmatprep.mubr.msk.f32.mxu1 %vm5874_vm0, %v5872_v0 }
 0x376   :  { %4804 = vmatpush1.bf16.msra.mxu0 %v5959_v25  ;;  %4834 = vmatpush3.bf16.msra.mxu1 %v5988_v51 }
 0x377   :  { %4806 = vmatprep.subr.bf16.mxu0 %v5962_v26  ;;  %4835 = vmatprep.subr.bf16.mxu1 %v5873_v40 }
 0x37a   :  { %4808 = vmatpush1.bf16.msra.mxu0 %v5969_v34  ;;  %4837 = vmatpush3.bf16.msra.mxu1 %v6002_v61 }
 0x37b   :  { %4810 = vmatprep.subr.bf16.mxu0 %v5972_v35  ;;  %4838 = vmatprep.subr.bf16.mxu1 %v5873_v40 }
 0x37e   :  { %4812 = vmatpush1.bf16.msra.mxu0 %v5982_v45  ;;  %4840 = vmatpush3.bf16.msra.mxu1 %v6019_v10 }
 0x37f   :  { %4814 = vmatprep.subr.bf16.mxu0 %v5985_v46  ;;  %4841 = vmatprep.subr.bf16.mxu1 %v5873_v40 }
 0x382   :  { %4816 = vmatpush1.bf16.msra.mxu0 %v5996_v55  ;;  %4843 = vmatpush3.bf16.msra.mxu1 %v6033_v20 }
 0x383   :  { %4818 = vmatprep.subr.bf16.mxu0 %v5999_v56  ;;  %4844 = vmatprep.subr.bf16.mxu1 %v5873_v40 }
 0x386   :  { %4820 = vmatpush1.bf16.msra.mxu0 %v6010_v2  ;;  %4846 = vmatpush3.bf16.msra.mxu1 %v6044_v24 }
 0x387   :  { %4822 = vmatprep.subr.bf16.mxu0 %v6016_v4  ;;  %4847 = vmatprep.subr.bf16.mxu1 %v5873_v40 }
 0x38a   :  { %4824 = vmatpush1.bf16.msra.mxu0 %v6024_v13  ;;  %4849 = vmatpush3.bf16.msra.mxu1 %v6051_v29 }
 0x38b   :  { %4826 = vmatprep.subr.bf16.mxu0 %v6030_v15  ;;  %4850 = vmatprep.subr.bf16.mxu1 %v5873_v40 }
 0x38e   :  { %4828 = vmatpush1.bf16.msra.mxu0 %v6040_v23  ;;  %4852 = vmatpush3.bf16.msra.mxu1 %v6059_v32 }
 0x38f   :  { %4854 = vmatprep.subr.bf16.mxu0 %v5946_v9  ;;  %4885 = vmatprep.subr.bf16.mxu1 %v5873_v40 }
 0x444   :  { %v962_v50 = vpop.f32.mrb[6].mxu0  ;;  %v1033_v63 = vpop.f32.mrb[14].mxu1 }
 0x445   :  { %v5570_v5 = vadd.f32 %v6128_v11, %v962_v50  ;;  %v964_v43 = vpop.f32.mrb[7].mxu0  ;;  %v4009_v7 = vpop.f32.mrb[15].mxu1  ;;  %v1034_v22 = vadd.f32 %v1033_v63, %v6135_v36 }
 0x446   :  { %v5572_v39 = vadd.f32 %v6130_v14, %v964_v43 }
 0x447   :  { %v3460_v8 = vmul.f32 -1.442695, %v5570_v5 }
 0x448   :  { %v3461_v44 = vmul.f32 -1.442695, %v5572_v39 }
 0x449   :  { %5690 = vpow2.f32 %v3460_v8 }
 0x44a   :  { %5692 = vpow2.f32 %v3461_v44 }
 0x453   :  { %v5691_v59 = vpop.eup %5690 }
 0x454   :  { %v1041_v16 = vadd.f32 1.0, %v5691_v59  ;;  %v5693_v19 = vpop.eup %5692 }
 0x455   :  { %v1048_v21 = vadd.f32 1.0, %v5693_v19 }
 0x456   :  { %5694 = vrcp.f32 %v1041_v16 }
 0x457   :  { %5696 = vrcp.f32 %v1048_v21 }
 0x460   :  { %v5695_v27 = vpop.eup %5694 }
 0x461   :  { %v1051_v28 = vmul.f32 %v5695_v27, %v1034_v22  ;;  %v5697_v31 = vpop.eup %5696 }
 0x462   :  { %v1054_v33 = vsub.f32 1.0, %v5697_v31  ;;  %v1056_v47 = vmul.f32 %v5697_v31, %v6226_v60 }
 0x463   :  { %v1052_v30 = vadd.f32 %v1051_v28, %v6105_v48 }
 0x465   :  { %5698 = vtanh.f32 %v1052_v30 }
 0x46f   :  { %v5699_v38 = vpop.eup %5698 }
 0x470   :  { %v1055_v42 = vmul.f32 %v5699_v38, %v1054_v33 }
 0x472   :  { %v6270_v49 = vadd.f32 %v1056_v47, %v1055_v42 }
 0x474   :  { %1123 = vmatmul.mubr.f32.vlgmr.msra.gmra.mrb[8].mxu0 %v6270_v49  ;;  %4043 = vmatmul.mubr.f32.vlgmr.msra.gmra.mrb[16].mxu1 %v6270_v49 }
 0x475   :  { %4856 = vmatpush1.bf16.msra.mxu0 %v5948_v17  ;;  %4887 = vmatpush3.bf16.msra.mxu1 %v5975_v41 }
 0x476   :  { %4858 = vmatprep.subr.bf16.mxu0 %v5951_v18  ;;  %4888 = vmatprep.subr.bf16.mxu1 %v5873_v40 }
 0x477   :  { %1284 = vmatprep.mubr.f32.mxu0 %v5872_v0  ;;  %4077 = vmatprep.mubr.msk.f32.mxu1 %vm5874_vm0, %v5872_v0 }
 0x479   :  { %4860 = vmatpush1.bf16.msra.mxu0 %v5959_v25  ;;  %4890 = vmatpush3.bf16.msra.mxu1 %v5988_v51 }
 0x47a   :  { %4862 = vmatprep.subr.bf16.mxu0 %v5962_v26  ;;  %4891 = vmatprep.subr.bf16.mxu1 %v5873_v40 }
 0x47d   :  { %4864 = vmatpush1.bf16.msra.mxu0 %v5969_v34  ;;  %4893 = vmatpush3.bf16.msra.mxu1 %v6002_v61 }
 0x47e   :  { %4866 = vmatprep.subr.bf16.mxu0 %v5972_v35  ;;  %4894 = vmatprep.subr.bf16.mxu1 %v5873_v40 }
 0x481   :  { %4868 = vmatpush1.bf16.msra.mxu0 %v5982_v45  ;;  %4896 = vmatpush3.bf16.msra.mxu1 %v6019_v10 }
 0x482   :  { %4870 = vmatprep.subr.bf16.mxu0 %v5985_v46  ;;  %4897 = vmatprep.subr.bf16.mxu1 %v5873_v40 }
 0x485   :  { %4872 = vmatpush1.bf16.msra.mxu0 %v5996_v55  ;;  %4899 = vmatpush3.bf16.msra.mxu1 %v6033_v20 }
 0x486   :  { %4874 = vmatprep.subr.bf16.mxu0 %v5999_v56  ;;  %4900 = vmatprep.subr.bf16.mxu1 %v5873_v40 }
 0x489   :  { %4876 = vmatpush1.bf16.msra.mxu0 %v6010_v2  ;;  %4902 = vmatpush3.bf16.msra.mxu1 %v6044_v24 }
 0x48a   :  { %4878 = vmatprep.subr.bf16.mxu0 %v6016_v4  ;;  %4903 = vmatprep.subr.bf16.mxu1 %v5873_v40 }
 0x48d   :  { %4880 = vmatpush1.bf16.msra.mxu0 %v6024_v13  ;;  %4905 = vmatpush3.bf16.msra.mxu1 %v6051_v29 }
 0x48e   :  { %4882 = vmatprep.subr.bf16.mxu0 %v6030_v15  ;;  %4906 = vmatprep.subr.bf16.mxu1 %v5873_v40 }
 0x491   :  { %4884 = vmatpush1.bf16.msra.mxu0 %v6040_v23  ;;  %4908 = vmatpush3.bf16.msra.mxu1 %v6059_v32 }
 0x492   :  { %4910 = vmatprep.subr.bf16.mxu0 %v5946_v9  ;;  %4941 = vmatprep.subr.bf16.mxu1 %v5873_v40 }
 0x547   :  { %v1124_v48 = vpop.f32.mrb[8].mxu0  ;;  %v1195_v52 = vpop.f32.mrb[16].mxu1 }
 0x548   :  { %v5574_v54 = vadd.f32 %v6128_v11, %v1124_v48  ;;  %v1126_v50 = vpop.f32.mrb[9].mxu0  ;;  %v4044_v63 = vpop.f32.mrb[17].mxu1  ;;  %v1196_v16 = vadd.f32 %v1195_v52, %v6135_v36 }
 0x549   :  { %v5576_v43 = vadd.f32 %v6130_v14, %v1126_v50 }
 0x54a   :  { %v3462_v5 = vmul.f32 -1.442695, %v5574_v54 }
 0x54b   :  { %v3463_v7 = vmul.f32 -1.442695, %v5576_v43 }
 0x54c   :  { %5700 = vpow2.f32 %v3462_v5 }
 0x54d   :  { %5702 = vpow2.f32 %v3463_v7 }
 0x556   :  { %v5701_v8 = vpop.eup %5700 }
 0x557   :  { %v1203_v39 = vadd.f32 1.0, %v5701_v8  ;;  %v5703_v44 = vpop.eup %5702 }
 0x558   :  { %v1210_v59 = vadd.f32 1.0, %v5703_v44 }
 0x559   :  { %5704 = vrcp.f32 %v1203_v39 }
 0x55a   :  { %5706 = vrcp.f32 %v1210_v59 }
 0x563   :  { %v5705_v19 = vpop.eup %5704 }
 0x564   :  { %v1213_v21 = vmul.f32 %v5705_v19, %v1196_v16  ;;  %v5707_v27 = vpop.eup %5706 }
 0x565   :  { %v1216_v28 = vsub.f32 1.0, %v5707_v27  ;;  %v1218_v33 = vmul.f32 %v5707_v27, %v6270_v49 }
 0x566   :  { %v1214_v22 = vadd.f32 %v1213_v21, %v6111_v57 }
 0x568   :  { %5708 = vtanh.f32 %v1214_v22 }
 0x572   :  { %v5709_v30 = vpop.eup %5708 }
 0x573   :  { %v1217_v31 = vmul.f32 %v5709_v30, %v1216_v28  ;;  %v1707_v30 = vld [vmem:[#allocation2 + $0x180] sm:$0xff] }
 0x575   :  { %v6314_v38 = vadd.f32 %v1218_v33, %v1217_v31  ;;  %v1710_v31 = vld [vmem:[#allocation2 + $0x198] sm:$0xff] }
 0x577   :  { %1285 = vmatmul.mubr.f32.vlgmr.msra.gmra.mrb[10].mxu0 %v6314_v38  ;;  %4078 = vmatmul.mubr.f32.vlgmr.msra.gmra.mrb[18].mxu1 %v6314_v38 }
 0x578   :  { %4912 = vmatpush1.bf16.msra.mxu0 %v5948_v17  ;;  %4943 = vmatpush3.bf16.msra.mxu1 %v5975_v41 }
 0x579   :  { %4914 = vmatprep.subr.bf16.mxu0 %v5951_v18  ;;  %4944 = vmatprep.subr.bf16.mxu1 %v5873_v40 }
 0x57a   :  { %1446 = vmatprep.mubr.f32.mxu0 %v5872_v0  ;;  %4112 = vmatprep.mubr.msk.f32.mxu1 %vm5874_vm0, %v5872_v0 }
 0x57c   :  { %4916 = vmatpush1.bf16.msra.mxu0 %v5959_v25  ;;  %4946 = vmatpush3.bf16.msra.mxu1 %v5988_v51 }
 0x57d   :  { %4918 = vmatprep.subr.bf16.mxu0 %v5962_v26  ;;  %4947 = vmatprep.subr.bf16.mxu1 %v5873_v40 }
 0x580   :  { %4920 = vmatpush1.bf16.msra.mxu0 %v5969_v34  ;;  %4949 = vmatpush3.bf16.msra.mxu1 %v6002_v61 }
 0x581   :  { %4922 = vmatprep.subr.bf16.mxu0 %v5972_v35  ;;  %4950 = vmatprep.subr.bf16.mxu1 %v5873_v40 }
 0x584   :  { %4924 = vmatpush1.bf16.msra.mxu0 %v5982_v45  ;;  %4952 = vmatpush3.bf16.msra.mxu1 %v6019_v10 }
 0x585   :  { %4926 = vmatprep.subr.bf16.mxu0 %v5985_v46  ;;  %4953 = vmatprep.subr.bf16.mxu1 %v5873_v40 }
 0x588   :  { %4928 = vmatpush1.bf16.msra.mxu0 %v5996_v55  ;;  %4955 = vmatpush3.bf16.msra.mxu1 %v6033_v20 }
 0x589   :  { %4930 = vmatprep.subr.bf16.mxu0 %v5999_v56  ;;  %4956 = vmatprep.subr.bf16.mxu1 %v5873_v40 }
 0x58c   :  { %4932 = vmatpush1.bf16.msra.mxu0 %v6010_v2  ;;  %4958 = vmatpush3.bf16.msra.mxu1 %v6044_v24 }
 0x58d   :  { %4934 = vmatprep.subr.bf16.mxu0 %v6016_v4  ;;  %4959 = vmatprep.subr.bf16.mxu1 %v5873_v40 }
 0x590   :  { %4936 = vmatpush1.bf16.msra.mxu0 %v6024_v13  ;;  %4961 = vmatpush3.bf16.msra.mxu1 %v6051_v29 }
 0x591   :  { %4938 = vmatprep.subr.bf16.mxu0 %v6030_v15  ;;  %4962 = vmatprep.subr.bf16.mxu1 %v5873_v40 }
 0x594   :  { %4940 = vmatpush1.bf16.msra.mxu0 %v6040_v23  ;;  %4964 = vmatpush3.bf16.msra.mxu1 %v6059_v32 }
 0x595   :  { %4966 = vmatprep.subr.bf16.mxu0 %v5946_v9  ;;  %4997 = vmatprep.subr.bf16.mxu1 %v5873_v40 }
 0x64a   :  { %v1286_v57 = vpop.f32.mrb[10].mxu0  ;;  %v1357_v42 = vpop.f32.mrb[18].mxu1 }
 0x64b   :  { %v5578_v47 = vadd.f32 %v6128_v11, %v1286_v57  ;;  %v1288_v48 = vpop.f32.mrb[11].mxu0  ;;  %v4079_v52 = vpop.f32.mrb[19].mxu1  ;;  %v1358_v9 = vadd.f32 %v1357_v42, %v6135_v36  ;;  %v1714_v57 = vld [vmem:[#allocation2 + $0x1b8] sm:$0xff]  ;;  %v1717_v42 = vld [vmem:[#allocation2 + $0x1d0] sm:$0xff] }
 0x64c   :  { %v5580_v50 = vadd.f32 %v6130_v14, %v1288_v48  ;;  %v1715_v52 = vld [vmem:[#allocation2 + $0x1c0] sm:$0xff] }
 0x64d   :  { %v3464_v54 = vmul.f32 -1.442695, %v5578_v47 }
 0x64e   :  { %v3465_v63 = vmul.f32 -1.442695, %v5580_v50  ;;  %v5023_v50 = vpack.c.bf16 %v1710_v31, %v1707_v30  ;;  %v1737_v30 = vld [vmem:[#allocation2 + $0x270] sm:$0xff]  ;;  %v1740_v31 = vld [vmem:[#allocation2 + $0x288] sm:$0xff] }
 0x64f   :  { %5710 = vpow2.f32 %v3464_v54  ;;  %v1718_v54 = vld [vmem:[#allocation2 + $0x1d8] sm:$0xff] }
 0x650   :  { %5712 = vpow2.f32 %v3465_v63 }
 0x659   :  { %v5711_v5 = vpop.eup %5710 }
 0x65a   :  { %v1365_v43 = vadd.f32 1.0, %v5711_v5  ;;  %v5713_v7 = vpop.eup %5712  ;;  %v5025_v5 = vpack.c.bf16 %v1717_v42, %v1714_v57  ;;  %v1747_v57 = vld [vmem:[#allocation2 + $0x2c0] sm:$0xff]  ;;  %v1745_v42 = vld [vmem:[#allocation2 + $0x2b0] sm:$0xff] }
 0x65b   :  { %v1372_v8 = vadd.f32 1.0, %v5713_v7  ;;  %v1716_v7 = vld [vmem:[#allocation2 + $0x1c8] sm:$0xff] }
 0x65c   :  { %5714 = vrcp.f32 %v1365_v43  ;;  %v1713_v43 = vld [vmem:[#allocation2 + $0x1b0] sm:$0xff] }
 0x65d   :  { %5716 = vrcp.f32 %v1372_v8  ;;  %v5057_v8 = vpack.c.bf16 %v1718_v54, %v1715_v52 }
 0x666   :  { %v5715_v39 = vpop.eup %5714 }
 0x667   :  { %v1375_v44 = vmul.f32 %v5715_v39, %v1358_v9  ;;  %v5717_v16 = vpop.eup %5716  ;;  %v1723_v9 = vld [vmem:[#allocation2 + $0x200] sm:$0xff]  ;;  %v1721_v39 = vld [vmem:[#allocation2 + $0x1f0] sm:$0xff] }
 0x668   :  { %v1378_v19 = vsub.f32 1.0, %v5717_v16  ;;  %v1380_v27 = vmul.f32 %v5717_v16, %v6314_v38 }
 0x669   :  { %v1376_v59 = vadd.f32 %v1375_v44, %v6109_v53  ;;  %v1724_v44 = vld [vmem:[#allocation2 + $0x208] sm:$0xff] }
 0x66b   :  { %5718 = vtanh.f32 %v1376_v59  ;;  %v5027_v59 = vpack.c.bf16 %v1716_v7, %v1713_v43  ;;  %v1750_v43 = vld [vmem:[#allocation2 + $0x2d8] sm:$0xff]  ;;  %v1753_v7 = vld [vmem:[#allocation2 + $0x2f0] sm:$0xff] }
 0x675   :  { %v5719_v21 = vpop.eup %5718 }
 0x676   :  { %v1379_v22 = vmul.f32 %v5719_v21, %v1378_v19  ;;  %v5061_v19 = vpack.c.bf16 %v1724_v44, %v1721_v39  ;;  %v1719_v21 = vld [vmem:[#allocation2 + $0x1e0] sm:$0xff]  ;;  %v5049_v39 = vpack.c.bf16 %v1753_v7, %v1750_v43  ;;  %v2035_v7 = vld [vmem:[#allocation4 + $0x2d8] sm:$0xff] }
 0x678   :  { %v6358_v28 = vadd.f32 %v1380_v27, %v1379_v22  ;;  %v1722_v22 = vld [vmem:[#allocation2 + $0x1f8] sm:$0xff] }
 0x679   :  { %v1726_v27 = vld [vmem:[#allocation2 + $0x218] sm:$0xff] }
 0x67a   :  { %1447 = vmatmul.mubr.f32.vlgmr.msra.gmra.mrb[12].mxu0 %v6358_v28  ;;  %4113 = vmatmul.mubr.f32.vlgmr.msra.gmra.mrb[20].mxu1 %v6358_v28 }
 0x67b   :  { %4968 = vmatpush1.bf16.msra.mxu0 %v5948_v17  ;;  %4999 = vmatpush3.bf16.msra.mxu1 %v5975_v41  ;;  %v1708_v17 = vld [vmem:[#allocation2 + $0x188] sm:$0xff] }
 0x67c   :  { %4970 = vmatprep.subr.bf16.mxu0 %v5951_v18  ;;  %5000 = vmatprep.subr.bf16.mxu1 %v5873_v40  ;;  %v1711_v18 = vld [vmem:[#allocation2 + $0x1a0] sm:$0xff] }
 0x67d   :  { %1608 = vmatprep.mubr.f32.mxu0 %v5872_v0  ;;  %4147 = vmatprep.mubr.msk.f32.mxu1 %vm5874_vm0, %v5872_v0 }
 0x67f   :  { %4972 = vmatpush1.bf16.msra.mxu0 %v5959_v25  ;;  %5002 = vmatpush3.bf16.msra.mxu1 %v5988_v51  ;;  %v1709_v25 = vld [vmem:[#allocation2 + $0x190] sm:$0xff] }
 0x680   :  { %4974 = vmatprep.subr.bf16.mxu0 %v5962_v26  ;;  %5003 = vmatprep.subr.bf16.mxu1 %v5873_v40  ;;  %v5021_v26 = vpack.c.bf16 %v1711_v18, %v1708_v17  ;;  %v1729_v17 = vld [vmem:[#allocation2 + $0x230] sm:$0xff]  ;;  %v1727_v18 = vld [vmem:[#allocation2 + $0x220] sm:$0xff] }
 0x683   :  { %4976 = vmatpush1.bf16.msra.mxu0 %v5969_v34  ;;  %5005 = vmatpush3.bf16.msra.mxu1 %v6002_v61  ;;  %v1712_v34 = vld [vmem:[#allocation2 + $0x1a8] sm:$0xff] }
 0x684   :  { %4978 = vmatprep.subr.bf16.mxu0 %v5972_v35  ;;  %5006 = vmatprep.subr.bf16.mxu1 %v5873_v40  ;;  %v5053_v35 = vpack.c.bf16 %v1712_v34, %v1709_v25  ;;  %v1730_v25 = vld [vmem:[#allocation2 + $0x238] sm:$0xff]  ;;  %v5033_v34 = vpack.c.bf16 %v1729_v17, %v1726_v27  ;;  %v1998_v17 = vld [vmem:[#allocation4 + $0x1b0] sm:$0xff] }
 0x687   :  { %4980 = vmatpush1.bf16.msra.mxu0 %v5982_v45  ;;  %5008 = vmatpush3.bf16.msra.mxu1 %v6019_v10 }
 0x688   :  { %4982 = vmatprep.subr.bf16.mxu0 %v5985_v46  ;;  %5009 = vmatprep.subr.bf16.mxu1 %v5873_v40 }
 0x68b   :  { %4984 = vmatpush1.bf16.msra.mxu0 %v5996_v55  ;;  %5011 = vmatpush3.bf16.msra.mxu1 %v6033_v20 }
 0x68c   :  { %4986 = vmatprep.subr.bf16.mxu0 %v5999_v56  ;;  %5012 = vmatprep.subr.bf16.mxu1 %v5873_v40 }
 0x68f   :  { %4988 = vmatpush1.bf16.msra.mxu0 %v6010_v2  ;;  %5014 = vmatpush3.bf16.msra.mxu1 %v6044_v24 }
 0x690   :  { %4990 = vmatprep.subr.bf16.mxu0 %v6016_v4  ;;  %5015 = vmatprep.subr.bf16.mxu1 %v5873_v40 }
 0x693   :  { %4992 = vmatpush1.bf16.msra.mxu0 %v6024_v13  ;;  %5017 = vmatpush3.bf16.msra.mxu1 %v6051_v29 }
 0x694   :  { %4994 = vmatprep.subr.bf16.mxu0 %v6030_v15  ;;  %5018 = vmatprep.subr.bf16.mxu1 %v5873_v40 }
 0x697   :  { %4996 = vmatpush1.bf16.msra.mxu0 %v6040_v23  ;;  %5020 = vmatpush3.bf16.msra.mxu1 %v6059_v32 }
 0x698   :  { %5022 = vmatprep.subr.bf16.mxu0 %v5021_v26  ;;  %5054 = vmatprep.subr.bf16.mxu1 %v5053_v35  ;;  %v5031_v26 = vpack.c.bf16 %v1722_v22, %v1719_v21  ;;  %v1992_v21 = vld [vmem:[#allocation4 + $0x180] sm:$0xff] }
 0x74d   :  { %v1448_v41 = vpop.f32.mrb[12].mxu0  ;;  %v1519_v45 = vpop.f32.mrb[20].mxu1 }
 0x74e   :  { %v5582_v46 = vadd.f32 %v6128_v11, %v1448_v41  ;;  %v1450_v51 = vpop.f32.mrb[13].mxu0  ;;  %v4114_v55 = vpop.f32.mrb[21].mxu1  ;;  %v1520_v20 = vadd.f32 %v1519_v45, %v6135_v36  ;;  %v1725_v41 = vld [vmem:[#allocation2 + $0x210] sm:$0xff]  ;;  %v1728_v45 = vld [vmem:[#allocation2 + $0x228] sm:$0xff] }
 0x74f   :  { %v5584_v61 = vadd.f32 %v6130_v14, %v1450_v51  ;;  %v1735_v51 = vld [vmem:[#allocation2 + $0x260] sm:$0xff]  ;;  %v1733_v55 = vld [vmem:[#allocation2 + $0x250] sm:$0xff] }
 0x750   :  { %v3466_v56 = vmul.f32 -1.442695, %v5582_v46  ;;  %v1732_v46 = vld [vmem:[#allocation2 + $0x248] sm:$0xff] }
 0x751   :  { %v3467_v2 = vmul.f32 -1.442695, %v5584_v61  ;;  %v5035_v61 = vpack.c.bf16 %v1728_v45, %v1725_v41  ;;  %v2004_v41 = vld [vmem:[#allocation4 + $0x1e0] sm:$0xff]  ;;  %v2007_v45 = vld [vmem:[#allocation4 + $0x1f8] sm:$0xff] }
 0x752   :  { %5720 = vpow2.f32 %v3466_v56  ;;  %v1736_v56 = vld [vmem:[#allocation2 + $0x268] sm:$0xff] }
 0x753   :  { %5722 = vpow2.f32 %v3467_v2  ;;  %v5037_v2 = vpack.c.bf16 %v1735_v51, %v1732_v46  ;;  %v6441_v46 = vpack.c.bf16 %v2007_v45, %v2004_v41  ;;  %v2011_v51 = vld [vmem:[#allocation4 + $0x218] sm:$0xff] }
 0x754   :  { %v2027_v41 = vld [vmem:[#allocation4 + $0x298] sm:$0xff] }
 0x75c   :  { %v5721_v4 = vpop.eup %5720 }
 0x75d   :  { %v1527_v10 = vadd.f32 1.0, %v5721_v4  ;;  %v5723_v13 = vpop.eup %5722  ;;  %v5069_v4 = vpack.c.bf16 %v1736_v56, %v1733_v55  ;;  %v2014_v55 = vld [vmem:[#allocation4 + $0x230] sm:$0xff] }
 0x75e   :  { %v1534_v15 = vadd.f32 1.0, %v5723_v13  ;;  %v1734_v13 = vld [vmem:[#allocation2 + $0x258] sm:$0xff]  ;;  %v6445_v56 = vpack.c.bf16 %v2014_v55, %v2011_v51  ;;  %v2030_v51 = vld [vmem:[#allocation4 + $0x2b0] sm:$0xff]  ;;  %v2033_v55 = vld [vmem:[#allocation4 + $0x2c8] sm:$0xff] }
 0x75f   :  { %5724 = vrcp.f32 %v1527_v10  ;;  %v1731_v10 = vld [vmem:[#allocation2 + $0x240] sm:$0xff] }
 0x760   :  { %5726 = vrcp.f32 %v1534_v15  ;;  %v1738_v15 = vld [vmem:[#allocation2 + $0x278] sm:$0xff] }
 0x769   :  { %v5725_v23 = vpop.eup %5724 }
 0x76a   :  { %v1537_v24 = vmul.f32 %v5725_v23, %v1520_v20  ;;  %v5727_v32 = vpop.eup %5726  ;;  %v1741_v20 = vld [vmem:[#allocation2 + $0x290] sm:$0xff]  ;;  %v1739_v23 = vld [vmem:[#allocation2 + $0x280] sm:$0xff] }
 0x76b   :  { %v1540_v53 = vsub.f32 1.0, %v5727_v32  ;;  %v1542_v48 = vmul.f32 %v5727_v32, %v6358_v28  ;;  %v5041_v32 = vpack.c.bf16 %v1741_v20, %v1738_v15  ;;  %v2016_v20 = vld [vmem:[#allocation4 + $0x240] sm:$0xff] }
 0x76c   :  { %v1538_v29 = vadd.f32 %v1537_v24, %v6122_v3  ;;  %v1720_v3 = vld [vmem:[#allocation2 + $0x1e8] sm:$0xff]  ;;  %v1742_v24 = vld [vmem:[#allocation2 + $0x298] sm:$0xff] }
 0x76d   :  { %v5029_v16 = vpack.c.bf16 %v1723_v9, %v1720_v3  ;;  %v1751_v3 = vld [vmem:[#allocation2 + $0x2e0] sm:$0xff] }
 0x76e   :  { %5728 = vtanh.f32 %v1538_v29  ;;  %v5039_v29 = vpack.c.bf16 %v1734_v13, %v1731_v10  ;;  %v2017_v10 = vld [vmem:[#allocation4 + $0x248] sm:$0xff]  ;;  %v2020_v13 = vld [vmem:[#allocation4 + $0x260] sm:$0xff] }
 0x76f   :  { %v6451_v15 = vpack.c.bf16 %v2020_v13, %v2017_v10  ;;  %v2039_v10 = vld [vmem:[#allocation4 + $0x2f8] sm:$0xff] }
 0x778   :  { %v5729_v33 = vpop.eup %5728 }
 0x779   :  { %v1541_v47 = vmul.f32 %v5729_v33, %v1540_v53  ;;  %v5073_v53 = vpack.c.bf16 %v1742_v24, %v1739_v23  ;;  %v1744_v33 = vld [vmem:[#allocation2 + $0x2a8] sm:$0xff]  ;;  %v2019_v23 = vld [vmem:[#allocation4 + $0x258] sm:$0xff] }
 0x77a   :  { %v5045_v52 = vpack.c.bf16 %v1747_v57, %v1744_v33  ;;  %v6453_v24 = vpack.c.bf16 %v2019_v23, %v2016_v20  ;;  %v2029_v57 = vld [vmem:[#allocation4 + $0x2a8] sm:$0xff] }
 0x77b   :  { %v6400_v63 = vadd.f32 %v1542_v48, %v1541_v47  ;;  %v1748_v47 = vld [vmem:[#allocation2 + $0x2c8] sm:$0xff]  ;;  %v5043_v48 = vpack.c.bf16 %v1740_v31, %v1737_v30  ;;  %v2022_v30 = vld [vmem:[#allocation4 + $0x270] sm:$0xff] }
 0x77c   :  { %v5077_v54 = vpack.c.bf16 %v1748_v47, %v1745_v42  ;;  %v2025_v31 = vld [vmem:[#allocation4 + $0x288] sm:$0xff]  ;;  %v2032_v42 = vld [vmem:[#allocation4 + $0x2c0] sm:$0xff] }
 0x77d   :  { %1609 = vmatmul.mubr.f32.vlgmr.msra.gmra.mrb[14].mxu0 %v6400_v63  ;;  %4148 = vmatmul.mubr.f32.vlgmr.msra.gmra.mrb[22].mxu1 %v6400_v63  ;;  %v6459_v33 = vpack.c.bf16 %v2025_v31, %v2022_v30  ;;  %v2028_v47 = vld [vmem:[#allocation4 + $0x2a0] sm:$0xff] }
 0x77e   :  { %5024 = vmatpush1.bf16.msra.mxu0 %v5023_v50  ;;  %5056 = vmatpush3.bf16.msra.mxu1 %v5053_v35  ;;  %v5065_v35 = vpack.c.bf16 %v1730_v25, %v1727_v18  ;;  %v1743_v50 = vld [vmem:[#allocation2 + $0x2a0] sm:$0xff]  ;;  %v2001_v18 = vld [vmem:[#allocation4 + $0x1c8] sm:$0xff] }
 0x77f   :  { %4182 = vmatprep.mubr.f32.mxu1 %v6138_v12  ;;  %5026 = vmatprep.subr.bf16.mxu0 %v5025_v5  ;;  %v1746_v5 = vld [vmem:[#allocation2 + $0x2b8] sm:$0xff]  ;;  %v6435_v25 = vpack.c.bf16 %v2001_v18, %v1998_v17  ;;  %v2018_v17 = vld [vmem:[#allocation4 + $0x250] sm:$0xff]  ;;  %v2021_v18 = vld [vmem:[#allocation4 + $0x268] sm:$0xff] }
 0x780   :  { %5058 = vmatprep.subr.bf16.mxu1 %v5057_v8  ;;  %1837 = vmatprep.mubr.f32.mxu0 %v5872_v0  ;;  %v5047_v9 = vpack.c.bf16 %v1746_v5, %v1743_v50  ;;  %v1997_v50 = vld [vmem:[#allocation4 + $0x1a8] sm:$0xff] }
 0x782   :  { %5028 = vmatpush1.bf16.msra.mxu0 %v5027_v59  ;;  %5060 = vmatpush3.bf16.msra.mxu1 %v5057_v8  ;;  %v1754_v8 = vld [vmem:[#allocation2 + $0x2f8] sm:$0xff]  ;;  %v1749_v59 = vld [vmem:[#allocation2 + $0x2d0] sm:$0xff] }
 0x783   :  { %5030 = vmatprep.subr.bf16.mxu0 %v5029_v16  ;;  %5062 = vmatprep.subr.bf16.mxu1 %v5061_v19  ;;  %v5081_v44 = vpack.c.bf16 %v1754_v8, %v1751_v3  ;;  %v1752_v16 = vld [vmem:[#allocation2 + $0x2e8] sm:$0xff]  ;;  %v2038_v3 = vld [vmem:[#allocation4 + $0x2f0] sm:$0xff] }
 0x784   :  { %v6472_v8 = vpack.c.bf16 %v2038_v3, %v2035_v7 }
 0x786   :  { %5032 = vmatpush1.bf16.msra.mxu0 %v5031_v26  ;;  %5064 = vmatpush3.bf16.msra.mxu1 %v5061_v19  ;;  %v5051_v19 = vpack.c.bf16 %v1752_v16, %v1749_v59  ;;  %v2005_v26 = vld [vmem:[#allocation4 + $0x1e8] sm:$0xff]  ;;  %v2000_v59 = vld [vmem:[#allocation4 + $0x1c0] sm:$0xff]  ;;  %v2003_v16 = vld [vmem:[#allocation4 + $0x1d8] sm:$0xff] }
 0x787   :  { %5034 = vmatprep.subr.bf16.mxu0 %v5033_v34  ;;  %5066 = vmatprep.subr.bf16.mxu1 %v5065_v35  ;;  %v2008_v34 = vld [vmem:[#allocation4 + $0x200] sm:$0xff] }
 0x78a   :  { %5036 = vmatpush1.bf16.msra.mxu0 %v5035_v61  ;;  %5068 = vmatpush3.bf16.msra.mxu1 %v5065_v35  ;;  %v6439_v35 = vpack.c.bf16 %v2008_v34, %v2005_v26  ;;  %v2010_v61 = vld [vmem:[#allocation4 + $0x210] sm:$0xff]  ;;  %v6491_v26 = vpack.c.bf16 %v2021_v18, %v2018_v17  ;;  %v2024_v34 = vld [vmem:[#allocation4 + $0x280] sm:$0xff] }
 0x78b   :  { %5038 = vmatprep.subr.bf16.mxu0 %v5037_v2  ;;  %5070 = vmatprep.subr.bf16.mxu1 %v5069_v4  ;;  %v2013_v2 = vld [vmem:[#allocation4 + $0x228] sm:$0xff]  ;;  %v6495_v45 = vpack.c.bf16 %v2027_v41, %v2024_v34  ;;  %v3470_v34 = vld [vmem:[%s6934_s3 + $0x3] sm:$0x7] }
 0x78c   :  { %v1761_v41 = vrot.slane %v3470_v34, %v6113_v58 }
 0x78e   :  { %5040 = vmatpush1.bf16.msra.mxu0 %v5039_v29  ;;  %5072 = vmatpush3.bf16.msra.mxu1 %v5069_v4  ;;  %v6447_v4 = vpack.c.bf16 %v2013_v2, %v2010_v61  ;;  %v2023_v29 = vld [vmem:[#allocation4 + $0x278] sm:$0xff]  ;;  %v6499_v61 = vpack.c.bf16 %v2033_v55, %v2030_v51  ;;  %v2036_v2 = vld [vmem:[#allocation4 + $0x2e0] sm:$0xff] }
 0x78f   :  { %5042 = vmatprep.subr.bf16.mxu0 %v5041_v32  ;;  %5074 = vmatprep.subr.bf16.mxu1 %v5073_v53  ;;  %v2026_v32 = vld [vmem:[#allocation4 + $0x290] sm:$0xff]  ;;  %v6503_v13 = vpack.c.bf16 %v2039_v10, %v2036_v2  ;;  %v1765_v2 = vrot.slane %v3470_v34, %v6120_v1 }
 0x792   :  { %5044 = vmatpush1.bf16.msra.mxu0 %v5043_v48  ;;  %5076 = vmatpush3.bf16.msra.mxu1 %v5073_v53  ;;  %v6457_v53 = vpack.c.bf16 %v2026_v32, %v2023_v29  ;;  %v6463_v48 = vpack.c.bf16 %v2032_v42, %v2029_v57 }
 0x793   :  { %5046 = vmatprep.subr.bf16.mxu0 %v5045_v52  ;;  %5078 = vmatprep.subr.bf16.mxu1 %v5077_v54  ;;  %v2031_v52 = vld [vmem:[#allocation4 + $0x2b8] sm:$0xff] }
 0x794   :  { %v6465_v5 = vpack.c.bf16 %v2031_v52, %v2028_v47 }
 0x796   :  { %5048 = vmatpush1.bf16.msra.mxu0 %v5047_v9  ;;  %5080 = vmatpush3.bf16.msra.mxu1 %v5077_v54  ;;  %v1994_v54 = vld [vmem:[#allocation4 + $0x190] sm:$0xff] }
 0x797   :  { %5050 = vmatprep.subr.bf16.mxu0 %v5049_v39  ;;  %5082 = vmatprep.subr.bf16.mxu1 %v5081_v44  ;;  %v6467_v43 = vpack.c.bf16 %v1997_v50, %v1994_v54  ;;  %v2034_v9 = vld [vmem:[#allocation4 + $0x2d0] sm:$0xff]  ;;  %v2037_v39 = vld [vmem:[#allocation4 + $0x2e8] sm:$0xff] }
 0x79a   :  { %5052 = vmatpush1.bf16.msra.mxu0 %v5051_v19  ;;  %5084 = vmatpush3.bf16.msra.mxu1 %v5081_v44  ;;  %v6475_v44 = vpack.c.bf16 %v2037_v39, %v2034_v9  ;;  %v6478_v19 = vpack.c.bf16 %v2003_v16, %v2000_v59 }
 0x79b   :  { %5117 = vmatprep.subr.bf16.mxu1 %v5873_v40 }
 0x79d   :  { %1838 = vmatmul.mubr.f32.vlgmr.msra.gmra.mrb[16].mxu0 %v6138_v12  ;;  %4183 = vmatmul.mubr.f32.vlgmr.msra.gmra.mrb[24].mxu1 %v6182_v6  ;;  %v1993_v12 = vld [vmem:[#allocation4 + $0x188] sm:$0xff] }
 0x79e   :  { %4185 = vmatprep.mubr.f32.mxu1 %v6226_v60  ;;  %1843 = vmatprep.mubr.f32.mxu0 %v5872_v0 }
 0x79f   :  { %5119 = vmatpush3.bf16.msra.mxu1 %v6467_v43 }
 0x7a0   :  { %5120 = vmatprep.subr.bf16.mxu1 %v5873_v40 }
 0x7a1   :  { %1844 = vmatmul.mubr.f32.gmra.mrb[18].mxu0 %v6182_v6  ;;  %4186 = vmatmul.mubr.f32.gmra.mrb[26].mxu1 %v6270_v49  ;;  %v1996_v6 = vld [vmem:[#allocation4 + $0x1a0] sm:$0xff] }
 0x7a2   :  { %4188 = vmatprep.mubr.f32.mxu1 %v6314_v38  ;;  %1849 = vmatprep.mubr.f32.mxu0 %v5872_v0 }
 0x7a3   :  { %5122 = vmatpush3.bf16.msra.mxu1 %v6478_v19 }
 0x7a4   :  { %5123 = vmatprep.subr.bf16.mxu1 %v5873_v40 }
 0x7a5   :  { %1850 = vmatmul.mubr.f32.gmra.mrb[20].mxu0 %v6226_v60  ;;  %4189 = vmatmul.mubr.f32.gmra.mrb[28].mxu1 %v6358_v28  ;;  %v6427_v60 = vpack.c.bf16 %v1996_v6, %v1993_v12  ;;  %v2006_v12 = vld [vmem:[#allocation4 + $0x1f0] sm:$0xff]  ;;  %v2009_v6 = vld [vmem:[#allocation4 + $0x208] sm:$0xff] }
 0x7a6   :  { %4191 = vmatprep.mubr.f32.mxu1 %v6400_v63  ;;  %1855 = vmatprep.mubr.f32.mxu0 %v5872_v0 }
 0x7a7   :  { %5086 = vmatprep.subr.bf16.mxu0 %v6427_v60 }
 0x7a9   :  { %1856 = vmatmul.mubr.f32.gmra.mrb[22].mxu0 %v6270_v49  ;;  %v1995_v49 = vld [vmem:[#allocation4 + $0x198] sm:$0xff] }
 0x7aa   :  { %1861 = vmatprep.mubr.f32.mxu0 %v5872_v0  ;;  %v6429_v22 = vpack.c.bf16 %v1995_v49, %v1992_v21  ;;  %v2012_v21 = vld [vmem:[#allocation4 + $0x220] sm:$0xff]  ;;  %v6484_v49 = vpack.c.bf16 %v2009_v6, %v2006_v12 }
 0x7ac   :  { %5088 = vmatpush1.bf16.msra.mxu0 %v6429_v22  ;;  %5125 = vmatpush3.bf16.msra.mxu1 %v6484_v49 }
 0x7ad   :  { %1862 = vmatmul.mubr.f32.gmra.mrb[24].mxu0 %v6314_v38  ;;  %v1999_v38 = vld [vmem:[#allocation4 + $0x1b8] sm:$0xff]  ;;  %5126 = vmatprep.subr.bf16.mxu1 %v5873_v40 }
 0x7ae   :  { %1867 = vmatprep.mubr.f32.mxu0 %v5872_v0 }
 0x7b1   :  { %1868 = vmatmul.mubr.f32.gmra.mrb[26].mxu0 %v6358_v28  ;;  %v2002_v28 = vld [vmem:[#allocation4 + $0x1d0] sm:$0xff] }
 0x7b2   :  { %1873 = vmatprep.mubr.f32.mxu0 %v5872_v0  ;;  %v6433_v27 = vpack.c.bf16 %v2002_v28, %v1999_v38  ;;  %v2015_v38 = vld [vmem:[#allocation4 + $0x238] sm:$0xff] }
 0x7b3   :  { %v6487_v28 = vpack.c.bf16 %v2015_v38, %v2012_v21 }
 0x7b4   :  { %5090 = vmatprep.subr.bf16.mxu0 %v6433_v27 }
 0x7b5   :  { %1874 = vmatmul.mubr.f32.gmra.mrb[28].mxu0 %v6400_v63  ;;  %5128 = vmatpush3.bf16.msra.mxu1 %v6487_v28 }
 0x7b6   :  { %1879 = vmatprep.mubr.f32.mxu0 %v5872_v0  ;;  %5092 = vmatpush1.bf16.msra.mxu0 %v6435_v25 }
 0x7b7   :  { %5094 = vmatprep.subr.bf16.mxu0 %v6439_v35  ;;  %5129 = vmatprep.subr.bf16.mxu1 %v5873_v40 }
 0x7b9   :  { %5131 = vmatpush3.bf16.msra.mxu1 %v6491_v26 }
 0x7ba   :  { %5096 = vmatpush1.bf16.msra.mxu0 %v6441_v46  ;;  %5132 = vmatprep.subr.bf16.mxu1 %v5873_v40 }
 0x7bb   :  { %5098 = vmatprep.subr.bf16.mxu0 %v6445_v56 }
 0x7bd   :  { %5134 = vmatpush3.bf16.msra.mxu1 %v6495_v45 }
 0x7be   :  { %5100 = vmatpush1.bf16.msra.mxu0 %v6447_v4  ;;  %5135 = vmatprep.subr.bf16.mxu1 %v5873_v40 }
 0x7bf   :  { %5102 = vmatprep.subr.bf16.mxu0 %v6451_v15 }
 0x7c1   :  { %5137 = vmatpush3.bf16.msra.mxu1 %v6499_v61 }
 0x7c2   :  { %5104 = vmatpush1.bf16.msra.mxu0 %v6453_v24  ;;  %5138 = vmatprep.subr.bf16.mxu1 %v5873_v40 }
 0x7c3   :  { %5106 = vmatprep.subr.bf16.mxu0 %v6457_v53 }
 0x7c5   :  { %5140 = vmatpush3.bf16.msra.mxu1 %v6503_v13 }
 0x7c6   :  { %5108 = vmatpush1.bf16.msra.mxu0 %v6459_v33  ;;  %5173 = vmatprep.subr.bf16.mxu1 %v5873_v40 }
 0x7c7   :  { %5110 = vmatprep.subr.bf16.mxu0 %v6463_v48 }
 0x7ca   :  { %5112 = vmatpush1.bf16.msra.mxu0 %v6465_v5 }
 0x7cb   :  { %5114 = vmatprep.subr.bf16.mxu0 %v6472_v8 }
 0x7ce   :  { %5116 = vmatpush1.bf16.msra.mxu0 %v6475_v44 }
 0x7cf   :  { %5142 = vmatprep.subr.bf16.mxu0 %v6427_v60 }
 0x850   :  { %v1610_v20 = vpop.f32.mrb[14].mxu0  ;;  %v1681_v23 = vpop.f32.mrb[22].mxu1 }
 0x851   :  { %v5586_v29 = vadd.f32 %v6128_v11, %v1610_v20  ;;  %v1612_v32 = vpop.f32.mrb[15].mxu0  ;;  %v4149_v30 = vpop.f32.mrb[23].mxu1  ;;  %v1682_v7 = vadd.f32 %v1681_v23, %v6135_v36 }
 0x852   :  { %v5588_v57 = vadd.f32 %v6130_v14, %v1612_v32 }
 0x853   :  { %v3468_v31 = vmul.f32 -1.442695, %v5586_v29 }
 0x854   :  { %v3469_v42 = vmul.f32 -1.442695, %v5588_v57 }
 0x855   :  { %5730 = vpow2.f32 %v3468_v31 }
 0x856   :  { %5732 = vpow2.f32 %v3469_v42 }
 0x85f   :  { %v5731_v47 = vpop.eup %5730 }
 0x860   :  { %v1689_v52 = vadd.f32 1.0, %v5731_v47  ;;  %v5733_v54 = vpop.eup %5732 }
 0x861   :  { %v1696_v50 = vadd.f32 1.0, %v5733_v54 }
 0x862   :  { %5734 = vrcp.f32 %v1689_v52 }
 0x863   :  { %5736 = vrcp.f32 %v1696_v50 }
 0x86c   :  { %v5735_v3 = vpop.eup %5734 }
 0x86d   :  { %v1699_v9 = vmul.f32 %v5735_v3, %v1682_v7  ;;  %v5737_v12 = vpop.eup %5736  ;;  %v6589_v3 = vrot.slane %v3470_v34, %v6097_v37 }
 0x86e   :  { %v1702_v36 = vsub.f32 1.0, %v5737_v12  ;;  %v1704_v18 = vmul.f32 %v5737_v12, %v6400_v63  ;;  %v3471_v63 = vld [vmem:[%s6935_s4 + $0x3] sm:$0x7] }
 0x86f   :  { %v1700_v11 = vadd.f32 %v1699_v9, %v6118_v62  ;;  %v2046_v51 = vrot.slane %v3471_v63, %v6113_v58  ;;  %v2050_v10 = vrot.slane %v3471_v63, %v6120_v1  ;;  %v6586_v50 = vrot.slane %v3471_v63, %v6097_v37 }
 0x870   :  { %v6512_v39 = vpop.f32.mrb[24].mxu1 }
 0x871   :  { %5738 = vtanh.f32 %v1700_v11  ;;  %v6514_v59 = vpop.f32.mrb[25].mxu1  ;;  %v6579_v23 = vadd.f32 %v2046_v51, %v1761_v41  ;;  %v6581_v32 = vadd.f32 %v2050_v10, %v1765_v2 }
 0x874   :  { %v6516_v14 = vpop.f32.mrb[26].mxu1 }
 0x875   :  { %v6518_v16 = vpop.f32.mrb[27].mxu1 }
 0x878   :  { %v6520_v6 = vpop.f32.mrb[28].mxu1 }
 0x879   :  { %v6522_v21 = vpop.f32.mrb[29].mxu1 }
 0x87b   :  { %v5739_v38 = vpop.eup %5738 }
 0x87c   :  { %v1703_v17 = vmul.f32 %v5739_v38, %v1702_v36  ;;  %v1953_v36 = vadd.f32 %v6514_v59, %v6589_v3 }
 0x87e   :  { %v1705_v62 = vadd.f32 %v1704_v18, %v1703_v17 }
 0x880   :  { %1880 = vmatmul.mubr.f32.gmra.mrb[30].mxu0 %v1705_v62  ;;  %4192 = vmatmul.mubr.f32.gmra.mrb[30].mxu1 %v1705_v62 }
 0x881   :  { %2122 = vmatprep.mubr.f32.mxu0 %v5872_v0  ;;  %4226 = vmatprep.mubr.msk.f32.mxu1 %vm5874_vm0, %v5872_v0 }
 0x884   :  { %2123 = vmatmul.mubr.f32.vlgmr.msra.gmra.mrb[16].mxu0 %v5872_v0  ;;  %4227 = vmatmul.mubr.f32.vlgmr.msra.gmra.mrb[32].mxu1 %v5872_v0 }
 0x885   :  { %5144 = vmatpush1.bf16.msra.mxu0 %v6429_v22  ;;  %5175 = vmatpush3.bf16.msra.mxu1 %v6467_v43 }
 0x886   :  { %5146 = vmatprep.subr.bf16.mxu0 %v6433_v27  ;;  %5176 = vmatprep.subr.bf16.mxu1 %v5873_v40 }
 0x887   :  { %2284 = vmatprep.mubr.f32.mxu0 %v5872_v0  ;;  %4261 = vmatprep.mubr.msk.f32.mxu1 %vm5874_vm0, %v5872_v0 }
 0x889   :  { %5148 = vmatpush1.bf16.msra.mxu0 %v6435_v25  ;;  %5178 = vmatpush3.bf16.msra.mxu1 %v6478_v19 }
 0x88a   :  { %5150 = vmatprep.subr.bf16.mxu0 %v6439_v35  ;;  %5179 = vmatprep.subr.bf16.mxu1 %v5873_v40 }
 0x88d   :  { %5152 = vmatpush1.bf16.msra.mxu0 %v6441_v46  ;;  %5181 = vmatpush3.bf16.msra.mxu1 %v6484_v49 }
 0x88e   :  { %5154 = vmatprep.subr.bf16.mxu0 %v6445_v56  ;;  %5182 = vmatprep.subr.bf16.mxu1 %v5873_v40 }
 0x891   :  { %5156 = vmatpush1.bf16.msra.mxu0 %v6447_v4  ;;  %5184 = vmatpush3.bf16.msra.mxu1 %v6487_v28 }
 0x892   :  { %5158 = vmatprep.subr.bf16.mxu0 %v6451_v15  ;;  %5185 = vmatprep.subr.bf16.mxu1 %v5873_v40 }
 0x895   :  { %5160 = vmatpush1.bf16.msra.mxu0 %v6453_v24  ;;  %5187 = vmatpush3.bf16.msra.mxu1 %v6491_v26 }
 0x896   :  { %5162 = vmatprep.subr.bf16.mxu0 %v6457_v53  ;;  %5188 = vmatprep.subr.bf16.mxu1 %v5873_v40 }
 0x899   :  { %5164 = vmatpush1.bf16.msra.mxu0 %v6459_v33  ;;  %5190 = vmatpush3.bf16.msra.mxu1 %v6495_v45 }
 0x89a   :  { %5166 = vmatprep.subr.bf16.mxu0 %v6463_v48  ;;  %5191 = vmatprep.subr.bf16.mxu1 %v5873_v40 }
 0x89d   :  { %5168 = vmatpush1.bf16.msra.mxu0 %v6465_v5  ;;  %5193 = vmatpush3.bf16.msra.mxu1 %v6499_v61 }
 0x89e   :  { %5170 = vmatprep.subr.bf16.mxu0 %v6472_v8  ;;  %5194 = vmatprep.subr.bf16.mxu1 %v5873_v40 }
 0x8a1   :  { %5172 = vmatpush1.bf16.msra.mxu0 %v6475_v44  ;;  %5196 = vmatpush3.bf16.msra.mxu1 %v6503_v13 }
 0x8a2   :  { %5198 = vmatprep.subr.bf16.mxu0 %v6427_v60  ;;  %5229 = vmatprep.subr.bf16.mxu1 %v5873_v40 }
 0x953   :  { %v6573_v55 = vpop.f32.mrb[30].mxu1 }
 0x954   :  { %v6577_v20 = vpop.f32.mrb[31].mxu1 }
 0x957   :  { %v2124_v29 = vpop.f32.mrb[16].mxu0  ;;  %v2195_v30 = vpop.f32.mrb[32].mxu1 }
 0x958   :  { %v5590_v31 = vadd.f32 %v6579_v23, %v2124_v29  ;;  %v2126_v57 = vpop.f32.mrb[17].mxu0  ;;  %v4228_v42 = vpop.f32.mrb[33].mxu1  ;;  %v2196_v11 = vadd.f32 %v2195_v30, %v6586_v50 }
 0x959   :  { %v5592_v58 = vadd.f32 %v6581_v32, %v2126_v57 }
 0x95a   :  { %v3472_v47 = vmul.f32 -1.442695, %v5590_v31 }
 0x95b   :  { %v3473_v52 = vmul.f32 -1.442695, %v5592_v58 }
 0x95c   :  { %5740 = vpow2.f32 %v3472_v47 }
 0x95d   :  { %5742 = vpow2.f32 %v3473_v52 }
 0x966   :  { %v5741_v54 = vpop.eup %5740 }
 0x967   :  { %v2203_v1 = vadd.f32 1.0, %v5741_v54  ;;  %v5743_v7 = vpop.eup %5742 }
 0x968   :  { %v2210_v9 = vadd.f32 1.0, %v5743_v7  ;;  %v1958_v7 = vadd.f32 %v6512_v39, %v6589_v3 }
 0x969   :  { %5744 = vrcp.f32 %v2203_v1 }
 0x96a   :  { %5746 = vrcp.f32 %v2210_v9 }
 0x973   :  { %v5745_v12 = vpop.eup %5744 }
 0x974   :  { %v2213_v38 = vmul.f32 %v5745_v12, %v2196_v11  ;;  %v5747_v18 = vpop.eup %5746 }
 0x975   :  { %v2216_v62 = vsub.f32 1.0, %v5747_v18  ;;  %v2218_v51 = vmul.f32 0.0, %v5747_v18 }
 0x976   :  { %v2214_v17 = vadd.f32 %v2213_v38, %v1953_v36 }
 0x978   :  { %5748 = vtanh.f32 %v2214_v17 }
 0x982   :  { %v5749_v41 = vpop.eup %5748 }
 0x983   :  { %v2217_v63 = vmul.f32 %v5749_v41, %v2216_v62 }
 0x985   :  { %v6594_v2 = vadd.f32 %v2218_v51, %v2217_v63 }
 0x987   :  { %2285 = vmatmul.mubr.f32.vlgmr.msra.gmra.mrb[18].mxu0 %v6594_v2  ;;  %4262 = vmatmul.mubr.f32.vlgmr.msra.gmra.mrb[34].mxu1 %v6594_v2 }
 0x988   :  { %5200 = vmatpush1.bf16.msra.mxu0 %v6429_v22  ;;  %5231 = vmatpush3.bf16.msra.mxu1 %v6467_v43 }
 0x989   :  { %5202 = vmatprep.subr.bf16.mxu0 %v6433_v27  ;;  %5232 = vmatprep.subr.bf16.mxu1 %v5873_v40 }
 0x98a   :  { %2446 = vmatprep.mubr.f32.mxu0 %v5872_v0  ;;  %4296 = vmatprep.mubr.msk.f32.mxu1 %vm5874_vm0, %v5872_v0 }
 0x98c   :  { %5204 = vmatpush1.bf16.msra.mxu0 %v6435_v25  ;;  %5234 = vmatpush3.bf16.msra.mxu1 %v6478_v19 }
 0x98d   :  { %5206 = vmatprep.subr.bf16.mxu0 %v6439_v35  ;;  %5235 = vmatprep.subr.bf16.mxu1 %v5873_v40 }
 0x990   :  { %5208 = vmatpush1.bf16.msra.mxu0 %v6441_v46  ;;  %5237 = vmatpush3.bf16.msra.mxu1 %v6484_v49 }
 0x991   :  { %5210 = vmatprep.subr.bf16.mxu0 %v6445_v56  ;;  %5238 = vmatprep.subr.bf16.mxu1 %v5873_v40 }
 0x994   :  { %5212 = vmatpush1.bf16.msra.mxu0 %v6447_v4  ;;  %5240 = vmatpush3.bf16.msra.mxu1 %v6487_v28 }
 0x995   :  { %5214 = vmatprep.subr.bf16.mxu0 %v6451_v15  ;;  %5241 = vmatprep.subr.bf16.mxu1 %v5873_v40 }
 0x998   :  { %5216 = vmatpush1.bf16.msra.mxu0 %v6453_v24  ;;  %5243 = vmatpush3.bf16.msra.mxu1 %v6491_v26 }
 0x999   :  { %5218 = vmatprep.subr.bf16.mxu0 %v6457_v53  ;;  %5244 = vmatprep.subr.bf16.mxu1 %v5873_v40 }
 0x99c   :  { %5220 = vmatpush1.bf16.msra.mxu0 %v6459_v33  ;;  %5246 = vmatpush3.bf16.msra.mxu1 %v6495_v45 }
 0x99d   :  { %5222 = vmatprep.subr.bf16.mxu0 %v6463_v48  ;;  %5247 = vmatprep.subr.bf16.mxu1 %v5873_v40 }
 0x9a0   :  { %5224 = vmatpush1.bf16.msra.mxu0 %v6465_v5  ;;  %5249 = vmatpush3.bf16.msra.mxu1 %v6499_v61 }
 0x9a1   :  { %5226 = vmatprep.subr.bf16.mxu0 %v6472_v8  ;;  %5250 = vmatprep.subr.bf16.mxu1 %v5873_v40 }
 0x9a4   :  { %5228 = vmatpush1.bf16.msra.mxu0 %v6475_v44  ;;  %5252 = vmatpush3.bf16.msra.mxu1 %v6503_v13 }
 0x9a5   :  { %5254 = vmatprep.subr.bf16.mxu0 %v6427_v60  ;;  %5285 = vmatprep.subr.bf16.mxu1 %v5873_v40 }
 0xa5a   :  { %v2286_v37 = vpop.f32.mrb[18].mxu0  ;;  %v2357_v59 = vpop.f32.mrb[34].mxu1 }
 0xa5b   :  { %v5594_v34 = vadd.f32 %v6579_v23, %v2286_v37  ;;  %v2288_v10 = vpop.f32.mrb[19].mxu0  ;;  %v4263_v29 = vpop.f32.mrb[35].mxu1  ;;  %v2358_v54 = vadd.f32 %v2357_v59, %v6586_v50 }
 0xa5c   :  { %v5596_v31 = vadd.f32 %v6581_v32, %v2288_v10 }
 0xa5d   :  { %v3474_v30 = vmul.f32 -1.442695, %v5594_v34 }
 0xa5e   :  { %v3475_v57 = vmul.f32 -1.442695, %v5596_v31 }
 0xa5f   :  { %5750 = vpow2.f32 %v3474_v30 }
 0xa60   :  { %5752 = vpow2.f32 %v3475_v57 }
 0xa69   :  { %v5751_v42 = vpop.eup %5750 }
 0xa6a   :  { %v2365_v47 = vadd.f32 1.0, %v5751_v42  ;;  %v5753_v58 = vpop.eup %5752 }
 0xa6b   :  { %v2372_v52 = vadd.f32 1.0, %v5753_v58 }
 0xa6c   :  { %5754 = vrcp.f32 %v2365_v47  ;;  %v1963_v47 = vadd.f32 %v6518_v16, %v6589_v3 }
 0xa6d   :  { %5756 = vrcp.f32 %v2372_v52 }
 0xa76   :  { %v5755_v1 = vpop.eup %5754 }
 0xa77   :  { %v2375_v9 = vmul.f32 %v5755_v1, %v2358_v54  ;;  %v5757_v12 = vpop.eup %5756 }
 0xa78   :  { %v2378_v36 = vsub.f32 1.0, %v5757_v12  ;;  %v2380_v18 = vmul.f32 %v5757_v12, %v6594_v2 }
 0xa79   :  { %v2376_v11 = vadd.f32 %v2375_v9, %v1958_v7 }
 0xa7b   :  { %5758 = vtanh.f32 %v2376_v11 }
 0xa85   :  { %v5759_v38 = vpop.eup %5758 }
 0xa86   :  { %v2379_v17 = vmul.f32 %v5759_v38, %v2378_v36 }
 0xa88   :  { %v6639_v62 = vadd.f32 %v2380_v18, %v2379_v17 }
 0xa8a   :  { %2447 = vmatmul.mubr.f32.vlgmr.msra.gmra.mrb[20].mxu0 %v6639_v62  ;;  %4297 = vmatmul.mubr.f32.vlgmr.msra.gmra.mrb[36].mxu1 %v6639_v62 }
 0xa8b   :  { %5256 = vmatpush1.bf16.msra.mxu0 %v6429_v22  ;;  %5287 = vmatpush3.bf16.msra.mxu1 %v6467_v43 }
 0xa8c   :  { %5258 = vmatprep.subr.bf16.mxu0 %v6433_v27  ;;  %5288 = vmatprep.subr.bf16.mxu1 %v5873_v40 }
 0xa8d   :  { %2608 = vmatprep.mubr.f32.mxu0 %v5872_v0  ;;  %4331 = vmatprep.mubr.msk.f32.mxu1 %vm5874_vm0, %v5872_v0 }
 0xa8f   :  { %5260 = vmatpush1.bf16.msra.mxu0 %v6435_v25  ;;  %5290 = vmatpush3.bf16.msra.mxu1 %v6478_v19 }
 0xa90   :  { %5262 = vmatprep.subr.bf16.mxu0 %v6439_v35  ;;  %5291 = vmatprep.subr.bf16.mxu1 %v5873_v40 }
 0xa93   :  { %5264 = vmatpush1.bf16.msra.mxu0 %v6441_v46  ;;  %5293 = vmatpush3.bf16.msra.mxu1 %v6484_v49 }
 0xa94   :  { %5266 = vmatprep.subr.bf16.mxu0 %v6445_v56  ;;  %5294 = vmatprep.subr.bf16.mxu1 %v5873_v40 }
 0xa97   :  { %5268 = vmatpush1.bf16.msra.mxu0 %v6447_v4  ;;  %5296 = vmatpush3.bf16.msra.mxu1 %v6487_v28 }
 0xa98   :  { %5270 = vmatprep.subr.bf16.mxu0 %v6451_v15  ;;  %5297 = vmatprep.subr.bf16.mxu1 %v5873_v40 }
 0xa9b   :  { %5272 = vmatpush1.bf16.msra.mxu0 %v6453_v24  ;;  %5299 = vmatpush3.bf16.msra.mxu1 %v6491_v26 }
 0xa9c   :  { %5274 = vmatprep.subr.bf16.mxu0 %v6457_v53  ;;  %5300 = vmatprep.subr.bf16.mxu1 %v5873_v40 }
 0xa9f   :  { %5276 = vmatpush1.bf16.msra.mxu0 %v6459_v33  ;;  %5302 = vmatpush3.bf16.msra.mxu1 %v6495_v45 }
 0xaa0   :  { %5278 = vmatprep.subr.bf16.mxu0 %v6463_v48  ;;  %5303 = vmatprep.subr.bf16.mxu1 %v5873_v40 }
 0xaa3   :  { %5280 = vmatpush1.bf16.msra.mxu0 %v6465_v5  ;;  %5305 = vmatpush3.bf16.msra.mxu1 %v6499_v61 }
 0xaa4   :  { %5282 = vmatprep.subr.bf16.mxu0 %v6472_v8  ;;  %5306 = vmatprep.subr.bf16.mxu1 %v5873_v40 }
 0xaa7   :  { %5284 = vmatpush1.bf16.msra.mxu0 %v6475_v44  ;;  %5308 = vmatpush3.bf16.msra.mxu1 %v6503_v13 }
 0xaa8   :  { %5310 = vmatprep.subr.bf16.mxu0 %v6427_v60  ;;  %5341 = vmatprep.subr.bf16.mxu1 %v5873_v40 }
 0xb5d   :  { %v2448_v39 = vpop.f32.mrb[20].mxu0  ;;  %v2519_v41 = vpop.f32.mrb[36].mxu1 }
 0xb5e   :  { %v5598_v63 = vadd.f32 %v6579_v23, %v2448_v39  ;;  %v2450_v51 = vpop.f32.mrb[21].mxu0  ;;  %v4298_v2 = vpop.f32.mrb[37].mxu1  ;;  %v2520_v57 = vadd.f32 %v2519_v41, %v6586_v50 }
 0xb5f   :  { %v5600_v59 = vadd.f32 %v6581_v32, %v2450_v51 }
 0xb60   :  { %v3476_v37 = vmul.f32 -1.442695, %v5598_v63 }
 0xb61   :  { %v3477_v34 = vmul.f32 -1.442695, %v5600_v59 }
 0xb62   :  { %5760 = vpow2.f32 %v3476_v37 }
 0xb63   :  { %5762 = vpow2.f32 %v3477_v34 }
 0xb6c   :  { %v5761_v10 = vpop.eup %5760 }
 0xb6d   :  { %v2527_v29 = vadd.f32 1.0, %v5761_v10  ;;  %v5763_v30 = vpop.eup %5762  ;;  %v1968_v10 = vadd.f32 %v6516_v14, %v6589_v3 }
 0xb6e   :  { %v2534_v31 = vadd.f32 1.0, %v5763_v30 }
 0xb6f   :  { %5764 = vrcp.f32 %v2527_v29 }
 0xb70   :  { %5766 = vrcp.f32 %v2534_v31 }
 0xb79   :  { %v5765_v42 = vpop.eup %5764 }
 0xb7a   :  { %v2537_v58 = vmul.f32 %v5765_v42, %v2520_v57  ;;  %v5767_v54 = vpop.eup %5766 }
 0xb7b   :  { %v2540_v1 = vsub.f32 1.0, %v5767_v54  ;;  %v2542_v11 = vmul.f32 %v5767_v54, %v6639_v62 }
 0xb7c   :  { %v2538_v52 = vadd.f32 %v2537_v58, %v1963_v47 }
 0xb7e   :  { %5768 = vtanh.f32 %v2538_v52 }
 0xb88   :  { %v5769_v7 = vpop.eup %5768 }
 0xb89   :  { %v2541_v9 = vmul.f32 %v5769_v7, %v2540_v1 }
 0xb8b   :  { %v6684_v12 = vadd.f32 %v2542_v11, %v2541_v9 }
 0xb8d   :  { %2609 = vmatmul.mubr.f32.vlgmr.msra.gmra.mrb[22].mxu0 %v6684_v12  ;;  %4332 = vmatmul.mubr.f32.vlgmr.msra.gmra.mrb[38].mxu1 %v6684_v12 }
 0xb8e   :  { %5312 = vmatpush1.bf16.msra.mxu0 %v6429_v22  ;;  %5343 = vmatpush3.bf16.msra.mxu1 %v6467_v43 }
 0xb8f   :  { %5314 = vmatprep.subr.bf16.mxu0 %v6433_v27  ;;  %5344 = vmatprep.subr.bf16.mxu1 %v5873_v40 }
 0xb90   :  { %2770 = vmatprep.mubr.f32.mxu0 %v5872_v0  ;;  %4366 = vmatprep.mubr.msk.f32.mxu1 %vm5874_vm0, %v5872_v0 }
 0xb92   :  { %5316 = vmatpush1.bf16.msra.mxu0 %v6435_v25  ;;  %5346 = vmatpush3.bf16.msra.mxu1 %v6478_v19 }
 0xb93   :  { %5318 = vmatprep.subr.bf16.mxu0 %v6439_v35  ;;  %5347 = vmatprep.subr.bf16.mxu1 %v5873_v40 }
 0xb96   :  { %5320 = vmatpush1.bf16.msra.mxu0 %v6441_v46  ;;  %5349 = vmatpush3.bf16.msra.mxu1 %v6484_v49 }
 0xb97   :  { %5322 = vmatprep.subr.bf16.mxu0 %v6445_v56  ;;  %5350 = vmatprep.subr.bf16.mxu1 %v5873_v40 }
 0xb9a   :  { %5324 = vmatpush1.bf16.msra.mxu0 %v6447_v4  ;;  %5352 = vmatpush3.bf16.msra.mxu1 %v6487_v28 }
 0xb9b   :  { %5326 = vmatprep.subr.bf16.mxu0 %v6451_v15  ;;  %5353 = vmatprep.subr.bf16.mxu1 %v5873_v40 }
 0xb9e   :  { %5328 = vmatpush1.bf16.msra.mxu0 %v6453_v24  ;;  %5355 = vmatpush3.bf16.msra.mxu1 %v6491_v26 }
 0xb9f   :  { %5330 = vmatprep.subr.bf16.mxu0 %v6457_v53  ;;  %5356 = vmatprep.subr.bf16.mxu1 %v5873_v40 }
 0xba2   :  { %5332 = vmatpush1.bf16.msra.mxu0 %v6459_v33  ;;  %5358 = vmatpush3.bf16.msra.mxu1 %v6495_v45 }
 0xba3   :  { %5334 = vmatprep.subr.bf16.mxu0 %v6463_v48  ;;  %5359 = vmatprep.subr.bf16.mxu1 %v5873_v40 }
 0xba6   :  { %5336 = vmatpush1.bf16.msra.mxu0 %v6465_v5  ;;  %5361 = vmatpush3.bf16.msra.mxu1 %v6499_v61 }
 0xba7   :  { %5338 = vmatprep.subr.bf16.mxu0 %v6472_v8  ;;  %5362 = vmatprep.subr.bf16.mxu1 %v5873_v40 }
 0xbaa   :  { %5340 = vmatpush1.bf16.msra.mxu0 %v6475_v44  ;;  %5364 = vmatpush3.bf16.msra.mxu1 %v6503_v13 }
 0xbab   :  { %5366 = vmatprep.subr.bf16.mxu0 %v6427_v60  ;;  %5397 = vmatprep.subr.bf16.mxu1 %v5873_v40 }
 0xc60   :  { %v2610_v16 = vpop.f32.mrb[22].mxu0  ;;  %v2681_v36 = vpop.f32.mrb[38].mxu1 }
 0xc61   :  { %v5602_v38 = vadd.f32 %v6579_v23, %v2610_v16  ;;  %v2612_v17 = vpop.f32.mrb[23].mxu0  ;;  %v4333_v18 = vpop.f32.mrb[39].mxu1  ;;  %v2682_v59 = vadd.f32 %v2681_v36, %v6586_v50 }
 0xc62   :  { %v5604_v39 = vadd.f32 %v6581_v32, %v2612_v17 }
 0xc63   :  { %v3478_v62 = vmul.f32 -1.442695, %v5602_v38 }
 0xc64   :  { %v3479_v41 = vmul.f32 -1.442695, %v5604_v39 }
 0xc65   :  { %5770 = vpow2.f32 %v3478_v62 }
 0xc66   :  { %5772 = vpow2.f32 %v3479_v41  ;;  %v1973_v41 = vadd.f32 %v6522_v21, %v6589_v3 }
 0xc6f   :  { %v5771_v63 = vpop.eup %5770 }
 0xc70   :  { %v2689_v51 = vadd.f32 1.0, %v5771_v63  ;;  %v5773_v2 = vpop.eup %5772 }
 0xc71   :  { %v2696_v37 = vadd.f32 1.0, %v5773_v2 }
 0xc72   :  { %5774 = vrcp.f32 %v2689_v51 }
 0xc73   :  { %5776 = vrcp.f32 %v2696_v37 }
 0xc7c   :  { %v5775_v34 = vpop.eup %5774 }
 0xc7d   :  { %v2699_v29 = vmul.f32 %v5775_v34, %v2682_v59  ;;  %v5777_v31 = vpop.eup %5776 }
 0xc7e   :  { %v2702_v57 = vsub.f32 1.0, %v5777_v31  ;;  %v2704_v58 = vmul.f32 %v5777_v31, %v6684_v12 }
 0xc7f   :  { %v2700_v30 = vadd.f32 %v2699_v29, %v1968_v10 }
 0xc81   :  { %5778 = vtanh.f32 %v2700_v30 }
 0xc8b   :  { %v5779_v42 = vpop.eup %5778 }
 0xc8c   :  { %v2703_v47 = vmul.f32 %v5779_v42, %v2702_v57 }
 0xc8e   :  { %v6729_v52 = vadd.f32 %v2704_v58, %v2703_v47 }
 0xc90   :  { %2771 = vmatmul.mubr.f32.vlgmr.msra.gmra.mrb[24].mxu0 %v6729_v52  ;;  %4367 = vmatmul.mubr.f32.vlgmr.msra.gmra.mrb[40].mxu1 %v6729_v52 }
 0xc91   :  { %5368 = vmatpush1.bf16.msra.mxu0 %v6429_v22  ;;  %5399 = vmatpush3.bf16.msra.mxu1 %v6467_v43 }
 0xc92   :  { %5370 = vmatprep.subr.bf16.mxu0 %v6433_v27  ;;  %5400 = vmatprep.subr.bf16.mxu1 %v5873_v40 }
 0xc93   :  { %2932 = vmatprep.mubr.f32.mxu0 %v5872_v0  ;;  %4401 = vmatprep.mubr.msk.f32.mxu1 %vm5874_vm0, %v5872_v0 }
 0xc95   :  { %5372 = vmatpush1.bf16.msra.mxu0 %v6435_v25  ;;  %5402 = vmatpush3.bf16.msra.mxu1 %v6478_v19 }
 0xc96   :  { %5374 = vmatprep.subr.bf16.mxu0 %v6439_v35  ;;  %5403 = vmatprep.subr.bf16.mxu1 %v5873_v40 }
 0xc99   :  { %5376 = vmatpush1.bf16.msra.mxu0 %v6441_v46  ;;  %5405 = vmatpush3.bf16.msra.mxu1 %v6484_v49 }
 0xc9a   :  { %5378 = vmatprep.subr.bf16.mxu0 %v6445_v56  ;;  %5406 = vmatprep.subr.bf16.mxu1 %v5873_v40 }
 0xc9d   :  { %5380 = vmatpush1.bf16.msra.mxu0 %v6447_v4  ;;  %5408 = vmatpush3.bf16.msra.mxu1 %v6487_v28 }
 0xc9e   :  { %5382 = vmatprep.subr.bf16.mxu0 %v6451_v15  ;;  %5409 = vmatprep.subr.bf16.mxu1 %v5873_v40 }
 0xca1   :  { %5384 = vmatpush1.bf16.msra.mxu0 %v6453_v24  ;;  %5411 = vmatpush3.bf16.msra.mxu1 %v6491_v26 }
 0xca2   :  { %5386 = vmatprep.subr.bf16.mxu0 %v6457_v53  ;;  %5412 = vmatprep.subr.bf16.mxu1 %v5873_v40 }
 0xca5   :  { %5388 = vmatpush1.bf16.msra.mxu0 %v6459_v33  ;;  %5414 = vmatpush3.bf16.msra.mxu1 %v6495_v45 }
 0xca6   :  { %5390 = vmatprep.subr.bf16.mxu0 %v6463_v48  ;;  %5415 = vmatprep.subr.bf16.mxu1 %v5873_v40 }
 0xca9   :  { %5392 = vmatpush1.bf16.msra.mxu0 %v6465_v5  ;;  %5417 = vmatpush3.bf16.msra.mxu1 %v6499_v61 }
 0xcaa   :  { %5394 = vmatprep.subr.bf16.mxu0 %v6472_v8  ;;  %5418 = vmatprep.subr.bf16.mxu1 %v5873_v40 }
 0xcad   :  { %5396 = vmatpush1.bf16.msra.mxu0 %v6475_v44  ;;  %5420 = vmatpush3.bf16.msra.mxu1 %v6503_v13 }
 0xcae   :  { %5422 = vmatprep.subr.bf16.mxu0 %v6427_v60  ;;  %5453 = vmatprep.subr.bf16.mxu1 %v5873_v40 }
 0xd63   :  { %v2772_v14 = vpop.f32.mrb[24].mxu0  ;;  %v2843_v54 = vpop.f32.mrb[40].mxu1 }
 0xd64   :  { %v5606_v1 = vadd.f32 %v6579_v23, %v2772_v14  ;;  %v2774_v7 = vpop.f32.mrb[25].mxu0  ;;  %v4368_v9 = vpop.f32.mrb[41].mxu1  ;;  %v2844_v62 = vadd.f32 %v2843_v54, %v6586_v50 }
 0xd65   :  { %v5608_v12 = vadd.f32 %v6581_v32, %v2774_v7 }
 0xd66   :  { %v3480_v11 = vmul.f32 -1.442695, %v5606_v1 }
 0xd67   :  { %v3481_v16 = vmul.f32 -1.442695, %v5608_v12 }
 0xd68   :  { %5780 = vpow2.f32 %v3480_v11  ;;  %v1978_v11 = vadd.f32 %v6520_v6, %v6589_v3  ;;  %v3354_v6 = vld [vmem:[%s6936_s5] sm:$0xff] }
 0xd69   :  { %5782 = vpow2.f32 %v3481_v16 }
 0xd72   :  { %v5781_v36 = vpop.eup %5780 }
 0xd73   :  { %v2851_v38 = vadd.f32 1.0, %v5781_v36  ;;  %v5783_v17 = vpop.eup %5782 }
 0xd74   :  { %v2858_v18 = vadd.f32 1.0, %v5783_v17 }
 0xd75   :  { %5784 = vrcp.f32 %v2851_v38 }
 0xd76   :  { %5786 = vrcp.f32 %v2858_v18 }
 0xd7f   :  { %v5785_v39 = vpop.eup %5784 }
 0xd80   :  { %v2861_v63 = vmul.f32 %v5785_v39, %v2844_v62  ;;  %v5787_v2 = vpop.eup %5786 }
 0xd81   :  { %v2864_v37 = vsub.f32 1.0, %v5787_v2  ;;  %v2866_v10 = vmul.f32 %v5787_v2, %v6729_v52  ;;  %v3358_v2 = vld [vmem:[%s6936_s5 + $0x20] sm:$0xff] }
 0xd82   :  { %v2862_v51 = vadd.f32 %v2861_v63, %v1973_v41  ;;  %v3356_v63 = vld [vmem:[%s6936_s5 + $0x10] sm:$0xff] }
 0xd84   :  { %5788 = vtanh.f32 %v2862_v51 }
 0xd8e   :  { %v5789_v59 = vpop.eup %5788 }
 0xd8f   :  { %v2865_v34 = vmul.f32 %v5789_v59, %v2864_v37  ;;  %v3359_v37 = vld [vmem:[%s6936_s5 + $0x28] sm:$0xff] }
 0xd90   :  { %v5540_v59 = vpack.c.bf16 %v3359_v37, %v3358_v2 }
 0xd91   :  { %v6774_v29 = vadd.f32 %v2866_v10, %v2865_v34  ;;  %v3360_v34 = vld [vmem:[%s6936_s5 + $0x30] sm:$0xff]  ;;  %v3361_v10 = vld [vmem:[%s6936_s5 + $0x38] sm:$0xff] }
 0xd93   :  { %2933 = vmatmul.mubr.f32.vlgmr.msra.gmra.mrb[26].mxu0 %v6774_v29  ;;  %4402 = vmatmul.mubr.f32.vlgmr.msra.gmra.mrb[42].mxu1 %v6774_v29 }
 0xd94   :  { %5424 = vmatpush1.bf16.msra.mxu0 %v6429_v22  ;;  %5455 = vmatpush3.bf16.msra.mxu1 %v6467_v43 }
 0xd95   :  { %5426 = vmatprep.subr.bf16.mxu0 %v6433_v27  ;;  %5456 = vmatprep.subr.bf16.mxu1 %v5873_v40 }
 0xd96   :  { %3094 = vmatprep.mubr.f32.mxu0 %v5872_v0  ;;  %4436 = vmatprep.mubr.msk.f32.mxu1 %vm5874_vm0, %v5872_v0 }
 0xd98   :  { %5428 = vmatpush1.bf16.msra.mxu0 %v6435_v25  ;;  %5458 = vmatpush3.bf16.msra.mxu1 %v6478_v19 }
 0xd99   :  { %5430 = vmatprep.subr.bf16.mxu0 %v6439_v35  ;;  %5459 = vmatprep.subr.bf16.mxu1 %v5873_v40 }
 0xd9c   :  { %5432 = vmatpush1.bf16.msra.mxu0 %v6441_v46  ;;  %5461 = vmatpush3.bf16.msra.mxu1 %v6484_v49 }
 0xd9d   :  { %5434 = vmatprep.subr.bf16.mxu0 %v6445_v56  ;;  %5462 = vmatprep.subr.bf16.mxu1 %v5873_v40 }
 0xda0   :  { %5436 = vmatpush1.bf16.msra.mxu0 %v6447_v4  ;;  %5464 = vmatpush3.bf16.msra.mxu1 %v6487_v28 }
 0xda1   :  { %5438 = vmatprep.subr.bf16.mxu0 %v6451_v15  ;;  %5465 = vmatprep.subr.bf16.mxu1 %v5873_v40 }
 0xda4   :  { %5440 = vmatpush1.bf16.msra.mxu0 %v6453_v24  ;;  %5467 = vmatpush3.bf16.msra.mxu1 %v6491_v26 }
 0xda5   :  { %5442 = vmatprep.subr.bf16.mxu0 %v6457_v53  ;;  %5468 = vmatprep.subr.bf16.mxu1 %v5873_v40 }
 0xda8   :  { %5444 = vmatpush1.bf16.msra.mxu0 %v6459_v33  ;;  %5470 = vmatpush3.bf16.msra.mxu1 %v6495_v45 }
 0xda9   :  { %5446 = vmatprep.subr.bf16.mxu0 %v6463_v48  ;;  %5471 = vmatprep.subr.bf16.mxu1 %v5873_v40 }
 0xdac   :  { %5448 = vmatpush1.bf16.msra.mxu0 %v6465_v5  ;;  %5473 = vmatpush3.bf16.msra.mxu1 %v6499_v61 }
 0xdad   :  { %5450 = vmatprep.subr.bf16.mxu0 %v6472_v8  ;;  %5474 = vmatprep.subr.bf16.mxu1 %v5873_v40 }
 0xdb0   :  { %5452 = vmatpush1.bf16.msra.mxu0 %v6475_v44  ;;  %5476 = vmatpush3.bf16.msra.mxu1 %v6503_v13 }
 0xdb1   :  { %5478 = vmatprep.subr.bf16.mxu0 %v6427_v60  ;;  %5509 = vmatprep.subr.bf16.mxu1 %v5873_v40 }
 0xe66   :  { %v2934_v21 = vpop.f32.mrb[26].mxu0  ;;  %v3005_v30 = vpop.f32.mrb[42].mxu1 }
 0xe67   :  { %v5610_v31 = vadd.f32 %v6579_v23, %v2934_v21  ;;  %v2936_v57 = vpop.f32.mrb[27].mxu0  ;;  %v4403_v42 = vpop.f32.mrb[43].mxu1  ;;  %v3006_v60 = vadd.f32 %v3005_v30, %v6586_v50  ;;  %v3362_v21 = vld [vmem:[%s6936_s5 + $0x40] sm:$0xff]  ;;  %v3363_v30 = vld [vmem:[%s6936_s5 + $0x48] sm:$0xff] }
 0xe68   :  { %v5612_v58 = vadd.f32 %v6581_v32, %v2936_v57  ;;  %v3364_v57 = vld [vmem:[%s6936_s5 + $0x50] sm:$0xff]  ;;  %v3365_v42 = vld [vmem:[%s6936_s5 + $0x58] sm:$0xff] }
 0xe69   :  { %v3482_v47 = vmul.f32 -1.442695, %v5610_v31  ;;  %v5546_v31 = vpack.c.bf16 %v3363_v30, %v3362_v21 }
 0xe6a   :  { %v3483_v52 = vmul.f32 -1.442695, %v5612_v58  ;;  %v3366_v58 = vld [vmem:[%s6936_s5 + $0x60] sm:$0xff] }
 0xe6b   :  { %5790 = vpow2.f32 %v3482_v47  ;;  %v5549_v47 = vpack.c.bf16 %v3365_v42, %v3364_v57 }
 0xe6c   :  { %5792 = vpow2.f32 %v3483_v52  ;;  %v3367_v52 = vld [vmem:[%s6936_s5 + $0x68] sm:$0xff] }
 0xe75   :  { %v5791_v14 = vpop.eup %5790 }
 0xe76   :  { %v3013_v54 = vadd.f32 1.0, %v5791_v14  ;;  %v5793_v1 = vpop.eup %5792  ;;  %v5552_v14 = vpack.c.bf16 %v3367_v52, %v3366_v58 }
 0xe77   :  { %v3020_v7 = vadd.f32 1.0, %v5793_v1  ;;  %v3369_v1 = vld [vmem:[%s6936_s5 + $0x78] sm:$0xff] }
 0xe78   :  { %5794 = vrcp.f32 %v3013_v54  ;;  %v3368_v54 = vld [vmem:[%s6936_s5 + $0x70] sm:$0xff] }
 0xe79   :  { %5796 = vrcp.f32 %v3020_v7  ;;  %v5555_v7 = vpack.c.bf16 %v3369_v1, %v3368_v54 }
 0xe82   :  { %v5795_v9 = vpop.eup %5794 }
 0xe83   :  { %v3023_v12 = vmul.f32 %v5795_v9, %v3006_v60  ;;  %v5797_v36 = vpop.eup %5796 }
 0xe84   :  { %v3026_v38 = vsub.f32 1.0, %v5797_v36  ;;  %v3028_v62 = vmul.f32 %v5797_v36, %v6774_v29  ;;  %v5543_v29 = vpack.c.bf16 %v3361_v10, %v3360_v34 }
 0xe85   :  { %v3024_v16 = vadd.f32 %v3023_v12, %v1978_v11 }
 0xe87   :  { %5798 = vtanh.f32 %v3024_v16 }
 0xe91   :  { %v5799_v17 = vpop.eup %5798 }
 0xe92   :  { %v3027_v18 = vmul.f32 %v5799_v17, %v3026_v38 }
 0xe94   :  { %v3029_v39 = vadd.f32 %v3028_v62, %v3027_v18 }
 0xe96   :  { %3095 = vmatmul.mubr.f32.vlgmr.msra.gmra.mrb[28].mxu0 %v3029_v39  ;;  %4437 = vmatmul.mubr.f32.vlgmr.msra.gmra.mrb[44].mxu1 %v3029_v39 }
 0xe97   :  { %5480 = vmatpush1.bf16.msra.mxu0 %v6429_v22  ;;  %5511 = vmatpush3.bf16.msra.mxu1 %v6467_v43 }
 0xe98   :  { %5482 = vmatprep.subr.bf16.mxu0 %v6433_v27  ;;  %5512 = vmatprep.subr.bf16.mxu1 %v5873_v40 }
 0xe99   :  { %3256 = vmatprep.mubr.f32.mxu0 %v5872_v0  ;;  %4471 = vmatprep.mubr.msk.f32.mxu1 %vm5874_vm0, %v5872_v0 }
 0xe9b   :  { %5484 = vmatpush1.bf16.msra.mxu0 %v6435_v25  ;;  %5514 = vmatpush3.bf16.msra.mxu1 %v6478_v19 }
 0xe9c   :  { %5486 = vmatprep.subr.bf16.mxu0 %v6439_v35  ;;  %5515 = vmatprep.subr.bf16.mxu1 %v5873_v40 }
 0xe9f   :  { %5488 = vmatpush1.bf16.msra.mxu0 %v6441_v46  ;;  %5517 = vmatpush3.bf16.msra.mxu1 %v6484_v49 }
 0xea0   :  { %5490 = vmatprep.subr.bf16.mxu0 %v6445_v56  ;;  %5518 = vmatprep.subr.bf16.mxu1 %v5873_v40 }
 0xea3   :  { %5492 = vmatpush1.bf16.msra.mxu0 %v6447_v4  ;;  %5520 = vmatpush3.bf16.msra.mxu1 %v6487_v28 }
 0xea4   :  { %5494 = vmatprep.subr.bf16.mxu0 %v6451_v15  ;;  %5521 = vmatprep.subr.bf16.mxu1 %v5873_v40 }
 0xea7   :  { %5496 = vmatpush1.bf16.msra.mxu0 %v6453_v24  ;;  %5523 = vmatpush3.bf16.msra.mxu1 %v6491_v26 }
 0xea8   :  { %5498 = vmatprep.subr.bf16.mxu0 %v6457_v53  ;;  %5524 = vmatprep.subr.bf16.mxu1 %v5873_v40 }
 0xeab   :  { %5500 = vmatpush1.bf16.msra.mxu0 %v6459_v33  ;;  %5526 = vmatpush3.bf16.msra.mxu1 %v6495_v45 }
 0xeac   :  { %5502 = vmatprep.subr.bf16.mxu0 %v6463_v48  ;;  %5527 = vmatprep.subr.bf16.mxu1 %v5873_v40 }
 0xeaf   :  { %5504 = vmatpush1.bf16.msra.mxu0 %v6465_v5  ;;  %5529 = vmatpush3.bf16.msra.mxu1 %v6499_v61 }
 0xeb0   :  { %5506 = vmatprep.subr.bf16.mxu0 %v6472_v8  ;;  %5530 = vmatprep.subr.bf16.mxu1 %v5873_v40  ;;  %v1983_v8 = vadd.f32 %v6577_v20, %v6589_v3  ;;  %v3355_v20 = vld [vmem:[%s6936_s5 + $0x8] sm:$0xff] }
 0xeb1   :  { %v5534_v41 = vpack.c.bf16 %v3355_v20, %v3354_v6 }
 0xeb3   :  { %5508 = vmatpush1.bf16.msra.mxu0 %v6475_v44  ;;  %5532 = vmatpush3.bf16.msra.mxu1 %v6503_v13 }
 0xeb4   :  { %5533 = vmatprep.subr.bf16.mxu0 %v5873_v40 }
 0xf69   :  { %v3096_v22 = vpop.f32.mrb[28].mxu0  ;;  %v3167_v27 = vpop.f32.mrb[44].mxu1 }
 0xf6a   :  { %v5614_v25 = vadd.f32 %v6579_v23, %v3096_v22  ;;  %v3098_v35 = vpop.f32.mrb[29].mxu0  ;;  %v4438_v46 = vpop.f32.mrb[45].mxu1  ;;  %v3168_v5 = vadd.f32 %v3167_v27, %v6586_v50 }
 0xf6b   :  { %v5616_v4 = vadd.f32 %v6581_v32, %v3098_v35 }
 0xf6c   :  { %v3484_v56 = vmul.f32 -1.442695, %v5614_v25  ;;  %v1988_v25 = vadd.f32 %v6573_v55, %v6589_v3 }
 0xf6d   :  { %v3485_v15 = vmul.f32 -1.442695, %v5616_v4 }
 0xf6e   :  { %5800 = vpow2.f32 %v3484_v56 }
 0xf6f   :  { %5802 = vpow2.f32 %v3485_v15 }
 0xf78   :  { %v5801_v24 = vpop.eup %5800 }
 0xf79   :  { %v3175_v53 = vadd.f32 1.0, %v5801_v24  ;;  %v5803_v33 = vpop.eup %5802 }
 0xf7a   :  { %v3182_v48 = vadd.f32 1.0, %v5803_v33 }
 0xf7b   :  { %5804 = vrcp.f32 %v3175_v53 }
 0xf7c   :  { %5806 = vrcp.f32 %v3182_v48 }
 0xf85   :  { %v5805_v43 = vpop.eup %5804 }
 0xf86   :  { %v3185_v44 = vmul.f32 %v5805_v43, %v3168_v5  ;;  %v5807_v49 = vpop.eup %5806 }
 0xf87   :  { %v3188_v28 = vsub.f32 1.0, %v5807_v49  ;;  %v3190_v61 = vmul.f32 %v5807_v49, %v3029_v39 }
 0xf88   :  { %v3186_v19 = vadd.f32 %v3185_v44, %v1983_v8 }
 0xf8a   :  { %5808 = vtanh.f32 %v3186_v19 }
 0xf94   :  { %v5809_v26 = vpop.eup %5808 }
 0xf95   :  { %v3189_v45 = vmul.f32 %v5809_v26, %v3188_v28 }
 0xf97   :  { %v6858_v13 = vadd.f32 %v3190_v61, %v3189_v45 }
 0xf99   :  { %3257 = vmatmul.mubr.f32.vlgmr.msra.gmra.mrb[30].mxu0 %v6858_v13  ;;  %4472 = vmatmul.mubr.f32.vlgmr.msra.gmra.mrb[46].mxu1 %v6858_v13 }
 0xf9a   :  { %4506 = vmatprep.mubr.msk.f32.mxu0 %vm5874_vm0, %v5872_v0  ;;  %5535 = vmatpush3.bf16.msra.mxu0 %v5534_v41  ;;  %v3357_v0 = vld [vmem:[%s6936_s5 + $0x18] sm:$0xff] }
 0xf9b   :  { %5536 = vmatprep.subr.bf16.mxu0 %v5873_v40  ;;  %v5537_v51 = vpack.c.bf16 %v3357_v0, %v3356_v63 }
 0xf9e   :  { %5538 = vmatpush3.bf16.msra.mxu0 %v5537_v51 }
 0xf9f   :  { %5539 = vmatprep.subr.bf16.mxu0 %v5873_v40 }
 0xfa2   :  { %5541 = vmatpush3.bf16.msra.mxu0 %v5540_v59 }
 0xfa3   :  { %5542 = vmatprep.subr.bf16.mxu0 %v5873_v40 }
 0xfa6   :  { %5544 = vmatpush3.bf16.msra.mxu0 %v5543_v29 }
 0xfa7   :  { %5545 = vmatprep.subr.bf16.mxu0 %v5873_v40 }
 0xfaa   :  { %5547 = vmatpush3.bf16.msra.mxu0 %v5546_v31 }
 0xfab   :  { %5548 = vmatprep.subr.bf16.mxu0 %v5873_v40 }
 0xfae   :  { %5550 = vmatpush3.bf16.msra.mxu0 %v5549_v47 }
 0xfaf   :  { %5551 = vmatprep.subr.bf16.mxu0 %v5873_v40 }
 0xfb2   :  { %5553 = vmatpush3.bf16.msra.mxu0 %v5552_v14 }
 0xfb3   :  { %5554 = vmatprep.subr.bf16.mxu0 %v5873_v40 }
 0xfb6   :  { %5556 = vmatpush3.bf16.msra.mxu0 %v5555_v7 }
0x106c   :  { %v3258_v60 = vpop.f32.mrb[30].mxu0  ;;  %v3329_v9 = vpop.f32.mrb[46].mxu1 }
0x106d   :  { %v5618_v11 = vadd.f32 %v6579_v23, %v3258_v60  ;;  %v3260_v12 = vpop.f32.mrb[31].mxu0  ;;  %v4473_v16 = vpop.f32.mrb[47].mxu1  ;;  %v3330_v40 = vadd.f32 %v3329_v9, %v6586_v50  ;;  %v3488_v50 = vld [vmem:[%s6937_s6] ss:$0 sm:$0xff] }
0x106e   :  { %v5620_v38 = vadd.f32 %v6581_v32, %v3260_v12 }
0x106f   :  { %v3486_v36 = vmul.f32 -1.442695, %v5618_v11 }
0x1070   :  { %v3487_v17 = vmul.f32 -1.442695, %v5620_v38 }
0x1071   :  { %5810 = vpow2.f32 %v3486_v36 }
0x1072   :  { %5812 = vpow2.f32 %v3487_v17 }
0x107b   :  { %v5811_v18 = vpop.eup %5810 }
0x107c   :  { %v3337_v62 = vadd.f32 1.0, %v5811_v18  ;;  %v5813_v39 = vpop.eup %5812 }
0x107d   :  { %v3344_v22 = vadd.f32 1.0, %v5813_v39 }
0x107e   :  { %5814 = vrcp.f32 %v3337_v62 }
0x107f   :  { %5816 = vrcp.f32 %v3344_v22 }
0x1088   :  { %v5815_v27 = vpop.eup %5814 }
0x1089   :  { %v3347_v23 = vmul.f32 %v5815_v27, %v3330_v40  ;;  %v5817_v46 = vpop.eup %5816 }
0x108a   :  { %v3350_v32 = vsub.f32 1.0, %v5817_v46  ;;  %v3352_v15 = vmul.f32 %v5817_v46, %v6858_v13 }
0x108b   :  { %v3348_v35 = vadd.f32 %v3347_v23, %v1988_v25 }
0x108d   :  { %5818 = vtanh.f32 %v3348_v35 }
0x1097   :  { %v5819_v56 = vpop.eup %5818 }
0x1098   :  { %v3351_v4 = vmul.f32 %v5819_v56, %v3350_v32 }
0x109a   :  { %v3353_v24 = vadd.f32 %v3352_v15, %v3351_v4 }
0x109c   :  { %4507 = vmatmul.mubr.f32.vlgmr.msra.gmra.mrb[32].mxu0 %v3353_v24 }
0x116f   :  { %v3443_v53 = vpop.f32.mrb[32].mxu0 }
0x1170   :  { %v3444_v33 = vadd.f32 %v3488_v50, %v3443_v53  ;;  %v4508_v48 = vpop.f32.mrb[33].mxu0 }
0x1172   :  { %3447 = vst [vmem:[%s6938_s7] sm:$0xff] %v3444_v33 }
0x1173   :  { %3452 = vsyncpa [#allocation3], 1 }
0x1174   :  { %3453 = vsyncpa [#allocation5], 1 }

</bundles_post_ra>
